<compile_context>
chip_gen: v5e
topology: v5e:2x2
jax: 0.10.0
libtpu: 0.0.40
codegen_flags: <defaults>
</compile_context>

<pallas_src>
import math
import functools

import jax
import jax.numpy as jnp
import numpy as np
from jax.experimental import pallas as pl
from jax.experimental.pallas import tpu as pltpu

# ---------------- static configuration (small demo shapes) ----------------
BATCH       = 2
MEM_SLOTS   = 8
HEAD_SIZE   = 4
N_HEADS     = 1
MEM_SIZE    = HEAD_SIZE * N_HEADS          # 4
KEY_SIZE    = HEAD_SIZE                    # 4
VALUE_SIZE  = HEAD_SIZE                    # 4
NUM_GATES   = 2 * MEM_SIZE                 # 8  (gate_style='unit')
INPUT_SIZE  = 16
SEQ         = MEM_SLOTS                    # T must equal mem_slots (reference constraint)
NUM_BLOCKS  = 1
NUM_MLP     = 2                            # attention_mlp_layers (tied weights)
LN_EPS      = 1e-5

assert SEQ == MEM_SLOTS and MEM_SLOTS == NUM_GATES, "reference shape constraints"

# ---------------- parameter-slab row map (every entry starts at lane 0) ----------------
R_W_IN  = 0                                # (16, 4) input projector
R_WQ    = R_W_IN + INPUT_SIZE              # (4, 4)  query proj, pre-scaled by 1/sqrt(key)
R_WK    = R_WQ + MEM_SIZE                  # (4, 4)  key proj
R_WV    = R_WK + MEM_SIZE                  # (4, 4)  value proj
R_WMLP  = R_WV + MEM_SIZE                  # (4, 4)  tied attention MLP
R_WRL_I = R_WMLP + MEM_SIZE                # (4, 4)  RepeatLinear, input-gate half
R_WRL_F = R_WRL_I + MEM_SIZE               # (4, 4)  RepeatLinear, forget-gate half
R_WGLL  = R_WRL_F + MEM_SIZE               # (8, 4)  GroupLinear weight
R_BGLL  = R_WGLL + NUM_GATES               # (8, 1)  GroupLinear bias (col 0)
R_BQ    = R_BGLL + NUM_GATES               # single (1, 4) rows from here on:
R_BK    = R_BQ + 1
R_BV    = R_BK + 1
R_BMLP  = R_BV + 1
R_LN1G  = R_BMLP + 1
R_LN1B  = R_LN1G + 1
R_LN2G  = R_LN1B + 1
R_LN2B  = R_LN2G + 1
R_BIN   = R_LN2B + 1
R_WREP  = R_BIN + 1
R_BRLI  = R_WREP + 1                       # RepeatLinear bias half + input_bias folded
R_BRLF  = R_BRLI + 1                       # RepeatLinear bias half + forget_bias folded
SLAB_ROWS = 72                             # pad to a sublane-tile multiple


# ---------------- the fused forward_step kernel (whole batch, no grid) ----------------
def rmc_kernel(ipts_ref, mem_ref, slab_ref, out_ref):
    B, T, M, D = BATCH, SEQ, MEM_SLOTS, MEM_SIZE

    x      = ipts_ref[...]                                   # (B, T, input_size)
    memory = mem_ref[...]                                    # (B, M, D)

    # --- parameter reads: sublane row-group slices of the packed slab, lane offset 0 ---
    w_in   = slab_ref[R_W_IN:R_W_IN + INPUT_SIZE, :]         # (16, D)
    w_q    = slab_ref[R_WQ:R_WQ + D, :]                      # (D, D)  (scale folded in)
    w_k    = slab_ref[R_WK:R_WK + D, :]
    w_v    = slab_ref[R_WV:R_WV + D, :]
    w_mlp  = slab_ref[R_WMLP:R_WMLP + D, :]
    w_rl_i = slab_ref[R_WRL_I:R_WRL_I + D, :]
    w_rl_f = slab_ref[R_WRL_F:R_WRL_F + D, :]
    w_gll  = slab_ref[R_WGLL:R_WGLL + NUM_GATES, :]          # (G, D)
    b_gll  = slab_ref[R_BGLL:R_BGLL + NUM_GATES, 0:1]        # (G, 1)

    b_q    = slab_ref[R_BQ:R_BQ + 1, :]                      # (1, D) (scale folded in)
    b_k    = slab_ref[R_BK:R_BK + 1, :]
    b_v    = slab_ref[R_BV:R_BV + 1, :]
    b_mlp  = slab_ref[R_BMLP:R_BMLP + 1, :]
    ln1_g  = slab_ref[R_LN1G:R_LN1G + 1, :]
    ln1_b  = slab_ref[R_LN1B:R_LN1B + 1, :]
    ln2_g  = slab_ref[R_LN2G:R_LN2G + 1, :]
    ln2_b  = slab_ref[R_LN2B:R_LN2B + 1, :]
    b_in   = slab_ref[R_BIN:R_BIN + 1, :]
    w_rep  = slab_ref[R_WREP:R_WREP + 1, :]
    b_rl_i = slab_ref[R_BRLI:R_BRLI + 1, :]                  # input_bias folded in
    b_rl_f = slab_ref[R_BRLF:R_BRLF + 1, :]                  # forget_bias folded in

    # --- biases pre-broadcast ONCE to their operand shapes (T == M == 8) ---
    def bcast3(b):
        return jnp.broadcast_to(b.reshape(1, 1, D), (B, M, D))

    b_q_f, b_k_f, b_v_f, b_mlp_f = bcast3(b_q), bcast3(b_k), bcast3(b_v), bcast3(b_mlp)

    def mac(a, w, b_full):
        # a:(...,K) @ w:(K,E) + bias -> unrolled VPU multiply-accumulate (no MXU).
        out = b_full
        for kk in range(w.shape[0]):
            out = out + a[..., kk:kk + 1] * w[kk:kk + 1, :]
        return out

    def layernorm(v, g, b):
        mu = jnp.mean(v, axis=-1, keepdims=True)
        var = jnp.mean((v - mu) ** 2, axis=-1, keepdims=True)
        return (v - mu) * jax.lax.rsqrt(var + LN_EPS) * g + b

    def attend(q, k, v):
        # multi-head attention; 1/sqrt(key_size) already folded into w_q / b_q.
        outs = []
        for h in range(N_HEADS):
            qh = q[..., h * KEY_SIZE:(h + 1) * KEY_SIZE]
            kh = k[..., h * KEY_SIZE:(h + 1) * KEY_SIZE]
            vh = v[..., h * VALUE_SIZE:(h + 1) * VALUE_SIZE]
            # scores: broadcast-multiply + lane reduce -> no per-batch K transpose, no MXU
            s = jnp.sum(qh[:, :, None, :] * kh[:, None, :, :], axis=-1)       # (B, Q, K)
            s = jnp.exp(s - jnp.max(s, axis=-1, keepdims=True))
            p = s * pl.reciprocal(jnp.sum(s, axis=-1, keepdims=True), approx=True)
            # attn_drop -> identity (inference); use_topk=False -> no masking
            # probs @ V: unrolled VPU MAC over the key axis (no MXU push/pop)
            o = p[:, :, 0:1] * vh[:, 0:1, :]
            for t in range(1, vh.shape[1]):
                o = o + p[:, :, t:t + 1] * vh[:, t:t + 1, :]
            outs.append(o)
        return outs[0] if N_HEADS == 1 else jnp.concatenate(outs, axis=-1)

    # ---- input projector: the only MXU matmul left ((B*T,16) @ (16,D)) ----
    inputs = (jnp.dot(x.reshape(B * T, INPUT_SIZE), w_in,
                      preferred_element_type=jnp.float32) + b_in).reshape(B, T, D)

    # ---- q/k/v projections of the inputs (shared by both attention calls) ----
    q_in = mac(inputs, w_q, b_q_f)                           # (B, T, D), pre-scaled
    k_in = mac(inputs, w_k, b_k_f)
    v_in = mac(inputs, w_v, b_v_f)

    # ---- attend over memory: attention + residual LN + tied-weight MLP + residual LN ----
    # k_in/v_in hoisted out of the block loop: inputs are loop-invariant (NUM_BLOCKS=1).
    new_mem = memory
    for _ in range(NUM_BLOCKS):
        q_mem = mac(new_mem, w_q, b_q_f)
        new_mem = layernorm(new_mem + attend(q_mem, k_in, v_in), ln1_g, ln1_b)
        mlp = new_mem
        for _l in range(NUM_MLP):                            # tied weights (ModuleList([Linear]*L))
            mlp = jnp.maximum(mac(mlp, w_mlp, b_mlp_f), 0.0)
        new_mem = layernorm(new_mem + mlp, ln2_g, ln2_b)

    # ---- gates (gate_style='unit'); gate halves projected separately -> no lane-offset slices ----
    mem_tanh = jnp.tanh(memory)                                                # (B, M, D)
    rx = jnp.mean(jnp.maximum(w_rep * inputs, 0.0), axis=1)                    # (B, D)
    gi_i = mac(rx, w_rl_i, jnp.broadcast_to(b_rl_i, (B, D)))                   # (B, D)
    gi_f = mac(rx, w_rl_f, jnp.broadcast_to(b_rl_f, (B, D)))                   # (B, D)
    gm = jnp.sum(mem_tanh * w_gll, axis=-1, keepdims=True) + b_gll             # (B, M, 1); M == G
    input_gate  = jax.nn.sigmoid(gm + gi_i[:, None, :])                        # (B, M, D)
    forget_gate = jax.nn.sigmoid(gm + gi_f[:, None, :])                        # (B, M, D)
    next_memory = input_gate * jnp.tanh(new_mem) + forget_gate * memory

    # ---- hx: queries from projected inputs, keys/values from next_memory ----
    k_nm = mac(next_memory, w_k, b_k_f)
    v_nm = mac(next_memory, w_v, b_v_f)
    hx = attend(q_in, k_nm, v_nm)

    # ---- two direct sliced stores (no concatenate temp): rows [0:M)=next_memory, [M:2M)=hx ----
    # Note (v5e): last dim is only 4 lanes wide -> masked stores; acceptable at this size.
    out_ref[:, :M, :] = next_memory
    out_ref[:, M:, :] = hx


# ---------------- host-side parameter packing into a single slab ----------------
def _pack_params(p):
    """Pack the 21 small parameters into one (SLAB_ROWS, D) f32 slab. Folds the attention
    scale into wq/bq and the input/forget gate bias scalars into the split RepeatLinear
    bias, so no scalar and no lane-offset slice ever reaches the kernel."""
    half = NUM_GATES // 2
    scale = 1.0 / math.sqrt(KEY_SIZE)
    b_gll_pad = jnp.pad(p["b_gll"], ((0, 0), (0, MEM_SIZE - 1)))       # (G, 1) -> (G, D)
    rows = [
        p["w_in"],                                                     # R_W_IN
        p["wq"] * scale,                                               # R_WQ
        p["wk"], p["wv"], p["w_mlp"],                                  # R_WK, R_WV, R_WMLP
        p["w_rl"][:, :half], p["w_rl"][:, half:],                      # R_WRL_I, R_WRL_F
        p["w_gll"],                                                    # R_WGLL
        b_gll_pad,                                                     # R_BGLL
        p["bq"] * scale, p["bk"], p["bv"], p["b_mlp"],                 # R_BQ..R_BMLP
        p["ln1_g"], p["ln1_b"], p["ln2_g"], p["ln2_b"],                # R_LN1G..R_LN2B
        p["b_in"], p["w_rep"],                                         # R_BIN, R_WREP
        p["b_rl"][:, :half] + p["ib"][0, 0],                           # R_BRLI
        p["b_rl"][:, half:] + p["fb"][0, 0],                           # R_BRLF
    ]
    slab = jnp.concatenate(rows, axis=0)
    return jnp.pad(slab, ((0, SLAB_ROWS - slab.shape[0]), (0, 0)))


@jax.jit
def relational_memory_forward(ipts, memory, params):
    """Returns (logits, memory_out=None, next_memory, hx) like RelationalMemory.forward."""
    slab = _pack_params(params)
    vmem = pl.BlockSpec(memory_space=pltpu.MemorySpace.VMEM)
    fused = pl.pallas_call(
        rmc_kernel,
        out_shape=jax.ShapeDtypeStruct((BATCH, 2 * MEM_SLOTS, MEM_SIZE), jnp.float32),
        in_specs=[vmem, vmem, vmem],
        out_specs=vmem,
        # Grid-less on purpose: at BATCH=2 the kernel is latency-bound; a batch grid
        # (or CORE_PARALLEL on v7x) only pays off once per-core compute exceeds the
        # duplicated DMA/prologue overhead (batch in the dozens).
    )(ipts, memory, slab)
    next_memory = fused[:, :MEM_SLOTS]
    hx = fused[:, MEM_SLOTS:]
    logits = next_memory.reshape(next_memory.shape[0], -1)
    memory_out = None
    return logits, memory_out, next_memory, hx


# ---------------- pure-JAX reference (same math, unpacked params) ----------------
def _ref_single(x, memory, p):
    inputs = x @ p["w_in"] + p["b_in"][0]

    def mha(q_src, kv_src):
        q = q_src @ p["wq"] + p["bq"][0]
        k = kv_src @ p["wk"] + p["bk"][0]
        v = kv_src @ p["wv"] + p["bv"][0]
        outs = []
        for h in range(N_HEADS):
            qh = q[:, h * KEY_SIZE:(h + 1) * KEY_SIZE]
            kh = k[:, h * KEY_SIZE:(h + 1) * KEY_SIZE]
            vh = v[:, h * VALUE_SIZE:(h + 1) * VALUE_SIZE]
            att = jax.nn.softmax((qh @ kh.T) / math.sqrt(KEY_SIZE), axis=-1)
            outs.append(att @ vh)
        return outs[0] if N_HEADS == 1 else jnp.concatenate(outs, -1)

    def ln(v, g, b):
        mu = v.mean(-1, keepdims=True)
        var = ((v - mu) ** 2).mean(-1, keepdims=True)
        return (v - mu) / jnp.sqrt(var + LN_EPS) * g[0] + b[0]

    new_mem = memory
    for _ in range(NUM_BLOCKS):
        new_mem = ln(new_mem + mha(new_mem, inputs), p["ln1_g"], p["ln1_b"])
        mlp = new_mem
        for _l in range(NUM_MLP):
            mlp = jnp.maximum(mlp @ p["w_mlp"] + p["b_mlp"][0], 0.0)
        new_mem = ln(new_mem + mlp, p["ln2_g"], p["ln2_b"])

    mem_tanh = jnp.tanh(memory)
    rx = jnp.maximum(p["w_rep"][0] * inputs, 0.0).mean(0, keepdims=True)
    gate_inputs = rx @ p["w_rl"] + p["b_rl"][0]
    gate_memory = (mem_tanh * p["w_gll"]).sum(-1, keepdims=True) + p["b_gll"]
    gates = gate_memory + gate_inputs
    half = NUM_GATES // 2
    ig = jax.nn.sigmoid(gates[:, :half] + p["ib"][0, 0])
    fg = jax.nn.sigmoid(gates[:, half:] + p["fb"][0, 0])
    next_memory = ig * jnp.tanh(new_mem) + fg * memory
    hx = mha(inputs, next_memory)
    return next_memory, hx


# ---------------- parameter init (deterministic, mirrors __init__ shapes) ----------------
def init_params(key):
    keys = jax.random.split(key, 16)

    def uni(k, shape, fan_in):
        a = 1.0 / math.sqrt(max(fan_in, 1))
        return jax.random.uniform(k, shape, jnp.float32, -a, a)

    p = {}
    p["w_in"]  = uni(keys[0], (INPUT_SIZE, MEM_SIZE), INPUT_SIZE)
    p["b_in"]  = uni(keys[1], (1, MEM_SIZE), INPUT_SIZE)
    p["wq"]    = uni(keys[2], (MEM_SIZE, N_HEADS * KEY_SIZE), MEM_SIZE)
    p["bq"]    = uni(keys[3], (1, N_HEADS * KEY_SIZE), MEM_SIZE)
    p["wk"]    = uni(keys[4], (MEM_SIZE, N_HEADS * KEY_SIZE), MEM_SIZE)
    p["bk"]    = uni(keys[5], (1, N_HEADS * KEY_SIZE), MEM_SIZE)
    p["wv"]    = uni(keys[6], (MEM_SIZE, N_HEADS * VALUE_SIZE), MEM_SIZE)
    p["bv"]    = uni(keys[7], (1, N_HEADS * VALUE_SIZE), MEM_SIZE)
    p["w_mlp"] = uni(keys[8], (MEM_SIZE, MEM_SIZE), MEM_SIZE)   # tied across the 2 MLP layers
    p["b_mlp"] = uni(keys[9], (1, MEM_SIZE), MEM_SIZE)
    p["ln1_g"] = jnp.ones((1, MEM_SIZE), jnp.float32)
    p["ln1_b"] = jnp.zeros((1, MEM_SIZE), jnp.float32)
    p["ln2_g"] = jnp.ones((1, MEM_SIZE), jnp.float32)
    p["ln2_b"] = jnp.zeros((1, MEM_SIZE), jnp.float32)
    p["w_rep"] = jax.random.normal(keys[10], (1, MEM_SIZE), jnp.float32)      # RepeatLinear.w
    p["w_rl"]  = uni(keys[11], (MEM_SIZE, NUM_GATES), MEM_SIZE)               # RepeatLinear.linear
    p["b_rl"]  = uni(keys[12], (1, NUM_GATES), MEM_SIZE)
    # GroupLinearLayer(in_dim=mem_size, out_dim=num_blocks=1, num_blocks=num_gates):
    # weight (num_gates, mem_size, 1) stored squeezed as (num_gates, mem_size); bias (num_gates, 1)
    p["w_gll"] = uni(keys[13], (NUM_GATES, MEM_SIZE), 1)
    p["b_gll"] = uni(keys[14], (NUM_GATES, 1), 1)
    p["ib"]    = jnp.zeros((1, 1), jnp.float32)     # input_bias  = 0.0
    p["fb"]    = jnp.ones((1, 1), jnp.float32)      # forget_bias = 1.0
    return p


# ---------------- main ----------------
if __name__ == "__main__":
    key = jax.random.PRNGKey(0)
    k_in, k_par = jax.random.split(key)

    params = init_params(k_par)

    ipts = jax.random.normal(k_in, (BATCH, SEQ, INPUT_SIZE), jnp.float32)
    # initial_state: stacked eye(mem_slots), truncated to mem_size columns
    eye = jnp.eye(MEM_SLOTS, dtype=jnp.float32)[:, :MEM_SIZE]
    memory0 = jnp.broadcast_to(eye, (BATCH, MEM_SLOTS, MEM_SIZE))

    logits, memory_out, next_memory, hx = relational_memory_forward(ipts, memory0, params)
    jax.block_until_ready((logits, next_memory, hx))

    # correctness check against a pure-JAX reference (unpacked / unfolded params)
    ref_mem, ref_hx = jax.vmap(functools.partial(_ref_single, p=params))(ipts, memory0)
    ref_logits = ref_mem.reshape(BATCH, -1)
    ok = (np.allclose(np.asarray(next_memory), np.asarray(ref_mem), rtol=2e-3, atol=2e-3)
          and np.allclose(np.asarray(hx), np.asarray(ref_hx), rtol=2e-3, atol=2e-3)
          and np.allclose(np.asarray(logits), np.asarray(ref_logits), rtol=2e-3, atol=2e-3))
    if not ok:
        raise SystemExit("mismatch between Pallas kernel and JAX reference")

    print("KERNEL_OK")
</pallas_src>

<mosaic_0001>
module attributes {stable_mosaic.version = 11 : i64} {
  func.func @rmc_kernel(%arg0: memref<2x8x16xf32, #tpu.memory_space<vmem>>, %arg1: memref<2x8x4xf32, #tpu.memory_space<vmem>>, %arg2: memref<72x4xf32, #tpu.memory_space<vmem>>, %arg3: memref<2x16x4xf32, #tpu.memory_space<vmem>>) attributes {dimension_semantics = [], scalar_prefetch = 0 : i64, scratch_operands = 0 : i64, tpu.core_type = #tpu.core_type<tc>} {
    %c0 = arith.constant 0 : index
    %c0_0 = arith.constant 0 : index
    %c0_1 = arith.constant 0 : index
    %0 = vector.load %arg0[%c0, %c0_0, %c0_1] : memref<2x8x16xf32, #tpu.memory_space<vmem>>, vector<2x8x16xf32>
    %c0_2 = arith.constant 0 : index
    %c0_3 = arith.constant 0 : index
    %c0_4 = arith.constant 0 : index
    %1 = vector.load %arg1[%c0_2, %c0_3, %c0_4] : memref<2x8x4xf32, #tpu.memory_space<vmem>>, vector<2x8x4xf32>
    %c0_5 = arith.constant 0 : index
    %c0_6 = arith.constant 0 : index
    %2 = vector.load %arg2[%c0_5, %c0_6] : memref<72x4xf32, #tpu.memory_space<vmem>>, vector<16x4xf32>
    %c16 = arith.constant 16 : index
    %c0_7 = arith.constant 0 : index
    %3 = vector.load %arg2[%c16, %c0_7] : memref<72x4xf32, #tpu.memory_space<vmem>>, vector<4x4xf32>
    %c20 = arith.constant 20 : index
    %c0_8 = arith.constant 0 : index
    %4 = vector.load %arg2[%c20, %c0_8] : memref<72x4xf32, #tpu.memory_space<vmem>>, vector<4x4xf32>
    %c24 = arith.constant 24 : index
    %c0_9 = arith.constant 0 : index
    %5 = vector.load %arg2[%c24, %c0_9] : memref<72x4xf32, #tpu.memory_space<vmem>>, vector<4x4xf32>
    %c28 = arith.constant 28 : index
    %c0_10 = arith.constant 0 : index
    %6 = vector.load %arg2[%c28, %c0_10] : memref<72x4xf32, #tpu.memory_space<vmem>>, vector<4x4xf32>
    %c32 = arith.constant 32 : index
    %c0_11 = arith.constant 0 : index
    %7 = vector.load %arg2[%c32, %c0_11] : memref<72x4xf32, #tpu.memory_space<vmem>>, vector<4x4xf32>
    %c36 = arith.constant 36 : index
    %c0_12 = arith.constant 0 : index
    %8 = vector.load %arg2[%c36, %c0_12] : memref<72x4xf32, #tpu.memory_space<vmem>>, vector<4x4xf32>
    %c40 = arith.constant 40 : index
    %c0_13 = arith.constant 0 : index
    %9 = vector.load %arg2[%c40, %c0_13] : memref<72x4xf32, #tpu.memory_space<vmem>>, vector<8x4xf32>
    %c48 = arith.constant 48 : index
    %c0_14 = arith.constant 0 : index
    %10 = vector.load %arg2[%c48, %c0_14] : memref<72x4xf32, #tpu.memory_space<vmem>>, vector<8x1xf32>
    %c56 = arith.constant 56 : index
    %c0_15 = arith.constant 0 : index
    %11 = vector.load %arg2[%c56, %c0_15] : memref<72x4xf32, #tpu.memory_space<vmem>>, vector<1x4xf32>
    %c57 = arith.constant 57 : index
    %c0_16 = arith.constant 0 : index
    %12 = vector.load %arg2[%c57, %c0_16] : memref<72x4xf32, #tpu.memory_space<vmem>>, vector<1x4xf32>
    %c58 = arith.constant 58 : index
    %c0_17 = arith.constant 0 : index
    %13 = vector.load %arg2[%c58, %c0_17] : memref<72x4xf32, #tpu.memory_space<vmem>>, vector<1x4xf32>
    %c59 = arith.constant 59 : index
    %c0_18 = arith.constant 0 : index
    %14 = vector.load %arg2[%c59, %c0_18] : memref<72x4xf32, #tpu.memory_space<vmem>>, vector<1x4xf32>
    %c60 = arith.constant 60 : index
    %c0_19 = arith.constant 0 : index
    %15 = vector.load %arg2[%c60, %c0_19] : memref<72x4xf32, #tpu.memory_space<vmem>>, vector<1x4xf32>
    %c61 = arith.constant 61 : index
    %c0_20 = arith.constant 0 : index
    %16 = vector.load %arg2[%c61, %c0_20] : memref<72x4xf32, #tpu.memory_space<vmem>>, vector<1x4xf32>
    %c62 = arith.constant 62 : index
    %c0_21 = arith.constant 0 : index
    %17 = vector.load %arg2[%c62, %c0_21] : memref<72x4xf32, #tpu.memory_space<vmem>>, vector<1x4xf32>
    %c63 = arith.constant 63 : index
    %c0_22 = arith.constant 0 : index
    %18 = vector.load %arg2[%c63, %c0_22] : memref<72x4xf32, #tpu.memory_space<vmem>>, vector<1x4xf32>
    %c64 = arith.constant 64 : index
    %c0_23 = arith.constant 0 : index
    %19 = vector.load %arg2[%c64, %c0_23] : memref<72x4xf32, #tpu.memory_space<vmem>>, vector<1x4xf32>
    %c65 = arith.constant 65 : index
    %c0_24 = arith.constant 0 : index
    %20 = vector.load %arg2[%c65, %c0_24] : memref<72x4xf32, #tpu.memory_space<vmem>>, vector<1x4xf32>
    %c66 = arith.constant 66 : index
    %c0_25 = arith.constant 0 : index
    %21 = vector.load %arg2[%c66, %c0_25] : memref<72x4xf32, #tpu.memory_space<vmem>>, vector<1x4xf32>
    %c67 = arith.constant 67 : index
    %c0_26 = arith.constant 0 : index
    %22 = vector.load %arg2[%c67, %c0_26] : memref<72x4xf32, #tpu.memory_space<vmem>>, vector<1x4xf32>
    %23 = vector.shape_cast %11 : vector<1x4xf32> to vector<1x1x4xf32>
    %24 = vector.shape_cast %23 : vector<1x1x4xf32> to vector<1x1x4xf32>
    %25 = vector.broadcast %24 : vector<1x1x4xf32> to vector<2x8x4xf32>
    %26 = vector.shape_cast %12 : vector<1x4xf32> to vector<1x1x4xf32>
    %27 = vector.shape_cast %26 : vector<1x1x4xf32> to vector<1x1x4xf32>
    %28 = vector.broadcast %27 : vector<1x1x4xf32> to vector<2x8x4xf32>
    %29 = vector.shape_cast %13 : vector<1x4xf32> to vector<1x1x4xf32>
    %30 = vector.shape_cast %29 : vector<1x1x4xf32> to vector<1x1x4xf32>
    %31 = vector.broadcast %30 : vector<1x1x4xf32> to vector<2x8x4xf32>
    %32 = vector.shape_cast %14 : vector<1x4xf32> to vector<1x1x4xf32>
    %33 = vector.shape_cast %32 : vector<1x1x4xf32> to vector<1x1x4xf32>
    %34 = vector.broadcast %33 : vector<1x1x4xf32> to vector<2x8x4xf32>
    %35 = vector.shape_cast %0 : vector<2x8x16xf32> to vector<16x16xf32>
    %cst = arith.constant dense<0.000000e+00> : vector<16x4xf32>
    %36 = tpu.matmul %35, %2, %cst {dimension_numbers = #tpu.dot_dimension_numbers<[1], [0], [0], [1], [0, 0, 1, 1], [], []>} : vector<16x16xf32>, vector<16x4xf32>, vector<16x4xf32> -> vector<16x4xf32>
    %37 = vector.broadcast %19 : vector<1x4xf32> to vector<16x4xf32>
    %38 = arith.addf %36, %37 : vector<16x4xf32>
    %39 = vector.shape_cast %38 : vector<16x4xf32> to vector<2x8x4xf32>
    %40 = vector.extract_strided_slice %39 {offsets = [0, 0, 0], sizes = [2, 8, 1], strides = [1, 1, 1]} : vector<2x8x4xf32> to vector<2x8x1xf32>
    %41 = vector.extract_strided_slice %3 {offsets = [0, 0], sizes = [1, 4], strides = [1, 1]} : vector<4x4xf32> to vector<1x4xf32>
    %42 = vector.shape_cast %41 : vector<1x4xf32> to vector<1x1x4xf32>
    %43 = vector.broadcast %40 : vector<2x8x1xf32> to vector<2x8x4xf32>
    %44 = vector.broadcast %42 : vector<1x1x4xf32> to vector<2x8x4xf32>
    %45 = arith.mulf %43, %44 : vector<2x8x4xf32>
    %46 = arith.addf %25, %45 : vector<2x8x4xf32>
    %47 = vector.extract_strided_slice %39 {offsets = [0, 0, 1], sizes = [2, 8, 1], strides = [1, 1, 1]} : vector<2x8x4xf32> to vector<2x8x1xf32>
    %48 = vector.extract_strided_slice %3 {offsets = [1, 0], sizes = [1, 4], strides = [1, 1]} : vector<4x4xf32> to vector<1x4xf32>
    %49 = vector.shape_cast %48 : vector<1x4xf32> to vector<1x1x4xf32>
    %50 = vector.broadcast %47 : vector<2x8x1xf32> to vector<2x8x4xf32>
    %51 = vector.broadcast %49 : vector<1x1x4xf32> to vector<2x8x4xf32>
    %52 = arith.mulf %50, %51 : vector<2x8x4xf32>
    %53 = arith.addf %46, %52 : vector<2x8x4xf32>
    %54 = vector.extract_strided_slice %39 {offsets = [0, 0, 2], sizes = [2, 8, 1], strides = [1, 1, 1]} : vector<2x8x4xf32> to vector<2x8x1xf32>
    %55 = vector.extract_strided_slice %3 {offsets = [2, 0], sizes = [1, 4], strides = [1, 1]} : vector<4x4xf32> to vector<1x4xf32>
    %56 = vector.shape_cast %55 : vector<1x4xf32> to vector<1x1x4xf32>
    %57 = vector.broadcast %54 : vector<2x8x1xf32> to vector<2x8x4xf32>
    %58 = vector.broadcast %56 : vector<1x1x4xf32> to vector<2x8x4xf32>
    %59 = arith.mulf %57, %58 : vector<2x8x4xf32>
    %60 = arith.addf %53, %59 : vector<2x8x4xf32>
    %61 = vector.extract_strided_slice %39 {offsets = [0, 0, 3], sizes = [2, 8, 1], strides = [1, 1, 1]} : vector<2x8x4xf32> to vector<2x8x1xf32>
    %62 = vector.extract_strided_slice %3 {offsets = [3, 0], sizes = [1, 4], strides = [1, 1]} : vector<4x4xf32> to vector<1x4xf32>
    %63 = vector.shape_cast %62 : vector<1x4xf32> to vector<1x1x4xf32>
    %64 = vector.broadcast %61 : vector<2x8x1xf32> to vector<2x8x4xf32>
    %65 = vector.broadcast %63 : vector<1x1x4xf32> to vector<2x8x4xf32>
    %66 = arith.mulf %64, %65 : vector<2x8x4xf32>
    %67 = arith.addf %60, %66 : vector<2x8x4xf32>
    %68 = vector.extract_strided_slice %39 {offsets = [0, 0, 0], sizes = [2, 8, 1], strides = [1, 1, 1]} : vector<2x8x4xf32> to vector<2x8x1xf32>
    %69 = vector.extract_strided_slice %4 {offsets = [0, 0], sizes = [1, 4], strides = [1, 1]} : vector<4x4xf32> to vector<1x4xf32>
    %70 = vector.shape_cast %69 : vector<1x4xf32> to vector<1x1x4xf32>
    %71 = vector.broadcast %68 : vector<2x8x1xf32> to vector<2x8x4xf32>
    %72 = vector.broadcast %70 : vector<1x1x4xf32> to vector<2x8x4xf32>
    %73 = arith.mulf %71, %72 : vector<2x8x4xf32>
    %74 = arith.addf %28, %73 : vector<2x8x4xf32>
    %75 = vector.extract_strided_slice %39 {offsets = [0, 0, 1], sizes = [2, 8, 1], strides = [1, 1, 1]} : vector<2x8x4xf32> to vector<2x8x1xf32>
    %76 = vector.extract_strided_slice %4 {offsets = [1, 0], sizes = [1, 4], strides = [1, 1]} : vector<4x4xf32> to vector<1x4xf32>
    %77 = vector.shape_cast %76 : vector<1x4xf32> to vector<1x1x4xf32>
    %78 = vector.broadcast %75 : vector<2x8x1xf32> to vector<2x8x4xf32>
    %79 = vector.broadcast %77 : vector<1x1x4xf32> to vector<2x8x4xf32>
    %80 = arith.mulf %78, %79 : vector<2x8x4xf32>
    %81 = arith.addf %74, %80 : vector<2x8x4xf32>
    %82 = vector.extract_strided_slice %39 {offsets = [0, 0, 2], sizes = [2, 8, 1], strides = [1, 1, 1]} : vector<2x8x4xf32> to vector<2x8x1xf32>
    %83 = vector.extract_strided_slice %4 {offsets = [2, 0], sizes = [1, 4], strides = [1, 1]} : vector<4x4xf32> to vector<1x4xf32>
    %84 = vector.shape_cast %83 : vector<1x4xf32> to vector<1x1x4xf32>
    %85 = vector.broadcast %82 : vector<2x8x1xf32> to vector<2x8x4xf32>
    %86 = vector.broadcast %84 : vector<1x1x4xf32> to vector<2x8x4xf32>
    %87 = arith.mulf %85, %86 : vector<2x8x4xf32>
    %88 = arith.addf %81, %87 : vector<2x8x4xf32>
    %89 = vector.extract_strided_slice %39 {offsets = [0, 0, 3], sizes = [2, 8, 1], strides = [1, 1, 1]} : vector<2x8x4xf32> to vector<2x8x1xf32>
    %90 = vector.extract_strided_slice %4 {offsets = [3, 0], sizes = [1, 4], strides = [1, 1]} : vector<4x4xf32> to vector<1x4xf32>
    %91 = vector.shape_cast %90 : vector<1x4xf32> to vector<1x1x4xf32>
    %92 = vector.broadcast %89 : vector<2x8x1xf32> to vector<2x8x4xf32>
    %93 = vector.broadcast %91 : vector<1x1x4xf32> to vector<2x8x4xf32>
    %94 = arith.mulf %92, %93 : vector<2x8x4xf32>
    %95 = arith.addf %88, %94 : vector<2x8x4xf32>
    %96 = vector.extract_strided_slice %39 {offsets = [0, 0, 0], sizes = [2, 8, 1], strides = [1, 1, 1]} : vector<2x8x4xf32> to vector<2x8x1xf32>
    %97 = vector.extract_strided_slice %5 {offsets = [0, 0], sizes = [1, 4], strides = [1, 1]} : vector<4x4xf32> to vector<1x4xf32>
    %98 = vector.shape_cast %97 : vector<1x4xf32> to vector<1x1x4xf32>
    %99 = vector.broadcast %96 : vector<2x8x1xf32> to vector<2x8x4xf32>
    %100 = vector.broadcast %98 : vector<1x1x4xf32> to vector<2x8x4xf32>
    %101 = arith.mulf %99, %100 : vector<2x8x4xf32>
    %102 = arith.addf %31, %101 : vector<2x8x4xf32>
    %103 = vector.extract_strided_slice %39 {offsets = [0, 0, 1], sizes = [2, 8, 1], strides = [1, 1, 1]} : vector<2x8x4xf32> to vector<2x8x1xf32>
    %104 = vector.extract_strided_slice %5 {offsets = [1, 0], sizes = [1, 4], strides = [1, 1]} : vector<4x4xf32> to vector<1x4xf32>
    %105 = vector.shape_cast %104 : vector<1x4xf32> to vector<1x1x4xf32>
    %106 = vector.broadcast %103 : vector<2x8x1xf32> to vector<2x8x4xf32>
    %107 = vector.broadcast %105 : vector<1x1x4xf32> to vector<2x8x4xf32>
    %108 = arith.mulf %106, %107 : vector<2x8x4xf32>
    %109 = arith.addf %102, %108 : vector<2x8x4xf32>
    %110 = vector.extract_strided_slice %39 {offsets = [0, 0, 2], sizes = [2, 8, 1], strides = [1, 1, 1]} : vector<2x8x4xf32> to vector<2x8x1xf32>
    %111 = vector.extract_strided_slice %5 {offsets = [2, 0], sizes = [1, 4], strides = [1, 1]} : vector<4x4xf32> to vector<1x4xf32>
    %112 = vector.shape_cast %111 : vector<1x4xf32> to vector<1x1x4xf32>
    %113 = vector.broadcast %110 : vector<2x8x1xf32> to vector<2x8x4xf32>
    %114 = vector.broadcast %112 : vector<1x1x4xf32> to vector<2x8x4xf32>
    %115 = arith.mulf %113, %114 : vector<2x8x4xf32>
    %116 = arith.addf %109, %115 : vector<2x8x4xf32>
    %117 = vector.extract_strided_slice %39 {offsets = [0, 0, 3], sizes = [2, 8, 1], strides = [1, 1, 1]} : vector<2x8x4xf32> to vector<2x8x1xf32>
    %118 = vector.extract_strided_slice %5 {offsets = [3, 0], sizes = [1, 4], strides = [1, 1]} : vector<4x4xf32> to vector<1x4xf32>
    %119 = vector.shape_cast %118 : vector<1x4xf32> to vector<1x1x4xf32>
    %120 = vector.broadcast %117 : vector<2x8x1xf32> to vector<2x8x4xf32>
    %121 = vector.broadcast %119 : vector<1x1x4xf32> to vector<2x8x4xf32>
    %122 = arith.mulf %120, %121 : vector<2x8x4xf32>
    %123 = arith.addf %116, %122 : vector<2x8x4xf32>
    %124 = vector.extract_strided_slice %1 {offsets = [0, 0, 0], sizes = [2, 8, 1], strides = [1, 1, 1]} : vector<2x8x4xf32> to vector<2x8x1xf32>
    %125 = vector.extract_strided_slice %3 {offsets = [0, 0], sizes = [1, 4], strides = [1, 1]} : vector<4x4xf32> to vector<1x4xf32>
    %126 = vector.shape_cast %125 : vector<1x4xf32> to vector<1x1x4xf32>
    %127 = vector.broadcast %124 : vector<2x8x1xf32> to vector<2x8x4xf32>
    %128 = vector.broadcast %126 : vector<1x1x4xf32> to vector<2x8x4xf32>
    %129 = arith.mulf %127, %128 : vector<2x8x4xf32>
    %130 = arith.addf %25, %129 : vector<2x8x4xf32>
    %131 = vector.extract_strided_slice %1 {offsets = [0, 0, 1], sizes = [2, 8, 1], strides = [1, 1, 1]} : vector<2x8x4xf32> to vector<2x8x1xf32>
    %132 = vector.extract_strided_slice %3 {offsets = [1, 0], sizes = [1, 4], strides = [1, 1]} : vector<4x4xf32> to vector<1x4xf32>
    %133 = vector.shape_cast %132 : vector<1x4xf32> to vector<1x1x4xf32>
    %134 = vector.broadcast %131 : vector<2x8x1xf32> to vector<2x8x4xf32>
    %135 = vector.broadcast %133 : vector<1x1x4xf32> to vector<2x8x4xf32>
    %136 = arith.mulf %134, %135 : vector<2x8x4xf32>
    %137 = arith.addf %130, %136 : vector<2x8x4xf32>
    %138 = vector.extract_strided_slice %1 {offsets = [0, 0, 2], sizes = [2, 8, 1], strides = [1, 1, 1]} : vector<2x8x4xf32> to vector<2x8x1xf32>
    %139 = vector.extract_strided_slice %3 {offsets = [2, 0], sizes = [1, 4], strides = [1, 1]} : vector<4x4xf32> to vector<1x4xf32>
    %140 = vector.shape_cast %139 : vector<1x4xf32> to vector<1x1x4xf32>
    %141 = vector.broadcast %138 : vector<2x8x1xf32> to vector<2x8x4xf32>
    %142 = vector.broadcast %140 : vector<1x1x4xf32> to vector<2x8x4xf32>
    %143 = arith.mulf %141, %142 : vector<2x8x4xf32>
    %144 = arith.addf %137, %143 : vector<2x8x4xf32>
    %145 = vector.extract_strided_slice %1 {offsets = [0, 0, 3], sizes = [2, 8, 1], strides = [1, 1, 1]} : vector<2x8x4xf32> to vector<2x8x1xf32>
    %146 = vector.extract_strided_slice %3 {offsets = [3, 0], sizes = [1, 4], strides = [1, 1]} : vector<4x4xf32> to vector<1x4xf32>
    %147 = vector.shape_cast %146 : vector<1x4xf32> to vector<1x1x4xf32>
    %148 = vector.broadcast %145 : vector<2x8x1xf32> to vector<2x8x4xf32>
    %149 = vector.broadcast %147 : vector<1x1x4xf32> to vector<2x8x4xf32>
    %150 = arith.mulf %148, %149 : vector<2x8x4xf32>
    %151 = arith.addf %144, %150 : vector<2x8x4xf32>
    %152 = vector.shape_cast %151 : vector<2x8x4xf32> to vector<2x8x1x4xf32>
    %153 = vector.shape_cast %95 : vector<2x8x4xf32> to vector<2x1x8x4xf32>
    %154 = vector.broadcast %152 : vector<2x8x1x4xf32> to vector<2x8x8x4xf32>
    %155 = vector.broadcast %153 : vector<2x1x8x4xf32> to vector<2x8x8x4xf32>
    %156 = arith.mulf %154, %155 : vector<2x8x8x4xf32>
    %cst_27 = arith.constant dense<0.000000e+00> : vector<2x8x8xf32>
    %157 = vector.multi_reduction <add>, %156, %cst_27 [3] : vector<2x8x8x4xf32> to vector<2x8x8xf32>
    %cst_28 = arith.constant dense<0xFF800000> : vector<2x8xf32>
    %158 = vector.multi_reduction <maximumf>, %157, %cst_28 [2] : vector<2x8x8xf32> to vector<2x8xf32>
    %159 = vector.shape_cast %158 : vector<2x8xf32> to vector<2x8x1xf32>
    %160 = vector.broadcast %159 : vector<2x8x1xf32> to vector<2x8x8xf32>
    %161 = arith.subf %157, %160 : vector<2x8x8xf32>
    %162 = math.exp %161 : vector<2x8x8xf32>
    %cst_29 = arith.constant dense<0.000000e+00> : vector<2x8xf32>
    %163 = vector.multi_reduction <add>, %162, %cst_29 [2] : vector<2x8x8xf32> to vector<2x8xf32>
    %164 = vector.shape_cast %163 : vector<2x8xf32> to vector<2x8x1xf32>
    %165 = tpu.reciprocal %164 {approx = true} : vector<2x8x1xf32> -> vector<2x8x1xf32>
    %166 = vector.broadcast %165 : vector<2x8x1xf32> to vector<2x8x8xf32>
    %167 = arith.mulf %162, %166 : vector<2x8x8xf32>
    %168 = vector.extract_strided_slice %167 {offsets = [0, 0, 0], sizes = [2, 8, 1], strides = [1, 1, 1]} : vector<2x8x8xf32> to vector<2x8x1xf32>
    %169 = vector.extract_strided_slice %123 {offsets = [0, 0, 0], sizes = [2, 1, 4], strides = [1, 1, 1]} : vector<2x8x4xf32> to vector<2x1x4xf32>
    %170 = vector.broadcast %168 : vector<2x8x1xf32> to vector<2x8x4xf32>
    %171 = vector.broadcast %169 : vector<2x1x4xf32> to vector<2x8x4xf32>
    %172 = arith.mulf %170, %171 : vector<2x8x4xf32>
    %173 = vector.extract_strided_slice %167 {offsets = [0, 0, 1], sizes = [2, 8, 1], strides = [1, 1, 1]} : vector<2x8x8xf32> to vector<2x8x1xf32>
    %174 = vector.extract_strided_slice %123 {offsets = [0, 1, 0], sizes = [2, 1, 4], strides = [1, 1, 1]} : vector<2x8x4xf32> to vector<2x1x4xf32>
    %175 = vector.broadcast %173 : vector<2x8x1xf32> to vector<2x8x4xf32>
    %176 = vector.broadcast %174 : vector<2x1x4xf32> to vector<2x8x4xf32>
    %177 = arith.mulf %175, %176 : vector<2x8x4xf32>
    %178 = arith.addf %172, %177 : vector<2x8x4xf32>
    %179 = vector.extract_strided_slice %167 {offsets = [0, 0, 2], sizes = [2, 8, 1], strides = [1, 1, 1]} : vector<2x8x8xf32> to vector<2x8x1xf32>
    %180 = vector.extract_strided_slice %123 {offsets = [0, 2, 0], sizes = [2, 1, 4], strides = [1, 1, 1]} : vector<2x8x4xf32> to vector<2x1x4xf32>
    %181 = vector.broadcast %179 : vector<2x8x1xf32> to vector<2x8x4xf32>
    %182 = vector.broadcast %180 : vector<2x1x4xf32> to vector<2x8x4xf32>
    %183 = arith.mulf %181, %182 : vector<2x8x4xf32>
    %184 = arith.addf %178, %183 : vector<2x8x4xf32>
    %185 = vector.extract_strided_slice %167 {offsets = [0, 0, 3], sizes = [2, 8, 1], strides = [1, 1, 1]} : vector<2x8x8xf32> to vector<2x8x1xf32>
    %186 = vector.extract_strided_slice %123 {offsets = [0, 3, 0], sizes = [2, 1, 4], strides = [1, 1, 1]} : vector<2x8x4xf32> to vector<2x1x4xf32>
    %187 = vector.broadcast %185 : vector<2x8x1xf32> to vector<2x8x4xf32>
    %188 = vector.broadcast %186 : vector<2x1x4xf32> to vector<2x8x4xf32>
    %189 = arith.mulf %187, %188 : vector<2x8x4xf32>
    %190 = arith.addf %184, %189 : vector<2x8x4xf32>
    %191 = vector.extract_strided_slice %167 {offsets = [0, 0, 4], sizes = [2, 8, 1], strides = [1, 1, 1]} : vector<2x8x8xf32> to vector<2x8x1xf32>
    %192 = vector.extract_strided_slice %123 {offsets = [0, 4, 0], sizes = [2, 1, 4], strides = [1, 1, 1]} : vector<2x8x4xf32> to vector<2x1x4xf32>
    %193 = vector.broadcast %191 : vector<2x8x1xf32> to vector<2x8x4xf32>
    %194 = vector.broadcast %192 : vector<2x1x4xf32> to vector<2x8x4xf32>
    %195 = arith.mulf %193, %194 : vector<2x8x4xf32>
    %196 = arith.addf %190, %195 : vector<2x8x4xf32>
    %197 = vector.extract_strided_slice %167 {offsets = [0, 0, 5], sizes = [2, 8, 1], strides = [1, 1, 1]} : vector<2x8x8xf32> to vector<2x8x1xf32>
    %198 = vector.extract_strided_slice %123 {offsets = [0, 5, 0], sizes = [2, 1, 4], strides = [1, 1, 1]} : vector<2x8x4xf32> to vector<2x1x4xf32>
    %199 = vector.broadcast %197 : vector<2x8x1xf32> to vector<2x8x4xf32>
    %200 = vector.broadcast %198 : vector<2x1x4xf32> to vector<2x8x4xf32>
    %201 = arith.mulf %199, %200 : vector<2x8x4xf32>
    %202 = arith.addf %196, %201 : vector<2x8x4xf32>
    %203 = vector.extract_strided_slice %167 {offsets = [0, 0, 6], sizes = [2, 8, 1], strides = [1, 1, 1]} : vector<2x8x8xf32> to vector<2x8x1xf32>
    %204 = vector.extract_strided_slice %123 {offsets = [0, 6, 0], sizes = [2, 1, 4], strides = [1, 1, 1]} : vector<2x8x4xf32> to vector<2x1x4xf32>
    %205 = vector.broadcast %203 : vector<2x8x1xf32> to vector<2x8x4xf32>
    %206 = vector.broadcast %204 : vector<2x1x4xf32> to vector<2x8x4xf32>
    %207 = arith.mulf %205, %206 : vector<2x8x4xf32>
    %208 = arith.addf %202, %207 : vector<2x8x4xf32>
    %209 = vector.extract_strided_slice %167 {offsets = [0, 0, 7], sizes = [2, 8, 1], strides = [1, 1, 1]} : vector<2x8x8xf32> to vector<2x8x1xf32>
    %210 = vector.extract_strided_slice %123 {offsets = [0, 7, 0], sizes = [2, 1, 4], strides = [1, 1, 1]} : vector<2x8x4xf32> to vector<2x1x4xf32>
    %211 = vector.broadcast %209 : vector<2x8x1xf32> to vector<2x8x4xf32>
    %212 = vector.broadcast %210 : vector<2x1x4xf32> to vector<2x8x4xf32>
    %213 = arith.mulf %211, %212 : vector<2x8x4xf32>
    %214 = arith.addf %208, %213 : vector<2x8x4xf32>
    %215 = arith.addf %1, %214 : vector<2x8x4xf32>
    %cst_30 = arith.constant dense<0.000000e+00> : vector<2x8xf32>
    %216 = vector.multi_reduction <add>, %215, %cst_30 [2] : vector<2x8x4xf32> to vector<2x8xf32>
    %217 = vector.shape_cast %216 : vector<2x8xf32> to vector<2x8x1xf32>
    %cst_31 = arith.constant 4.000000e+00 : f32
    %218 = vector.broadcast %cst_31 : f32 to vector<2x8x1xf32>
    %219 = arith.divf %217, %218 : vector<2x8x1xf32>
    %220 = vector.broadcast %219 : vector<2x8x1xf32> to vector<2x8x4xf32>
    %221 = arith.subf %215, %220 : vector<2x8x4xf32>
    %222 = arith.mulf %221, %221 : vector<2x8x4xf32>
    %cst_32 = arith.constant dense<0.000000e+00> : vector<2x8xf32>
    %223 = vector.multi_reduction <add>, %222, %cst_32 [2] : vector<2x8x4xf32> to vector<2x8xf32>
    %224 = vector.shape_cast %223 : vector<2x8xf32> to vector<2x8x1xf32>
    %cst_33 = arith.constant 4.000000e+00 : f32
    %225 = vector.broadcast %cst_33 : f32 to vector<2x8x1xf32>
    %226 = arith.divf %224, %225 : vector<2x8x1xf32>
    %227 = vector.broadcast %219 : vector<2x8x1xf32> to vector<2x8x4xf32>
    %228 = arith.subf %215, %227 : vector<2x8x4xf32>
    %cst_34 = arith.constant 9.99999974E-6 : f32
    %229 = vector.broadcast %cst_34 : f32 to vector<2x8x1xf32>
    %230 = arith.addf %226, %229 : vector<2x8x1xf32>
    %231 = math.rsqrt %230 : vector<2x8x1xf32>
    %232 = vector.broadcast %231 : vector<2x8x1xf32> to vector<2x8x4xf32>
    %233 = arith.mulf %228, %232 : vector<2x8x4xf32>
    %234 = vector.shape_cast %15 : vector<1x4xf32> to vector<1x1x4xf32>
    %235 = vector.broadcast %234 : vector<1x1x4xf32> to vector<2x8x4xf32>
    %236 = arith.mulf %233, %235 : vector<2x8x4xf32>
    %237 = vector.shape_cast %16 : vector<1x4xf32> to vector<1x1x4xf32>
    %238 = vector.broadcast %237 : vector<1x1x4xf32> to vector<2x8x4xf32>
    %239 = arith.addf %236, %238 : vector<2x8x4xf32>
    %240 = vector.extract_strided_slice %239 {offsets = [0, 0, 0], sizes = [2, 8, 1], strides = [1, 1, 1]} : vector<2x8x4xf32> to vector<2x8x1xf32>
    %241 = vector.extract_strided_slice %6 {offsets = [0, 0], sizes = [1, 4], strides = [1, 1]} : vector<4x4xf32> to vector<1x4xf32>
    %242 = vector.shape_cast %241 : vector<1x4xf32> to vector<1x1x4xf32>
    %243 = vector.broadcast %240 : vector<2x8x1xf32> to vector<2x8x4xf32>
    %244 = vector.broadcast %242 : vector<1x1x4xf32> to vector<2x8x4xf32>
    %245 = arith.mulf %243, %244 : vector<2x8x4xf32>
    %246 = arith.addf %34, %245 : vector<2x8x4xf32>
    %247 = vector.extract_strided_slice %239 {offsets = [0, 0, 1], sizes = [2, 8, 1], strides = [1, 1, 1]} : vector<2x8x4xf32> to vector<2x8x1xf32>
    %248 = vector.extract_strided_slice %6 {offsets = [1, 0], sizes = [1, 4], strides = [1, 1]} : vector<4x4xf32> to vector<1x4xf32>
    %249 = vector.shape_cast %248 : vector<1x4xf32> to vector<1x1x4xf32>
    %250 = vector.broadcast %247 : vector<2x8x1xf32> to vector<2x8x4xf32>
    %251 = vector.broadcast %249 : vector<1x1x4xf32> to vector<2x8x4xf32>
    %252 = arith.mulf %250, %251 : vector<2x8x4xf32>
    %253 = arith.addf %246, %252 : vector<2x8x4xf32>
    %254 = vector.extract_strided_slice %239 {offsets = [0, 0, 2], sizes = [2, 8, 1], strides = [1, 1, 1]} : vector<2x8x4xf32> to vector<2x8x1xf32>
    %255 = vector.extract_strided_slice %6 {offsets = [2, 0], sizes = [1, 4], strides = [1, 1]} : vector<4x4xf32> to vector<1x4xf32>
    %256 = vector.shape_cast %255 : vector<1x4xf32> to vector<1x1x4xf32>
    %257 = vector.broadcast %254 : vector<2x8x1xf32> to vector<2x8x4xf32>
    %258 = vector.broadcast %256 : vector<1x1x4xf32> to vector<2x8x4xf32>
    %259 = arith.mulf %257, %258 : vector<2x8x4xf32>
    %260 = arith.addf %253, %259 : vector<2x8x4xf32>
    %261 = vector.extract_strided_slice %239 {offsets = [0, 0, 3], sizes = [2, 8, 1], strides = [1, 1, 1]} : vector<2x8x4xf32> to vector<2x8x1xf32>
    %262 = vector.extract_strided_slice %6 {offsets = [3, 0], sizes = [1, 4], strides = [1, 1]} : vector<4x4xf32> to vector<1x4xf32>
    %263 = vector.shape_cast %262 : vector<1x4xf32> to vector<1x1x4xf32>
    %264 = vector.broadcast %261 : vector<2x8x1xf32> to vector<2x8x4xf32>
    %265 = vector.broadcast %263 : vector<1x1x4xf32> to vector<2x8x4xf32>
    %266 = arith.mulf %264, %265 : vector<2x8x4xf32>
    %267 = arith.addf %260, %266 : vector<2x8x4xf32>
    %cst_35 = arith.constant 0.000000e+00 : f32
    %268 = vector.broadcast %cst_35 : f32 to vector<2x8x4xf32>
    %269 = arith.maximumf %267, %268 : vector<2x8x4xf32>
    %270 = vector.extract_strided_slice %269 {offsets = [0, 0, 0], sizes = [2, 8, 1], strides = [1, 1, 1]} : vector<2x8x4xf32> to vector<2x8x1xf32>
    %271 = vector.extract_strided_slice %6 {offsets = [0, 0], sizes = [1, 4], strides = [1, 1]} : vector<4x4xf32> to vector<1x4xf32>
    %272 = vector.shape_cast %271 : vector<1x4xf32> to vector<1x1x4xf32>
    %273 = vector.broadcast %270 : vector<2x8x1xf32> to vector<2x8x4xf32>
    %274 = vector.broadcast %272 : vector<1x1x4xf32> to vector<2x8x4xf32>
    %275 = arith.mulf %273, %274 : vector<2x8x4xf32>
    %276 = arith.addf %34, %275 : vector<2x8x4xf32>
    %277 = vector.extract_strided_slice %269 {offsets = [0, 0, 1], sizes = [2, 8, 1], strides = [1, 1, 1]} : vector<2x8x4xf32> to vector<2x8x1xf32>
    %278 = vector.extract_strided_slice %6 {offsets = [1, 0], sizes = [1, 4], strides = [1, 1]} : vector<4x4xf32> to vector<1x4xf32>
    %279 = vector.shape_cast %278 : vector<1x4xf32> to vector<1x1x4xf32>
    %280 = vector.broadcast %277 : vector<2x8x1xf32> to vector<2x8x4xf32>
    %281 = vector.broadcast %279 : vector<1x1x4xf32> to vector<2x8x4xf32>
    %282 = arith.mulf %280, %281 : vector<2x8x4xf32>
    %283 = arith.addf %276, %282 : vector<2x8x4xf32>
    %284 = vector.extract_strided_slice %269 {offsets = [0, 0, 2], sizes = [2, 8, 1], strides = [1, 1, 1]} : vector<2x8x4xf32> to vector<2x8x1xf32>
    %285 = vector.extract_strided_slice %6 {offsets = [2, 0], sizes = [1, 4], strides = [1, 1]} : vector<4x4xf32> to vector<1x4xf32>
    %286 = vector.shape_cast %285 : vector<1x4xf32> to vector<1x1x4xf32>
    %287 = vector.broadcast %284 : vector<2x8x1xf32> to vector<2x8x4xf32>
    %288 = vector.broadcast %286 : vector<1x1x4xf32> to vector<2x8x4xf32>
    %289 = arith.mulf %287, %288 : vector<2x8x4xf32>
    %290 = arith.addf %283, %289 : vector<2x8x4xf32>
    %291 = vector.extract_strided_slice %269 {offsets = [0, 0, 3], sizes = [2, 8, 1], strides = [1, 1, 1]} : vector<2x8x4xf32> to vector<2x8x1xf32>
    %292 = vector.extract_strided_slice %6 {offsets = [3, 0], sizes = [1, 4], strides = [1, 1]} : vector<4x4xf32> to vector<1x4xf32>
    %293 = vector.shape_cast %292 : vector<1x4xf32> to vector<1x1x4xf32>
    %294 = vector.broadcast %291 : vector<2x8x1xf32> to vector<2x8x4xf32>
    %295 = vector.broadcast %293 : vector<1x1x4xf32> to vector<2x8x4xf32>
    %296 = arith.mulf %294, %295 : vector<2x8x4xf32>
    %297 = arith.addf %290, %296 : vector<2x8x4xf32>
    %cst_36 = arith.constant 0.000000e+00 : f32
    %298 = vector.broadcast %cst_36 : f32 to vector<2x8x4xf32>
    %299 = arith.maximumf %297, %298 : vector<2x8x4xf32>
    %300 = arith.addf %239, %299 : vector<2x8x4xf32>
    %cst_37 = arith.constant dense<0.000000e+00> : vector<2x8xf32>
    %301 = vector.multi_reduction <add>, %300, %cst_37 [2] : vector<2x8x4xf32> to vector<2x8xf32>
    %302 = vector.shape_cast %301 : vector<2x8xf32> to vector<2x8x1xf32>
    %cst_38 = arith.constant 4.000000e+00 : f32
    %303 = vector.broadcast %cst_38 : f32 to vector<2x8x1xf32>
    %304 = arith.divf %302, %303 : vector<2x8x1xf32>
    %305 = vector.broadcast %304 : vector<2x8x1xf32> to vector<2x8x4xf32>
    %306 = arith.subf %300, %305 : vector<2x8x4xf32>
    %307 = arith.mulf %306, %306 : vector<2x8x4xf32>
    %cst_39 = arith.constant dense<0.000000e+00> : vector<2x8xf32>
    %308 = vector.multi_reduction <add>, %307, %cst_39 [2] : vector<2x8x4xf32> to vector<2x8xf32>
    %309 = vector.shape_cast %308 : vector<2x8xf32> to vector<2x8x1xf32>
    %cst_40 = arith.constant 4.000000e+00 : f32
    %310 = vector.broadcast %cst_40 : f32 to vector<2x8x1xf32>
    %311 = arith.divf %309, %310 : vector<2x8x1xf32>
    %312 = vector.broadcast %304 : vector<2x8x1xf32> to vector<2x8x4xf32>
    %313 = arith.subf %300, %312 : vector<2x8x4xf32>
    %cst_41 = arith.constant 9.99999974E-6 : f32
    %314 = vector.broadcast %cst_41 : f32 to vector<2x8x1xf32>
    %315 = arith.addf %311, %314 : vector<2x8x1xf32>
    %316 = math.rsqrt %315 : vector<2x8x1xf32>
    %317 = vector.broadcast %316 : vector<2x8x1xf32> to vector<2x8x4xf32>
    %318 = arith.mulf %313, %317 : vector<2x8x4xf32>
    %319 = vector.shape_cast %17 : vector<1x4xf32> to vector<1x1x4xf32>
    %320 = vector.broadcast %319 : vector<1x1x4xf32> to vector<2x8x4xf32>
    %321 = arith.mulf %318, %320 : vector<2x8x4xf32>
    %322 = vector.shape_cast %18 : vector<1x4xf32> to vector<1x1x4xf32>
    %323 = vector.broadcast %322 : vector<1x1x4xf32> to vector<2x8x4xf32>
    %324 = arith.addf %321, %323 : vector<2x8x4xf32>
    %325 = math.tanh %1 : vector<2x8x4xf32>
    %326 = vector.shape_cast %20 : vector<1x4xf32> to vector<1x1x4xf32>
    %327 = vector.broadcast %326 : vector<1x1x4xf32> to vector<2x8x4xf32>
    %328 = arith.mulf %327, %39 : vector<2x8x4xf32>
    %cst_42 = arith.constant 0.000000e+00 : f32
    %329 = vector.broadcast %cst_42 : f32 to vector<2x8x4xf32>
    %330 = arith.maximumf %328, %329 : vector<2x8x4xf32>
    %cst_43 = arith.constant dense<0.000000e+00> : vector<2x4xf32>
    %331 = vector.multi_reduction <add>, %330, %cst_43 [1] : vector<2x8x4xf32> to vector<2x4xf32>
    %cst_44 = arith.constant 8.000000e+00 : f32
    %332 = vector.broadcast %cst_44 : f32 to vector<2x4xf32>
    %333 = arith.divf %331, %332 : vector<2x4xf32>
    %334 = vector.shape_cast %21 : vector<1x4xf32> to vector<1x4xf32>
    %335 = vector.broadcast %334 : vector<1x4xf32> to vector<2x4xf32>
    %336 = vector.extract_strided_slice %333 {offsets = [0, 0], sizes = [2, 1], strides = [1, 1]} : vector<2x4xf32> to vector<2x1xf32>
    %337 = vector.extract_strided_slice %7 {offsets = [0, 0], sizes = [1, 4], strides = [1, 1]} : vector<4x4xf32> to vector<1x4xf32>
    %338 = vector.broadcast %336 : vector<2x1xf32> to vector<2x4xf32>
    %339 = vector.broadcast %337 : vector<1x4xf32> to vector<2x4xf32>
    %340 = arith.mulf %338, %339 : vector<2x4xf32>
    %341 = arith.addf %335, %340 : vector<2x4xf32>
    %342 = vector.extract_strided_slice %333 {offsets = [0, 1], sizes = [2, 1], strides = [1, 1]} : vector<2x4xf32> to vector<2x1xf32>
    %343 = vector.extract_strided_slice %7 {offsets = [1, 0], sizes = [1, 4], strides = [1, 1]} : vector<4x4xf32> to vector<1x4xf32>
    %344 = vector.broadcast %342 : vector<2x1xf32> to vector<2x4xf32>
    %345 = vector.broadcast %343 : vector<1x4xf32> to vector<2x4xf32>
    %346 = arith.mulf %344, %345 : vector<2x4xf32>
    %347 = arith.addf %341, %346 : vector<2x4xf32>
    %348 = vector.extract_strided_slice %333 {offsets = [0, 2], sizes = [2, 1], strides = [1, 1]} : vector<2x4xf32> to vector<2x1xf32>
    %349 = vector.extract_strided_slice %7 {offsets = [2, 0], sizes = [1, 4], strides = [1, 1]} : vector<4x4xf32> to vector<1x4xf32>
    %350 = vector.broadcast %348 : vector<2x1xf32> to vector<2x4xf32>
    %351 = vector.broadcast %349 : vector<1x4xf32> to vector<2x4xf32>
    %352 = arith.mulf %350, %351 : vector<2x4xf32>
    %353 = arith.addf %347, %352 : vector<2x4xf32>
    %354 = vector.extract_strided_slice %333 {offsets = [0, 3], sizes = [2, 1], strides = [1, 1]} : vector<2x4xf32> to vector<2x1xf32>
    %355 = vector.extract_strided_slice %7 {offsets = [3, 0], sizes = [1, 4], strides = [1, 1]} : vector<4x4xf32> to vector<1x4xf32>
    %356 = vector.broadcast %354 : vector<2x1xf32> to vector<2x4xf32>
    %357 = vector.broadcast %355 : vector<1x4xf32> to vector<2x4xf32>
    %358 = arith.mulf %356, %357 : vector<2x4xf32>
    %359 = arith.addf %353, %358 : vector<2x4xf32>
    %360 = vector.shape_cast %22 : vector<1x4xf32> to vector<1x4xf32>
    %361 = vector.broadcast %360 : vector<1x4xf32> to vector<2x4xf32>
    %362 = vector.extract_strided_slice %333 {offsets = [0, 0], sizes = [2, 1], strides = [1, 1]} : vector<2x4xf32> to vector<2x1xf32>
    %363 = vector.extract_strided_slice %8 {offsets = [0, 0], sizes = [1, 4], strides = [1, 1]} : vector<4x4xf32> to vector<1x4xf32>
    %364 = vector.broadcast %362 : vector<2x1xf32> to vector<2x4xf32>
    %365 = vector.broadcast %363 : vector<1x4xf32> to vector<2x4xf32>
    %366 = arith.mulf %364, %365 : vector<2x4xf32>
    %367 = arith.addf %361, %366 : vector<2x4xf32>
    %368 = vector.extract_strided_slice %333 {offsets = [0, 1], sizes = [2, 1], strides = [1, 1]} : vector<2x4xf32> to vector<2x1xf32>
    %369 = vector.extract_strided_slice %8 {offsets = [1, 0], sizes = [1, 4], strides = [1, 1]} : vector<4x4xf32> to vector<1x4xf32>
    %370 = vector.broadcast %368 : vector<2x1xf32> to vector<2x4xf32>
    %371 = vector.broadcast %369 : vector<1x4xf32> to vector<2x4xf32>
    %372 = arith.mulf %370, %371 : vector<2x4xf32>
    %373 = arith.addf %367, %372 : vector<2x4xf32>
    %374 = vector.extract_strided_slice %333 {offsets = [0, 2], sizes = [2, 1], strides = [1, 1]} : vector<2x4xf32> to vector<2x1xf32>
    %375 = vector.extract_strided_slice %8 {offsets = [2, 0], sizes = [1, 4], strides = [1, 1]} : vector<4x4xf32> to vector<1x4xf32>
    %376 = vector.broadcast %374 : vector<2x1xf32> to vector<2x4xf32>
    %377 = vector.broadcast %375 : vector<1x4xf32> to vector<2x4xf32>
    %378 = arith.mulf %376, %377 : vector<2x4xf32>
    %379 = arith.addf %373, %378 : vector<2x4xf32>
    %380 = vector.extract_strided_slice %333 {offsets = [0, 3], sizes = [2, 1], strides = [1, 1]} : vector<2x4xf32> to vector<2x1xf32>
    %381 = vector.extract_strided_slice %8 {offsets = [3, 0], sizes = [1, 4], strides = [1, 1]} : vector<4x4xf32> to vector<1x4xf32>
    %382 = vector.broadcast %380 : vector<2x1xf32> to vector<2x4xf32>
    %383 = vector.broadcast %381 : vector<1x4xf32> to vector<2x4xf32>
    %384 = arith.mulf %382, %383 : vector<2x4xf32>
    %385 = arith.addf %379, %384 : vector<2x4xf32>
    %386 = vector.shape_cast %9 : vector<8x4xf32> to vector<1x8x4xf32>
    %387 = vector.broadcast %386 : vector<1x8x4xf32> to vector<2x8x4xf32>
    %388 = arith.mulf %325, %387 : vector<2x8x4xf32>
    %cst_45 = arith.constant dense<0.000000e+00> : vector<2x8xf32>
    %389 = vector.multi_reduction <add>, %388, %cst_45 [2] : vector<2x8x4xf32> to vector<2x8xf32>
    %390 = vector.shape_cast %389 : vector<2x8xf32> to vector<2x8x1xf32>
    %391 = vector.shape_cast %10 : vector<8x1xf32> to vector<1x8x1xf32>
    %392 = vector.broadcast %391 : vector<1x8x1xf32> to vector<2x8x1xf32>
    %393 = arith.addf %390, %392 : vector<2x8x1xf32>
    %394 = vector.shape_cast %359 : vector<2x4xf32> to vector<2x1x4xf32>
    %395 = vector.broadcast %393 : vector<2x8x1xf32> to vector<2x8x4xf32>
    %396 = vector.broadcast %394 : vector<2x1x4xf32> to vector<2x8x4xf32>
    %397 = arith.addf %395, %396 : vector<2x8x4xf32>
    %398 = arith.negf %397 : vector<2x8x4xf32>
    %399 = math.exp %398 : vector<2x8x4xf32>
    %cst_46 = arith.constant 1.000000e+00 : f32
    %400 = vector.broadcast %cst_46 : f32 to vector<2x8x4xf32>
    %401 = arith.addf %400, %399 : vector<2x8x4xf32>
    %402 = arith.divf %400, %401 : vector<2x8x4xf32>
    %403 = vector.shape_cast %385 : vector<2x4xf32> to vector<2x1x4xf32>
    %404 = vector.broadcast %393 : vector<2x8x1xf32> to vector<2x8x4xf32>
    %405 = vector.broadcast %403 : vector<2x1x4xf32> to vector<2x8x4xf32>
    %406 = arith.addf %404, %405 : vector<2x8x4xf32>
    %407 = arith.negf %406 : vector<2x8x4xf32>
    %408 = math.exp %407 : vector<2x8x4xf32>
    %cst_47 = arith.constant 1.000000e+00 : f32
    %409 = vector.broadcast %cst_47 : f32 to vector<2x8x4xf32>
    %410 = arith.addf %409, %408 : vector<2x8x4xf32>
    %411 = arith.divf %409, %410 : vector<2x8x4xf32>
    %412 = math.tanh %324 : vector<2x8x4xf32>
    %413 = arith.mulf %402, %412 : vector<2x8x4xf32>
    %414 = arith.mulf %411, %1 : vector<2x8x4xf32>
    %415 = arith.addf %413, %414 : vector<2x8x4xf32>
    %416 = vector.extract_strided_slice %415 {offsets = [0, 0, 0], sizes = [2, 8, 1], strides = [1, 1, 1]} : vector<2x8x4xf32> to vector<2x8x1xf32>
    %417 = vector.extract_strided_slice %4 {offsets = [0, 0], sizes = [1, 4], strides = [1, 1]} : vector<4x4xf32> to vector<1x4xf32>
    %418 = vector.shape_cast %417 : vector<1x4xf32> to vector<1x1x4xf32>
    %419 = vector.broadcast %416 : vector<2x8x1xf32> to vector<2x8x4xf32>
    %420 = vector.broadcast %418 : vector<1x1x4xf32> to vector<2x8x4xf32>
    %421 = arith.mulf %419, %420 : vector<2x8x4xf32>
    %422 = arith.addf %28, %421 : vector<2x8x4xf32>
    %423 = vector.extract_strided_slice %415 {offsets = [0, 0, 1], sizes = [2, 8, 1], strides = [1, 1, 1]} : vector<2x8x4xf32> to vector<2x8x1xf32>
    %424 = vector.extract_strided_slice %4 {offsets = [1, 0], sizes = [1, 4], strides = [1, 1]} : vector<4x4xf32> to vector<1x4xf32>
    %425 = vector.shape_cast %424 : vector<1x4xf32> to vector<1x1x4xf32>
    %426 = vector.broadcast %423 : vector<2x8x1xf32> to vector<2x8x4xf32>
    %427 = vector.broadcast %425 : vector<1x1x4xf32> to vector<2x8x4xf32>
    %428 = arith.mulf %426, %427 : vector<2x8x4xf32>
    %429 = arith.addf %422, %428 : vector<2x8x4xf32>
    %430 = vector.extract_strided_slice %415 {offsets = [0, 0, 2], sizes = [2, 8, 1], strides = [1, 1, 1]} : vector<2x8x4xf32> to vector<2x8x1xf32>
    %431 = vector.extract_strided_slice %4 {offsets = [2, 0], sizes = [1, 4], strides = [1, 1]} : vector<4x4xf32> to vector<1x4xf32>
    %432 = vector.shape_cast %431 : vector<1x4xf32> to vector<1x1x4xf32>
    %433 = vector.broadcast %430 : vector<2x8x1xf32> to vector<2x8x4xf32>
    %434 = vector.broadcast %432 : vector<1x1x4xf32> to vector<2x8x4xf32>
    %435 = arith.mulf %433, %434 : vector<2x8x4xf32>
    %436 = arith.addf %429, %435 : vector<2x8x4xf32>
    %437 = vector.extract_strided_slice %415 {offsets = [0, 0, 3], sizes = [2, 8, 1], strides = [1, 1, 1]} : vector<2x8x4xf32> to vector<2x8x1xf32>
    %438 = vector.extract_strided_slice %4 {offsets = [3, 0], sizes = [1, 4], strides = [1, 1]} : vector<4x4xf32> to vector<1x4xf32>
    %439 = vector.shape_cast %438 : vector<1x4xf32> to vector<1x1x4xf32>
    %440 = vector.broadcast %437 : vector<2x8x1xf32> to vector<2x8x4xf32>
    %441 = vector.broadcast %439 : vector<1x1x4xf32> to vector<2x8x4xf32>
    %442 = arith.mulf %440, %441 : vector<2x8x4xf32>
    %443 = arith.addf %436, %442 : vector<2x8x4xf32>
    %444 = vector.extract_strided_slice %415 {offsets = [0, 0, 0], sizes = [2, 8, 1], strides = [1, 1, 1]} : vector<2x8x4xf32> to vector<2x8x1xf32>
    %445 = vector.extract_strided_slice %5 {offsets = [0, 0], sizes = [1, 4], strides = [1, 1]} : vector<4x4xf32> to vector<1x4xf32>
    %446 = vector.shape_cast %445 : vector<1x4xf32> to vector<1x1x4xf32>
    %447 = vector.broadcast %444 : vector<2x8x1xf32> to vector<2x8x4xf32>
    %448 = vector.broadcast %446 : vector<1x1x4xf32> to vector<2x8x4xf32>
    %449 = arith.mulf %447, %448 : vector<2x8x4xf32>
    %450 = arith.addf %31, %449 : vector<2x8x4xf32>
    %451 = vector.extract_strided_slice %415 {offsets = [0, 0, 1], sizes = [2, 8, 1], strides = [1, 1, 1]} : vector<2x8x4xf32> to vector<2x8x1xf32>
    %452 = vector.extract_strided_slice %5 {offsets = [1, 0], sizes = [1, 4], strides = [1, 1]} : vector<4x4xf32> to vector<1x4xf32>
    %453 = vector.shape_cast %452 : vector<1x4xf32> to vector<1x1x4xf32>
    %454 = vector.broadcast %451 : vector<2x8x1xf32> to vector<2x8x4xf32>
    %455 = vector.broadcast %453 : vector<1x1x4xf32> to vector<2x8x4xf32>
    %456 = arith.mulf %454, %455 : vector<2x8x4xf32>
    %457 = arith.addf %450, %456 : vector<2x8x4xf32>
    %458 = vector.extract_strided_slice %415 {offsets = [0, 0, 2], sizes = [2, 8, 1], strides = [1, 1, 1]} : vector<2x8x4xf32> to vector<2x8x1xf32>
    %459 = vector.extract_strided_slice %5 {offsets = [2, 0], sizes = [1, 4], strides = [1, 1]} : vector<4x4xf32> to vector<1x4xf32>
    %460 = vector.shape_cast %459 : vector<1x4xf32> to vector<1x1x4xf32>
    %461 = vector.broadcast %458 : vector<2x8x1xf32> to vector<2x8x4xf32>
    %462 = vector.broadcast %460 : vector<1x1x4xf32> to vector<2x8x4xf32>
    %463 = arith.mulf %461, %462 : vector<2x8x4xf32>
    %464 = arith.addf %457, %463 : vector<2x8x4xf32>
    %465 = vector.extract_strided_slice %415 {offsets = [0, 0, 3], sizes = [2, 8, 1], strides = [1, 1, 1]} : vector<2x8x4xf32> to vector<2x8x1xf32>
    %466 = vector.extract_strided_slice %5 {offsets = [3, 0], sizes = [1, 4], strides = [1, 1]} : vector<4x4xf32> to vector<1x4xf32>
    %467 = vector.shape_cast %466 : vector<1x4xf32> to vector<1x1x4xf32>
    %468 = vector.broadcast %465 : vector<2x8x1xf32> to vector<2x8x4xf32>
    %469 = vector.broadcast %467 : vector<1x1x4xf32> to vector<2x8x4xf32>
    %470 = arith.mulf %468, %469 : vector<2x8x4xf32>
    %471 = arith.addf %464, %470 : vector<2x8x4xf32>
    %472 = vector.shape_cast %67 : vector<2x8x4xf32> to vector<2x8x1x4xf32>
    %473 = vector.shape_cast %443 : vector<2x8x4xf32> to vector<2x1x8x4xf32>
    %474 = vector.broadcast %472 : vector<2x8x1x4xf32> to vector<2x8x8x4xf32>
    %475 = vector.broadcast %473 : vector<2x1x8x4xf32> to vector<2x8x8x4xf32>
    %476 = arith.mulf %474, %475 : vector<2x8x8x4xf32>
    %cst_48 = arith.constant dense<0.000000e+00> : vector<2x8x8xf32>
    %477 = vector.multi_reduction <add>, %476, %cst_48 [3] : vector<2x8x8x4xf32> to vector<2x8x8xf32>
    %cst_49 = arith.constant dense<0xFF800000> : vector<2x8xf32>
    %478 = vector.multi_reduction <maximumf>, %477, %cst_49 [2] : vector<2x8x8xf32> to vector<2x8xf32>
    %479 = vector.shape_cast %478 : vector<2x8xf32> to vector<2x8x1xf32>
    %480 = vector.broadcast %479 : vector<2x8x1xf32> to vector<2x8x8xf32>
    %481 = arith.subf %477, %480 : vector<2x8x8xf32>
    %482 = math.exp %481 : vector<2x8x8xf32>
    %cst_50 = arith.constant dense<0.000000e+00> : vector<2x8xf32>
    %483 = vector.multi_reduction <add>, %482, %cst_50 [2] : vector<2x8x8xf32> to vector<2x8xf32>
    %484 = vector.shape_cast %483 : vector<2x8xf32> to vector<2x8x1xf32>
    %485 = tpu.reciprocal %484 {approx = true} : vector<2x8x1xf32> -> vector<2x8x1xf32>
    %486 = vector.broadcast %485 : vector<2x8x1xf32> to vector<2x8x8xf32>
    %487 = arith.mulf %482, %486 : vector<2x8x8xf32>
    %488 = vector.extract_strided_slice %487 {offsets = [0, 0, 0], sizes = [2, 8, 1], strides = [1, 1, 1]} : vector<2x8x8xf32> to vector<2x8x1xf32>
    %489 = vector.extract_strided_slice %471 {offsets = [0, 0, 0], sizes = [2, 1, 4], strides = [1, 1, 1]} : vector<2x8x4xf32> to vector<2x1x4xf32>
    %490 = vector.broadcast %488 : vector<2x8x1xf32> to vector<2x8x4xf32>
    %491 = vector.broadcast %489 : vector<2x1x4xf32> to vector<2x8x4xf32>
    %492 = arith.mulf %490, %491 : vector<2x8x4xf32>
    %493 = vector.extract_strided_slice %487 {offsets = [0, 0, 1], sizes = [2, 8, 1], strides = [1, 1, 1]} : vector<2x8x8xf32> to vector<2x8x1xf32>
    %494 = vector.extract_strided_slice %471 {offsets = [0, 1, 0], sizes = [2, 1, 4], strides = [1, 1, 1]} : vector<2x8x4xf32> to vector<2x1x4xf32>
    %495 = vector.broadcast %493 : vector<2x8x1xf32> to vector<2x8x4xf32>
    %496 = vector.broadcast %494 : vector<2x1x4xf32> to vector<2x8x4xf32>
    %497 = arith.mulf %495, %496 : vector<2x8x4xf32>
    %498 = arith.addf %492, %497 : vector<2x8x4xf32>
    %499 = vector.extract_strided_slice %487 {offsets = [0, 0, 2], sizes = [2, 8, 1], strides = [1, 1, 1]} : vector<2x8x8xf32> to vector<2x8x1xf32>
    %500 = vector.extract_strided_slice %471 {offsets = [0, 2, 0], sizes = [2, 1, 4], strides = [1, 1, 1]} : vector<2x8x4xf32> to vector<2x1x4xf32>
    %501 = vector.broadcast %499 : vector<2x8x1xf32> to vector<2x8x4xf32>
    %502 = vector.broadcast %500 : vector<2x1x4xf32> to vector<2x8x4xf32>
    %503 = arith.mulf %501, %502 : vector<2x8x4xf32>
    %504 = arith.addf %498, %503 : vector<2x8x4xf32>
    %505 = vector.extract_strided_slice %487 {offsets = [0, 0, 3], sizes = [2, 8, 1], strides = [1, 1, 1]} : vector<2x8x8xf32> to vector<2x8x1xf32>
    %506 = vector.extract_strided_slice %471 {offsets = [0, 3, 0], sizes = [2, 1, 4], strides = [1, 1, 1]} : vector<2x8x4xf32> to vector<2x1x4xf32>
    %507 = vector.broadcast %505 : vector<2x8x1xf32> to vector<2x8x4xf32>
    %508 = vector.broadcast %506 : vector<2x1x4xf32> to vector<2x8x4xf32>
    %509 = arith.mulf %507, %508 : vector<2x8x4xf32>
    %510 = arith.addf %504, %509 : vector<2x8x4xf32>
    %511 = vector.extract_strided_slice %487 {offsets = [0, 0, 4], sizes = [2, 8, 1], strides = [1, 1, 1]} : vector<2x8x8xf32> to vector<2x8x1xf32>
    %512 = vector.extract_strided_slice %471 {offsets = [0, 4, 0], sizes = [2, 1, 4], strides = [1, 1, 1]} : vector<2x8x4xf32> to vector<2x1x4xf32>
    %513 = vector.broadcast %511 : vector<2x8x1xf32> to vector<2x8x4xf32>
    %514 = vector.broadcast %512 : vector<2x1x4xf32> to vector<2x8x4xf32>
    %515 = arith.mulf %513, %514 : vector<2x8x4xf32>
    %516 = arith.addf %510, %515 : vector<2x8x4xf32>
    %517 = vector.extract_strided_slice %487 {offsets = [0, 0, 5], sizes = [2, 8, 1], strides = [1, 1, 1]} : vector<2x8x8xf32> to vector<2x8x1xf32>
    %518 = vector.extract_strided_slice %471 {offsets = [0, 5, 0], sizes = [2, 1, 4], strides = [1, 1, 1]} : vector<2x8x4xf32> to vector<2x1x4xf32>
    %519 = vector.broadcast %517 : vector<2x8x1xf32> to vector<2x8x4xf32>
    %520 = vector.broadcast %518 : vector<2x1x4xf32> to vector<2x8x4xf32>
    %521 = arith.mulf %519, %520 : vector<2x8x4xf32>
    %522 = arith.addf %516, %521 : vector<2x8x4xf32>
    %523 = vector.extract_strided_slice %487 {offsets = [0, 0, 6], sizes = [2, 8, 1], strides = [1, 1, 1]} : vector<2x8x8xf32> to vector<2x8x1xf32>
    %524 = vector.extract_strided_slice %471 {offsets = [0, 6, 0], sizes = [2, 1, 4], strides = [1, 1, 1]} : vector<2x8x4xf32> to vector<2x1x4xf32>
    %525 = vector.broadcast %523 : vector<2x8x1xf32> to vector<2x8x4xf32>
    %526 = vector.broadcast %524 : vector<2x1x4xf32> to vector<2x8x4xf32>
    %527 = arith.mulf %525, %526 : vector<2x8x4xf32>
    %528 = arith.addf %522, %527 : vector<2x8x4xf32>
    %529 = vector.extract_strided_slice %487 {offsets = [0, 0, 7], sizes = [2, 8, 1], strides = [1, 1, 1]} : vector<2x8x8xf32> to vector<2x8x1xf32>
    %530 = vector.extract_strided_slice %471 {offsets = [0, 7, 0], sizes = [2, 1, 4], strides = [1, 1, 1]} : vector<2x8x4xf32> to vector<2x1x4xf32>
    %531 = vector.broadcast %529 : vector<2x8x1xf32> to vector<2x8x4xf32>
    %532 = vector.broadcast %530 : vector<2x1x4xf32> to vector<2x8x4xf32>
    %533 = arith.mulf %531, %532 : vector<2x8x4xf32>
    %534 = arith.addf %528, %533 : vector<2x8x4xf32>
    %c0_51 = arith.constant 0 : index
    %c0_52 = arith.constant 0 : index
    %c0_53 = arith.constant 0 : index
    %535 = vector.load %arg3[%c0_51, %c0_52, %c0_53] : memref<2x16x4xf32, #tpu.memory_space<vmem>>, vector<2x8x4xf32>
    tpu.vector_store %arg3[%c0_51, %c0_52, %c0_53], %415 {strides = array<i32>} : memref<2x16x4xf32, #tpu.memory_space<vmem>>, vector<2x8x4xf32>,
    %c0_54 = arith.constant 0 : index
    %c8 = arith.constant 8 : index
    %c0_55 = arith.constant 0 : index
    %536 = vector.load %arg3[%c0_54, %c8, %c0_55] : memref<2x16x4xf32, #tpu.memory_space<vmem>>, vector<2x8x4xf32>
    tpu.vector_store %arg3[%c0_54, %c8, %c0_55], %534 {strides = array<i32>} : memref<2x16x4xf32, #tpu.memory_space<vmem>>, vector<2x8x4xf32>,
    return
  }
}

</mosaic_0001>

<bundles_post_ra>
// kernel: relational_memory_forward.1
= control target key start
LH: loop header
LB: loop body
LE: loop exit
PB: predicated region body
PF: predicated region fallthrough
CT: control target
= control target key end

     0   :  { %v4560_v3 = vmov 0   ;;  %vm45_vm0 = vcmask 130048   ;;  %v4564_v7 = vmov 1   ;;  %v4562_v8 = vmov 2   ;;  %s4554_s2 = inlined_call_operand.vmem [shape: f32[72,4], index: 2, kind: input, shape index: {}]   ;;  %s4555_s0 = inlined_call_operand.vmem [shape: f32[2,8,16], index: 0, kind: input, shape index: {}]   ;;  %s4556_s1 = inlined_call_operand.vmem [shape: f32[2,8,4], index: 1, kind: input, shape index: {}]   ;;  %s4557_s3 = inlined_call_operand.vmem [shape: f32[2,16,4], index: 3, kind: output, shape index: {}]  }
   0x1   :  { %v19_v0 = vld [vmem:[%s4554_s2 + $0x8] sm:$0xff]  ;;  %v18_v1 = vld [vmem:[%s4554_s2] sm:$0xff]  ;;  %2815 = vset.pattern.permute.xlu2 %v4560_v3  ;;  %2816 = vset.pattern.permute.xlu1 %v4560_v3  ;;  %v4558_v9 = vmov 3   ;;  %v20_v19 = vld [vmem:[%s4554_s2 + $0x10] sm:$0xf]  ;;  %vm283_vm1 = vcmask 31744  }
   0x2   :  { %v14_v2 = vld [vmem:[%s4555_s0] sm:$0xff]  ;;  %66 = vmatpush.msra.mxu0 %v19_v0  ;;  %2807 = vmatpush.msra.mxu1 %v19_v0  ;;  %v15_v4 = vld [vmem:[%s4555_s0 + $0x8] sm:$0xff]  ;;  %v3072_v20 = vperm.slane %v20_v19, 0  ;;  %v2872_v23 = vld [vmem:[%s4554_s2 + $0x38] ss:$0 sm:$0xff]  ;;  %v3078_v25 = vperm.slane %v20_v19, 1 }
   0x3   :  { %v16_v5 = vld [vmem:[%s4556_s1] sm:$0xff]  ;;  %v17_v6 = vld [vmem:[%s4556_s1 + $0x8] sm:$0xff]  ;;  %2818 = vset.pattern.permute.xlu0 %v4564_v7  ;;  %v21_v30 = vld [vmem:[%s4554_s2 + $0x14] sm:$0xf]  ;;  %v3086_v31 = vperm.slane %v20_v19, 2  ;;  %v3090_v35 = vperm.slane %v20_v19, 3 }
   0x4   :  { %171 = vperm.xlu2 %2815, %v16_v5   ;;  %176 = vperm.xlu1 %2816, %v17_v6   ;;  %v2870_v10 = vld [vmem:[%s4554_s2 + $0x40] ss:$0 sm:$0xff]  ;;  %v3088_v32 = vperm.slane %v21_v30, 0  ;;  %v2873_v38 = vld [vmem:[%s4554_s2 + $0x39] ss:$0 sm:$0xff]  ;;  %v3101_v42 = vperm.slane %v21_v30, 1 }
   0x5   :  { %67 = vmatpush.msra.mxu0 %v18_v1  ;;  %2808 = vmatpush.msra.mxu1 %v18_v1  ;;  %4591 = vst [vmem:[#allocation2_spill] sm:$0xff] %v3086_v31  ;;  %v3105_v45 = vperm.slane %v21_v30, 2  ;;  %v3114_v51 = vperm.slane %v21_v30, 3  ;;  %vm366_vm2 = vcmask 1041409   ;;  %vm368_vm3 = vcmask 1042434  }
   0x6   :  { %2801 = vmatmul.msk.f32.vlgmr.msra.gmra.mxu0 %vm45_vm0, %v14_v2  ;;  %2802 = vmatmul.msk.f32.vlgmr.msra.gmra.mxu1 %vm45_vm0, %v15_v4  ;;  %4592 = vst [vmem:[#allocation3_spill] sm:$0xff] %v3088_v32  ;;  %vm370_vm4 = vcmask 1043459   ;;  %vm372_vm5 = vcmask 1044484   ;;  %vm374_vm6 = vcmask 1045509   ;;  %vm376_vm7 = vcmask 1046534  }
   0x7   :  { %188 = vperm.xlu0 %2818, %v17_v6   ;;  %4593 = vst [vmem:[#allocation4_spill] sm:$0xff] %v3090_v35  ;;  %vm378_vm8 = vcmask 1047559   ;;  %vm4590_vm9 = vcmask 64512  }
   0x8   :  { %4594 = vst [vmem:[#allocation5_spill] sm:$0xff] %v3101_v42 }
   0x9   :  { %4596 = vst [vmem:[#allocation7_spill] sm:$0xff] %v3105_v45 }
   0xa   :  { %4598 = vst [vmem:[#allocation9_spill] sm:$0xff] %v3114_v51 }
   0xc   :  { %2817 = vset.pattern.permute.xlu2 %v4564_v7  ;;  %2819 = vset.pattern.permute.xlu1 %v4562_v8 }
   0xd   :  { %184 = vperm.xlu2 %2817, %v16_v5   ;;  %196 = vperm.xlu1 %2819, %v16_v5  }
   0xf   :  { %2823 = vset.pattern.permute.xlu0 %v4560_v3 }
  0x15   :  { %2820 = vset.pattern.permute.xlu2 %v4562_v8  ;;  %2821 = vset.pattern.permute.xlu1 %v4558_v9 }
  0x16   :  { %200 = vperm.xlu2 %2820, %v17_v6   ;;  %208 = vperm.xlu1 %2821, %v16_v5  }
  0x1e   :  { %2822 = vset.pattern.permute.xlu2 %v4558_v9  ;;  %2824 = vset.pattern.permute.xlu1 %v4564_v7 }
  0x1f   :  { %212 = vperm.xlu2 %2822, %v17_v6  }
  0x27   :  { %2825 = vset.pattern.permute.xlu2 %v4562_v8 }
  0x5e   :  { %v172_v15 = vpop.permute.xlu2 %171 }
  0x5f   :  { %v179_v24 = vmul.f32 %v172_v15, %v3072_v20 }
  0x61   :  { %v181_v27 = vadd.f32 %v2872_v23, %v179_v24 }
  0x67   :  { %v185_v17 = vpop.permute.xlu2 %184 }
  0x68   :  { %v191_v28 = vmul.f32 %v185_v17, %v3078_v25 }
  0x6a   :  { %v193_v34 = vadd.f32 %v191_v28, %v181_v27 }
  0x70   :  { %v201_v22 = vpop.permute.xlu2 %200 }
  0x71   :  { %v204_v2 = vmul.f32 %v201_v22, %v3086_v31 }
  0x76   :  { %v177_v16 = vpop.permute.xlu1 %176 }
  0x77   :  { %v180_v48 = vmul.f32 %v177_v16, %v3072_v20 }
  0x79   :  { %v189_v21 = vpop.permute.xlu0 %188  ;;  %v213_v33 = vpop.permute.xlu2 %212  ;;  %v182_v56 = vadd.f32 %v2872_v23, %v180_v48 }
  0x7a   :  { %v192_v57 = vmul.f32 %v189_v21, %v3078_v25  ;;  %v216_v22 = vmul.f32 %v213_v33, %v3090_v35 }
  0x7c   :  { %v194_v4 = vadd.f32 %v192_v57, %v182_v56  ;;  %v348_v56 = vlaneseq }
  0x7f   :  { %v197_v18 = vpop.permute.xlu1 %196 }
  0x80   :  { %v203_v36 = vmul.f32 %v197_v18, %v3086_v31 }
  0x82   :  { %v205_v40 = vadd.f32 %v203_v36, %v193_v34 }
  0x83   :  { %v69_v11 = vpop.f32.mrf.mxu0  ;;  %v72_v13 = vpop.f32.mrf.mxu1 }
  0x84   :  { %v3053_v12 = vadd.f32 %v2870_v10, %v69_v11  ;;  %v3058_v14 = vadd.f32 %v2870_v10, %v72_v13 }
  0x86   :  { %104 = vperm.xlu2 %2825, %v3053_v12   ;;  %91 = vperm.xlu1 %2824, %v3053_v12  }
  0x87   :  { %77 = vperm.xlu0 %2823, %v3053_v12  }
  0x88   :  { %v209_v26 = vpop.permute.xlu1 %208 }
  0x89   :  { %v215_v41 = vmul.f32 %v209_v26, %v3090_v35  ;;  %v206_v26 = vadd.f32 %v204_v2, %v194_v4 }
  0x8b   :  { %v3107_v46 = vadd.f32 %v215_v41, %v205_v40  ;;  %v218_v41 = vadd.f32 %v216_v22, %v206_v26 }
  0x8d   :  { %v222_v54 = vrot.slane %v3107_v46, 2  ;;  %v221_v55 = vrot.slane %v3107_v46, 1  ;;  %v235_v1 = vperm.slane %v3107_v46, 0  ;;  %v223_v5 = vrot.slane %v3107_v46, 3 }
  0x8e   :  { %108 = vperm.xlu2 %2825, %v3058_v14   ;;  %95 = vperm.xlu1 %2824, %v3058_v14   ;;  %v225_v6 = vrot.slane %v3107_v46, 5  ;;  %v224_v16 = vrot.slane %v3107_v46, 4  ;;  %v227_v48 = vrot.slane %v3107_v46, 7  ;;  %v230_v2 = vrot.slane %v218_v41, 3 }
  0x8f   :  { %82 = vperm.xlu0 %2823, %v3058_v14   ;;  %v237_v63 = vperm.slane %v222_v54, 0  ;;  %v236_v0 = vperm.slane %v221_v55, 0  ;;  %v238_v28 = vperm.slane %v223_v5, 0  ;;  %v229_v4 = vrot.slane %v218_v41, 2 }
  0x90   :  { %v240_v30 = vperm.slane %v225_v6, 0  ;;  %v239_v34 = vperm.slane %v224_v16, 0 }
  0x96   :  { %2827 = vset.pattern.permute.xlu1 %v4558_v9  ;;  %2829 = vset.pattern.permute.xlu2 %v4560_v3 }
  0x97   :  { %2826 = vset.pattern.permute.xlu0 %v4558_v9  ;;  %121 = vperm.xlu1 %2827, %v3058_v14  }
  0x98   :  { %117 = vperm.xlu0 %2826, %v3053_v12  }
  0xa0   :  { %2830 = vset.pattern.permute.xlu0 %v4560_v3 }
  0xe0   :  { %v3112_v49 = vpop.permute.xlu2 %104 }
  0xe1   :  { %4597 = vst [vmem:[#allocation8_spill] sm:$0xff] %v3112_v49  ;;  %v140_v53 = vmul.f32 %v3105_v45, %v3112_v49 }
  0xe8   :  { %v3140_v23 = vpop.permute.xlu2 %108 }
  0xe9   :  { %4601 = vst [vmem:[#allocation12_spill] sm:$0xff] %v3140_v23  ;;  %v141_v36 = vmul.f32 %v3105_v45, %v3140_v23 }
  0xf8   :  { %v3093_v37 = vpop.permute.xlu1 %91 }
  0xf9   :  { %v3081_v29 = vpop.permute.xlu0 %77  ;;  %v135_v47 = vmul.f32 %v3101_v42, %v3093_v37 }
  0xfa   :  { %v130_v39 = vmul.f32 %v3088_v32, %v3081_v29 }
  0xfc   :  { %v132_v44 = vadd.f32 %v2873_v38, %v130_v39 }
  0xfe   :  { %v137_v50 = vadd.f32 %v135_v47, %v132_v44  ;;  %v226_v47 = vrot.slane %v3107_v46, 6 }
 0x100   :  { %v3116_v52 = vpop.permute.xlu1 %95  ;;  %v142_v60 = vadd.f32 %v140_v53, %v137_v50  ;;  %v241_v57 = vperm.slane %v226_v47, 0  ;;  %v22_v47 = vld [vmem:[%s4554_s2 + $0x18] sm:$0xf] }
 0x101   :  { %v3103_v43 = vpop.permute.xlu0 %82  ;;  %4599 = vst [vmem:[#allocation10_spill] sm:$0xff] %v3116_v52  ;;  %v136_v17 = vmul.f32 %v3101_v42, %v3116_v52 }
 0x102   :  { %4595 = vst [vmem:[#allocation6_spill] sm:$0xff] %v3103_v43  ;;  %v131_v59 = vmul.f32 %v3088_v32, %v3103_v43 }
 0x104   :  { %v133_v10 = vadd.f32 %v2873_v38, %v131_v59  ;;  %v243_v59 = vperm.slane %v218_v41, 0 }
 0x106   :  { %v138_v27 = vadd.f32 %v136_v17, %v133_v10 }
 0x108   :  { %v143_v44 = vadd.f32 %v141_v36, %v138_v27 }
 0x109   :  { %v3142_v24 = vpop.permute.xlu1 %121 }
 0x10a   :  { %v3123_v58 = vpop.permute.xlu0 %117  ;;  %4602 = vst [vmem:[#allocation13_spill] sm:$0xff] %v3142_v24  ;;  %v146_v38 = vmul.f32 %v3114_v51, %v3142_v24 }
 0x10b   :  { %4600 = vst [vmem:[#allocation11_spill] sm:$0xff] %v3123_v58  ;;  %v145_v61 = vmul.f32 %v3114_v51, %v3123_v58 }
 0x10c   :  { %v148_v50 = vadd.f32 %v146_v38, %v143_v44 }
 0x10d   :  { %v147_v62 = vadd.f32 %v145_v61, %v142_v60  ;;  %v242_v60 = vperm.slane %v227_v48, 0  ;;  %v3154_v61 = vshrl.u32 %v348_v56, 7 }
 0x10f   :  { %v269_v11 = vmul.f32 %v237_v63, %v147_v62  ;;  %v268_v13 = vmul.f32 %v236_v0, %v147_v62  ;;  %v267_v15 = vmul.f32 %v235_v1, %v147_v62  ;;  %v270_v39 = vmul.f32 %v238_v28, %v147_v62  ;;  %2828 = vset.pattern.permute.xlu1 %v3154_v61 }
 0x110   :  { %v272_v33 = vmul.f32 %v240_v30, %v147_v62  ;;  %v271_v40 = vmul.f32 %v239_v34, %v147_v62  ;;  %v273_v63 = vmul.f32 %v241_v57, %v147_v62  ;;  %v275_v0 = vmul.f32 %v243_v59, %v148_v50 }
 0x111   :  { %v290_v18 = vsel %vm283_vm1, %v269_v11, 0.0  ;;  %v287_v19 = vsel %vm283_vm1, %v268_v13, 0.0  ;;  %v284_v21 = vsel %vm283_vm1, %v267_v15, 0.0  ;;  %v293_v53 = vsel %vm283_vm1, %v270_v39, 0.0 }
 0x112   :  { %291 = vadd.xlane.f32.xlu2 %v290_v18  ;;  %288 = vadd.xlane.f32.xlu1 %v287_v19  ;;  %v299_v54 = vsel %vm283_vm1, %v272_v33, 0.0  ;;  %v296_v55 = vsel %vm283_vm1, %v271_v40, 0.0  ;;  %v274_v46 = vmul.f32 %v242_v60, %v147_v62  ;;  %v228_v1 = vrot.slane %v218_v41, 1 }
 0x113   :  { %285 = vadd.xlane.f32.xlu0 %v284_v21  ;;  %v302_v5 = vsel %vm283_vm1, %v273_v63, 0.0  ;;  %v308_v6 = vsel %vm283_vm1, %v275_v0, 0.0  ;;  %v246_v13 = vperm.slane %v230_v2, 0  ;;  %v245_v15 = vperm.slane %v229_v4, 0 }
 0x114   :  { %v305_v10 = vsel %vm283_vm1, %v274_v46, 0.0  ;;  %v244_v11 = vperm.slane %v228_v1, 0  ;;  %v231_v18 = vrot.slane %v218_v41, 4  ;;  %v233_v19 = vrot.slane %v218_v41, 6 }
 0x115   :  { %v278_v17 = vmul.f32 %v246_v13, %v148_v50  ;;  %v277_v62 = vmul.f32 %v245_v15, %v148_v50  ;;  %v232_v21 = vrot.slane %v218_v41, 5  ;;  %v234_v33 = vrot.slane %v218_v41, 7  ;;  %v2874_v41 = vld [vmem:[%s4554_s2 + $0x3a] ss:$0 sm:$0xff] }
 0x116   :  { %v276_v16 = vmul.f32 %v244_v11, %v148_v50  ;;  %v247_v28 = vperm.slane %v231_v18, 0  ;;  %v249_v30 = vperm.slane %v233_v19, 0  ;;  %v3176_v59 = vperm.slane %v22_v47, 1 }
 0x117   :  { %v317_v26 = vsel %vm283_vm1, %v278_v17, 0.0  ;;  %v314_v27 = vsel %vm283_vm1, %v277_v62, 0.0  ;;  %v248_v34 = vperm.slane %v232_v21, 0  ;;  %v3179_v0 = vperm.slane %v22_v47, 2 }
 0x118   :  { %v311_v22 = vsel %vm283_vm1, %v276_v16, 0.0  ;;  %v279_v36 = vmul.f32 %v247_v28, %v148_v50  ;;  %v281_v38 = vmul.f32 %v249_v30, %v148_v50  ;;  %4603 = vst [vmem:[#allocation14_spill] sm:$0xff] %v3176_v59  ;;  %v155_v46 = vmul.f32 %v3176_v59, %v3093_v37 }
 0x119   :  { %v280_v39 = vmul.f32 %v248_v34, %v148_v50  ;;  %4604 = vst [vmem:[#allocation15_spill] sm:$0xff] %v3179_v0  ;;  %v3183_v1 = vperm.slane %v22_v47, 3  ;;  %v160_v4 = vmul.f32 %v3179_v0, %v3112_v49  ;;  %v156_v11 = vmul.f32 %v3176_v59, %v3116_v52 }
 0x11a   :  { %294 = vadd.xlane.f32.xlu2 %v293_v53  ;;  %300 = vadd.xlane.f32.xlu1 %v299_v54  ;;  %v320_v40 = vsel %vm283_vm1, %v279_v36, 0.0  ;;  %v326_v44 = vsel %vm283_vm1, %v281_v38, 0.0  ;;  %v3169_v53 = vperm.slane %v22_v47, 0  ;;  %v250_v54 = vperm.slane %v234_v33, 0 }
 0x11b   :  { %297 = vadd.xlane.f32.xlu0 %v296_v55  ;;  %v323_v48 = vsel %vm283_vm1, %v280_v39, 0.0  ;;  %4605 = vst [vmem:[#allocation16_spill] sm:$0xff] %v3183_v1  ;;  %v161_v16 = vmul.f32 %v3179_v0, %v3140_v23  ;;  %v166_v17 = vmul.f32 %v3183_v1, %v3142_v24 }
 0x11c   :  { %v282_v55 = vmul.f32 %v250_v54, %v148_v50  ;;  %v150_v57 = vmul.f32 %v3169_v53, %v3081_v29  ;;  %v151_v2 = vmul.f32 %v3169_v53, %v3103_v43 }
 0x11e   :  { %v329_v60 = vsel %vm283_vm1, %v282_v55, 0.0  ;;  %v152_v63 = vadd.f32 %v2874_v41, %v150_v57 }
 0x120   :  { %v157_v50 = vadd.f32 %v155_v46, %v152_v63 }
 0x122   :  { %303 = vadd.xlane.f32.xlu2 %v302_v5  ;;  %309 = vadd.xlane.f32.xlu1 %v308_v6  ;;  %v165_v5 = vmul.f32 %v3183_v1, %v3123_v58  ;;  %v153_v6 = vadd.f32 %v2874_v41, %v151_v2 }
 0x123   :  { %306 = vadd.xlane.f32.xlu0 %v305_v10  ;;  %v162_v10 = vadd.f32 %v160_v4, %v157_v50 }
 0x124   :  { %v158_v15 = vadd.f32 %v156_v11, %v153_v6 }
 0x125   :  { %v3193_v13 = vadd.f32 %v165_v5, %v162_v10 }
 0x126   :  { %v163_v18 = vadd.f32 %v161_v16, %v158_v15 }
 0x127   :  { %v648_v62 = vperm.slane %v3193_v13, 0 }
 0x128   :  { %v3200_v19 = vadd.f32 %v166_v17, %v163_v18 }
 0x12a   :  { %312 = vadd.xlane.f32.xlu2 %v311_v22  ;;  %318 = vadd.xlane.f32.xlu1 %v317_v26  ;;  %v649_v21 = vperm.slane %v3200_v19, 0  ;;  %v3205_v22 = vand.u32 127, %v348_v56 }
 0x12b   :  { %315 = vadd.xlane.f32.xlu0 %v314_v27 }
 0x132   :  { %321 = vadd.xlane.f32.xlu2 %v320_v40  ;;  %327 = vadd.xlane.f32.xlu1 %v326_v44 }
 0x133   :  { %324 = vadd.xlane.f32.xlu0 %v323_v48 }
 0x13a   :  { %330 = vadd.xlane.f32.xlu2 %v329_v60 }
 0x14b   :  { %656 = vperm.xlu1 %2828, %v648_v62  }
 0x153   :  { %662 = vperm.xlu1 %2828, %v649_v21  }
 0x15b   :  { %2831 = vset.pattern.permute.xlu1 %v4560_v3 }
 0x185   :  { %v292_v26 = vpop.xlane.xlu2 %291  ;;  %v289_v27 = vpop.xlane.xlu1 %288 }
 0x186   :  { %v286_v28 = vpop.xlane.xlu0 %285  ;;  %v351_v30 = vperm.slane %v289_v27, %v3205_v22  ;;  %v352_v36 = vperm.slane %v292_v26, %v3205_v22 }
 0x187   :  { %v350_v34 = vperm.slane %v286_v28, %v3205_v22 }
 0x189   :  { %v367_v38 = vsel %vm366_vm2, %v351_v30, %v350_v34 }
 0x18a   :  { %v369_v44 = vsel %vm368_vm3, %v352_v36, %v367_v38 }
 0x18d   :  { %v3211_v39 = vpop.xlane.xlu2 %294  ;;  %v3213_v33 = vpop.xlane.xlu1 %300 }
 0x18e   :  { %v353_v56 = vperm.slane %v3211_v39, %v3205_v22  ;;  %v298_v40 = vpop.xlane.xlu0 %297  ;;  %v355_v55 = vperm.slane %v3213_v33, %v3205_v22 }
 0x18f   :  { %v354_v47 = vperm.slane %v298_v40, %v3205_v22 }
 0x190   :  { %v371_v48 = vsel %vm370_vm4, %v353_v56, %v369_v44 }
 0x191   :  { %v373_v54 = vsel %vm372_vm5, %v354_v47, %v371_v48 }
 0x192   :  { %v375_v50 = vsel %vm374_vm6, %v355_v55, %v373_v54 }
 0x195   :  { %v3223_v41 = vpop.xlane.xlu2 %303  ;;  %v3227_v60 = vpop.xlane.xlu1 %309 }
 0x196   :  { %v356_v57 = vperm.slane %v3223_v41, %v3205_v22  ;;  %v3229_v63 = vpop.xlane.xlu0 %306  ;;  %v358_v15 = vperm.slane %v3227_v60, %v3205_v22 }
 0x197   :  { %v357_v46 = vperm.slane %v3229_v63, %v3205_v22 }
 0x198   :  { %v377_v2 = vsel %vm376_vm7, %v356_v57, %v375_v50 }
 0x199   :  { %v379_v4 = vsel %vm378_vm8, %v357_v46, %v377_v2 }
 0x19a   :  { %v390_v5 = vsel %vm4590_vm9, %v379_v4, -inf }
 0x19b   :  { %391 = vmax.xlane.f32.xlu0 %v390_v5 }
 0x19d   :  { %v3237_v6 = vpop.xlane.xlu2 %312  ;;  %v3245_v16 = vpop.xlane.xlu1 %318 }
 0x19e   :  { %v359_v10 = vperm.slane %v3237_v6, %v3205_v22  ;;  %v3241_v11 = vpop.xlane.xlu0 %315  ;;  %v361_v30 = vperm.slane %v3245_v16, %v3205_v22 }
 0x19f   :  { %v360_v17 = vperm.slane %v3241_v11, %v3205_v22 }
 0x1a0   :  { %v380_v62 = vsel %vm366_vm2, %v359_v10, %v358_v15 }
 0x1a1   :  { %v381_v18 = vsel %vm368_vm3, %v360_v17, %v380_v62 }
 0x1a2   :  { %v382_v38 = vsel %vm370_vm4, %v361_v30, %v381_v18 }
 0x1a5   :  { %v3251_v21 = vpop.xlane.xlu2 %321  ;;  %v3263_v47 = vpop.xlane.xlu1 %327 }
 0x1a6   :  { %v362_v34 = vperm.slane %v3251_v21, %v3205_v22  ;;  %v3257_v36 = vpop.xlane.xlu0 %324  ;;  %v364_v54 = vperm.slane %v3263_v47, %v3205_v22 }
 0x1a7   :  { %v363_v56 = vperm.slane %v3257_v36, %v3205_v22 }
 0x1a8   :  { %v383_v44 = vsel %vm372_vm5, %v362_v34, %v382_v38 }
 0x1a9   :  { %v384_v48 = vsel %vm374_vm6, %v363_v56, %v383_v44 }
 0x1aa   :  { %v385_v46 = vsel %vm376_vm7, %v364_v54, %v384_v48 }
 0x1ad   :  { %v3268_v55 = vpop.xlane.xlu2 %330 }
 0x1ae   :  { %v365_v57 = vperm.slane %v3268_v55, %v3205_v22 }
 0x1b0   :  { %v386_v50 = vsel %vm378_vm8, %v365_v57, %v385_v46 }
 0x1b1   :  { %v393_v2 = vsel %vm4590_vm9, %v386_v50, -inf }
 0x1b2   :  { %394 = vmax.xlane.f32.xlu1 %v393_v2 }
 0x1bd   :  { %v3275_v38 = vpop.permute.xlu1 %656 }
 0x20e   :  { %v392_v4 = vpop.xlane.xlu0 %391 }
 0x20f   :  { %v400_v5 = vperm.slane %v392_v4, 2  ;;  %v399_v10 = vperm.slane %v392_v4, 1  ;;  %v398_v15 = vperm.slane %v392_v4, 0  ;;  %v402_v30 = vperm.slane %v392_v4, 4 }
 0x210   :  { %v401_v34 = vperm.slane %v392_v4, 3  ;;  %v404_v46 = vperm.slane %v392_v4, 6 }
 0x211   :  { %v432_v17 = vsub.f32 %v292_v26, %v400_v5  ;;  %v431_v62 = vsub.f32 %v289_v27, %v399_v10  ;;  %v430_v18 = vsub.f32 %v286_v28, %v398_v15  ;;  %v434_v48 = vsub.f32 %v298_v40, %v402_v30  ;;  %v3285_v5 = vpop.permute.xlu1 %662 }
 0x212   :  { %v433_v54 = vsub.f32 %v3211_v39, %v401_v34  ;;  %v403_v27 = vperm.slane %v392_v4, 5 }
 0x213   :  { %v450_v56 = vmul.f32 1.442695, %v432_v17  ;;  %v448_v44 = vmul.f32 1.442695, %v431_v62  ;;  %v446_v9 = vmul.f32 1.442695, %v430_v18 }
 0x214   :  { %v454_v57 = vmul.f32 1.442695, %v434_v48  ;;  %v452_v26 = vmul.f32 1.442695, %v433_v54  ;;  %v435_v39 = vsub.f32 %v3213_v33, %v403_v27  ;;  %v405_v17 = vperm.slane %v392_v4, 7 }
 0x215   :  { %2882 = vpow2.f32 %v450_v56 }
 0x216   :  { %2884 = vpow2.f32 %v448_v44  ;;  %v456_v15 = vmul.f32 1.442695, %v435_v39  ;;  %v437_v34 = vsub.f32 %v3229_v63, %v405_v17 }
 0x217   :  { %2886 = vpow2.f32 %v446_v9  ;;  %v436_v9 = vsub.f32 %v3223_v41, %v404_v46 }
 0x218   :  { %2888 = vpow2.f32 %v454_v57  ;;  %v460_v46 = vmul.f32 1.442695, %v437_v34 }
 0x219   :  { %2890 = vpow2.f32 %v452_v26  ;;  %v458_v40 = vmul.f32 1.442695, %v436_v9 }
 0x21b   :  { %v3278_v50 = vpop.eup %2882  ;;  %2892 = vpow2.f32 %v458_v40 }
 0x21c   :  { %v3280_v28 = vpop.eup %2884  ;;  %501 = vperm.xlu1 %2831, %v3278_v50   ;;  %2894 = vpow2.f32 %v456_v15 }
 0x21d   :  { %v3283_v2 = vpop.eup %2886  ;;  %498 = vperm.xlu0 %2830, %v3280_v28  }
 0x21e   :  { %495 = vperm.xlu2 %2829, %v3283_v2   ;;  %v3291_v10 = vpop.eup %2888 }
 0x21f   :  { %v3294_v62 = vpop.eup %2890 }
 0x221   :  { %v3300_v57 = vpop.eup %2892 }
 0x222   :  { %v3304_v9 = vpop.eup %2894 }
 0x224   :  { %507 = vperm.xlu1 %2831, %v3291_v10  }
 0x225   :  { %v395_v18 = vpop.xlane.xlu1 %394 }
 0x226   :  { %504 = vperm.xlu2 %2829, %v3294_v62   ;;  %v406_v30 = vperm.slane %v395_v18, 0  ;;  %v407_v41 = vperm.slane %v395_v18, 1  ;;  %v409_v44 = vperm.slane %v395_v18, 3  ;;  %v410_v48 = vperm.slane %v395_v18, 4 }
 0x227   :  { %v408_v26 = vperm.slane %v395_v18, 2  ;;  %v412_v39 = vperm.slane %v395_v18, 6  ;;  %v413_v15 = vperm.slane %v395_v18, 7 }
 0x228   :  { %v438_v33 = vsub.f32 %v3227_v60, %v406_v30  ;;  %v439_v56 = vsub.f32 %v3237_v6, %v407_v41  ;;  %v441_v27 = vsub.f32 %v3245_v16, %v409_v44  ;;  %v442_v60 = vsub.f32 %v3251_v21, %v410_v48 }
 0x229   :  { %v440_v63 = vsub.f32 %v3241_v11, %v408_v26  ;;  %v411_v41 = vperm.slane %v395_v18, 5  ;;  %v444_v21 = vsub.f32 %v3263_v47, %v412_v39  ;;  %v445_v11 = vsub.f32 %v3268_v55, %v413_v15 }
 0x22a   :  { %v462_v4 = vmul.f32 1.442695, %v438_v33  ;;  %v464_v54 = vmul.f32 1.442695, %v439_v56  ;;  %v468_v6 = vmul.f32 1.442695, %v441_v27 }
 0x22b   :  { %v470_v40 = vmul.f32 1.442695, %v442_v60  ;;  %v466_v16 = vmul.f32 1.442695, %v440_v63  ;;  %v443_v33 = vsub.f32 %v3257_v36, %v411_v41  ;;  %v474_v56 = vmul.f32 1.442695, %v444_v21 }
 0x22c   :  { %513 = vperm.xlu1 %2831, %v3300_v57   ;;  %2896 = vpow2.f32 %v462_v4  ;;  %v476_v44 = vmul.f32 1.442695, %v445_v11  ;;  %v698_v26 = vperm.slane %v3193_v13, 1  ;;  %v765_v27 = vperm.slane %v3200_v19, 2 }
 0x22d   :  { %2898 = vpow2.f32 %v464_v54  ;;  %v472_v4 = vmul.f32 1.442695, %v443_v33  ;;  %v699_v60 = vperm.slane %v3200_v19, 1  ;;  %v962_v63 = vperm.slane %v3193_v13, 5 }
 0x22e   :  { %510 = vperm.xlu2 %2829, %v3304_v9   ;;  %2900 = vpow2.f32 %v460_v46  ;;  %v831_v46 = vperm.slane %v3200_v19, 3  ;;  %v1028_v39 = vperm.slane %v3193_v13, 6  ;;  %v1094_v15 = vperm.slane %v3193_v13, 7 }
 0x22f   :  { %2902 = vpow2.f32 %v468_v6  ;;  %v764_v6 = vperm.slane %v3193_v13, 2  ;;  %v897_v41 = vperm.slane %v3200_v19, 4  ;;  %v963_v11 = vperm.slane %v3200_v19, 5 }
 0x230   :  { %2904 = vpow2.f32 %v470_v40  ;;  %v830_v40 = vperm.slane %v3193_v13, 3 }
 0x231   :  { %2906 = vpow2.f32 %v466_v16  ;;  %v896_v16 = vperm.slane %v3193_v13, 4  ;;  %v1095_v13 = vperm.slane %v3200_v19, 7 }
 0x232   :  { %v3309_v17 = vpop.eup %2896  ;;  %2908 = vpow2.f32 %v474_v56  ;;  %v1029_v56 = vperm.slane %v3200_v19, 6 }
 0x233   :  { %v3311_v30 = vpop.eup %2898  ;;  %519 = vperm.xlu0 %2830, %v3309_v17   ;;  %2910 = vpow2.f32 %v476_v44 }
 0x234   :  { %522 = vperm.xlu1 %2831, %v3311_v30   ;;  %v3316_v34 = vpop.eup %2900  ;;  %2912 = vpow2.f32 %v472_v4 }
 0x235   :  { %v3321_v48 = vpop.eup %2902 }
 0x236   :  { %516 = vperm.xlu2 %2829, %v3316_v34   ;;  %v3323_v18 = vpop.eup %2904 }
 0x237   :  { %v3327_v47 = vpop.eup %2906 }
 0x238   :  { %v3330_v55 = vpop.eup %2908 }
 0x239   :  { %v3332_v36 = vpop.eup %2910 }
 0x23a   :  { %v3336_v54 = vpop.eup %2912 }
 0x23b   :  { %528 = vperm.xlu0 %2830, %v3321_v48  }
 0x23c   :  { %531 = vperm.xlu1 %2831, %v3323_v18  }
 0x23e   :  { %525 = vperm.xlu2 %2829, %v3327_v47  }
 0x243   :  { %537 = vperm.xlu0 %2830, %v3330_v55  }
 0x244   :  { %540 = vperm.xlu1 %2831, %v3332_v36  }
 0x246   :  { %534 = vperm.xlu2 %2829, %v3336_v54  }
 0x24b   :  { %2834 = vset.pattern.permute.xlu0 %v3154_v61 }
 0x24c   :  { %2832 = vset.pattern.permute.xlu1 %v3154_v61 }
 0x24e   :  { %2833 = vset.pattern.permute.xlu2 %v3154_v61 }
 0x253   :  { %844 = vperm.xlu0 %2834, %v831_v46  }
 0x254   :  { %706 = vperm.xlu1 %2832, %v698_v26  }
 0x256   :  { %778 = vperm.xlu2 %2833, %v765_v27  }
 0x25b   :  { %2835 = vset.pattern.permute.xlu0 %v4560_v3 }
 0x25c   :  { %712 = vperm.xlu1 %2832, %v699_v60  }
 0x25e   :  { %970 = vperm.xlu2 %2833, %v962_v63  }
 0x264   :  { %772 = vperm.xlu1 %2832, %v764_v6  }
 0x266   :  { %1036 = vperm.xlu2 %2833, %v1028_v39  }
 0x26c   :  { %838 = vperm.xlu1 %2832, %v830_v40  }
 0x26e   :  { %1102 = vperm.xlu2 %2833, %v1094_v15  }
 0x274   :  { %904 = vperm.xlu1 %2832, %v896_v16  }
 0x276   :  { %2836 = vset.pattern.permute.xlu2 %v4560_v3 }
 0x278   :  { %v496_v21 = vpop.permute.xlu2 %495 }
 0x279   :  { %v542_v27 = vperm.slane %v496_v21, %v3205_v22 }
 0x27c   :  { %910 = vperm.xlu1 %2832, %v897_v41  }
 0x280   :  { %v505_v33 = vpop.permute.xlu2 %504 }
 0x281   :  { %v545_v15 = vperm.slane %v505_v33, %v3205_v22 }
 0x284   :  { %976 = vperm.xlu1 %2832, %v963_v11  }
 0x288   :  { %v511_v26 = vpop.permute.xlu2 %510 }
 0x289   :  { %v547_v21 = vperm.slane %v511_v26, %v3205_v22 }
 0x28c   :  { %1042 = vperm.xlu1 %2832, %v1029_v56  }
 0x28e   :  { %v502_v44 = vpop.permute.xlu1 %501 }
 0x28f   :  { %v499_v4 = vpop.permute.xlu0 %498  ;;  %v544_v60 = vperm.slane %v502_v44, %v3205_v22 }
 0x290   :  { %v543_v46 = vperm.slane %v499_v4, %v3205_v22  ;;  %v517_v19 = vpop.permute.xlu2 %516 }
 0x291   :  { %v549_v44 = vperm.slane %v517_v19, %v3205_v22 }
 0x292   :  { %v558_v63 = vsel %vm366_vm2, %v543_v46, %v542_v27 }
 0x293   :  { %v559_v39 = vsel %vm368_vm3, %v544_v60, %v558_v63 }
 0x294   :  { %1108 = vperm.xlu1 %2832, %v1095_v13   ;;  %v560_v16 = vsel %vm370_vm4, %v545_v15, %v559_v39 }
 0x296   :  { %v508_v6 = vpop.permute.xlu1 %507 }
 0x297   :  { %v546_v40 = vperm.slane %v508_v6, %v3205_v22 }
 0x298   :  { %v526_v63 = vpop.permute.xlu2 %525 }
 0x299   :  { %v561_v41 = vsel %vm372_vm5, %v546_v40, %v560_v16  ;;  %v552_v15 = vperm.slane %v526_v63, %v3205_v22 }
 0x29a   :  { %v562_v4 = vsel %vm374_vm6, %v547_v21, %v561_v41 }
 0x29c   :  { %2837 = vset.pattern.permute.xlu1 %v4560_v3 }
 0x29e   :  { %v514_v11 = vpop.permute.xlu1 %513 }
 0x29f   :  { %v548_v56 = vperm.slane %v514_v11, %v3205_v22 }
 0x2a1   :  { %v563_v46 = vsel %vm376_vm7, %v548_v56, %v562_v4  ;;  %v535_v56 = vpop.permute.xlu2 %534 }
 0x2a2   :  { %v564_v33 = vsel %vm378_vm8, %v549_v44, %v563_v46  ;;  %v555_v4 = vperm.slane %v535_v56, %v3205_v22 }
 0x2a3   :  { %v574_v13 = vsel %vm4590_vm9, %v564_v33, 0.0 }
 0x2a4   :  { %575 = vadd.xlane.f32.xlu2 %v574_v13 }
 0x2a5   :  { %v520_v27 = vpop.permute.xlu0 %519 }
 0x2a6   :  { %v523_v60 = vpop.permute.xlu1 %522  ;;  %v550_v6 = vperm.slane %v520_v27, %v3205_v22 }
 0x2a7   :  { %v551_v26 = vperm.slane %v523_v60, %v3205_v22 }
 0x2a9   :  { %v565_v39 = vsel %vm366_vm2, %v551_v26, %v550_v6 }
 0x2aa   :  { %v566_v41 = vsel %vm368_vm3, %v552_v15, %v565_v39 }
 0x2ad   :  { %v529_v40 = vpop.permute.xlu0 %528 }
 0x2ae   :  { %v553_v16 = vperm.slane %v529_v40, %v3205_v22  ;;  %v532_v19 = vpop.permute.xlu1 %531 }
 0x2af   :  { %v554_v21 = vperm.slane %v532_v19, %v3205_v22 }
 0x2b0   :  { %v567_v11 = vsel %vm370_vm4, %v553_v16, %v566_v41  ;;  %v3391_v39 = vpop.permute.xlu2 %778 }
 0x2b1   :  { %v568_v44 = vsel %vm372_vm5, %v554_v21, %v567_v11 }
 0x2b2   :  { %v569_v60 = vsel %vm374_vm6, %v555_v4, %v568_v44 }
 0x2b5   :  { %v538_v46 = vpop.permute.xlu0 %537 }
 0x2b6   :  { %v556_v33 = vperm.slane %v538_v46, %v3205_v22  ;;  %v541_v13 = vpop.permute.xlu1 %540 }
 0x2b7   :  { %v557_v27 = vperm.slane %v541_v13, %v3205_v22 }
 0x2b8   :  { %v570_v63 = vsel %vm376_vm7, %v556_v33, %v569_v60  ;;  %v3393_v40 = vpop.permute.xlu2 %970 }
 0x2b9   :  { %v571_v6 = vsel %vm378_vm8, %v557_v27, %v570_v63 }
 0x2ba   :  { %v577_v26 = vsel %vm4590_vm9, %v571_v6, 0.0 }
 0x2bb   :  { %578 = vadd.xlane.f32.xlu0 %v577_v26 }
 0x2c0   :  { %v3397_v16 = vpop.permute.xlu2 %1036 }
 0x2c6   :  { %v3395_v15 = vpop.permute.xlu1 %706 }
 0x2c8   :  { %v3401_v41 = vpop.permute.xlu2 %1102 }
 0x2ce   :  { %v3399_v19 = vpop.permute.xlu1 %712 }
 0x2d6   :  { %v3403_v21 = vpop.permute.xlu1 %772 }
 0x2de   :  { %v3405_v56 = vpop.permute.xlu1 %838 }
 0x317   :  { %v576_v11 = vpop.xlane.xlu2 %575 }
 0x318   :  { %2914 = vrcp.f32 %v576_v11 }
 0x31e   :  { %v3407_v44 = vpop.eup %2914 }
 0x31f   :  { %v586_v4 = vperm.slane %v3407_v44, 2  ;;  %v585_v46 = vperm.slane %v3407_v44, 1  ;;  %v584_v33 = vperm.slane %v3407_v44, 0  ;;  %v588_v13 = vperm.slane %v3407_v44, 4 }
 0x320   :  { %v587_v60 = vperm.slane %v3407_v44, 3  ;;  %v589_v26 = vperm.slane %v3407_v44, 5  ;;  %v591_v11 = vperm.slane %v3407_v44, 7 }
 0x321   :  { %v618_v27 = vmul.f32 %v3278_v50, %v586_v4  ;;  %v617_v63 = vmul.f32 %v3280_v28, %v585_v46  ;;  %v3417_v6 = vmul.f32 %v3283_v2, %v584_v33  ;;  %v3422_v50 = vmul.f32 %v3291_v10, %v588_v13  ;;  %v3437_v10 = vpop.permute.xlu0 %844  ;;  %v3439_v13 = vpop.permute.xlu1 %904 }
 0x322   :  { %v3427_v46 = vmul.f32 %v3294_v62, %v587_v60  ;;  %v3432_v43 = vmul.f32 %v3304_v9, %v589_v26  ;;  %v3435_v45 = vmul.f32 %v3316_v34, %v591_v11 }
 0x323   :  { %v634_v3 = vperm.slane %v618_v27, 0  ;;  %v684_v8 = vperm.slane %v618_v27, 1  ;;  %v750_v7 = vperm.slane %v618_v27, 2  ;;  %v816_v1 = vperm.slane %v618_v27, 3 }
 0x324   :  { %v882_v24 = vperm.slane %v618_v27, 4  ;;  %v948_v23 = vperm.slane %v618_v27, 5  ;;  %v1014_v52 = vperm.slane %v618_v27, 6  ;;  %v1080_v2 = vperm.slane %v618_v27, 7 }
 0x325   :  { %v668_v4 = vmul.f32 %v3275_v38, %v634_v3  ;;  %v718_v28 = vmul.f32 %v3395_v15, %v684_v8  ;;  %v784_v33 = vmul.f32 %v3403_v21, %v750_v7  ;;  %v850_v51 = vmul.f32 %v3405_v56, %v816_v1 }
 0x326   :  { %v633_v8 = vperm.slane %v617_v63, 0  ;;  %v683_v27 = vperm.slane %v617_v63, 1  ;;  %v749_v42 = vperm.slane %v617_v63, 2  ;;  %v916_v62 = vmul.f32 %v3439_v13, %v882_v24 }
 0x327   :  { %v734_v3 = vadd.f32 %v718_v28, %v668_v4  ;;  %v982_v7 = vmul.f32 %v3393_v40, %v948_v23  ;;  %v1048_v1 = vmul.f32 %v3397_v16, %v1014_v52  ;;  %v815_v60 = vperm.slane %v617_v63, 3 }
 0x328   :  { %v1114_v26 = vmul.f32 %v3401_v41, %v1080_v2  ;;  %v667_v34 = vmul.f32 %v3275_v38, %v633_v8  ;;  %v717_v11 = vmul.f32 %v3395_v15, %v683_v27  ;;  %v783_v32 = vmul.f32 %v3403_v21, %v749_v42 }
 0x329   :  { %v800_v9 = vadd.f32 %v784_v33, %v734_v3  ;;  %v881_v4 = vperm.slane %v617_v63, 4  ;;  %v947_v28 = vperm.slane %v617_v63, 5  ;;  %v1013_v0 = vperm.slane %v617_v63, 6 }
 0x32a   :  { %v733_v58 = vadd.f32 %v717_v11, %v667_v34  ;;  %v1079_v24 = vperm.slane %v617_v63, 7  ;;  %v632_v23 = vperm.slane %v3417_v6, 0  ;;  %v849_v52 = vmul.f32 %v3405_v56, %v815_v60 }
 0x32b   :  { %v866_v35 = vadd.f32 %v850_v51, %v800_v9  ;;  %v682_v33 = vperm.slane %v3417_v6, 1  ;;  %v748_v2 = vperm.slane %v3417_v6, 2  ;;  %v814_v3 = vperm.slane %v3417_v6, 3 }
 0x32c   :  { %v799_v27 = vadd.f32 %v783_v32, %v733_v58  ;;  %v666_v42 = vmul.f32 %v3275_v38, %v632_v23  ;;  %v880_v31 = vperm.slane %v3417_v6, 4  ;;  %v915_v51 = vmul.f32 %v3439_v13, %v881_v4 }
 0x32d   :  { %v932_v8 = vadd.f32 %v916_v62, %v866_v35  ;;  %v981_v63 = vmul.f32 %v3393_v40, %v947_v28  ;;  %v1047_v9 = vmul.f32 %v3397_v16, %v1013_v0  ;;  %v716_v60 = vmul.f32 %v3395_v15, %v682_v33 }
 0x32e   :  { %v579_v34 = vpop.xlane.xlu0 %578  ;;  %v865_v49 = vadd.f32 %v849_v52, %v799_v27  ;;  %v1113_v59 = vmul.f32 %v3401_v41, %v1079_v24  ;;  %v782_v35 = vmul.f32 %v3403_v21, %v748_v2  ;;  %v848_v58 = vmul.f32 %v3405_v56, %v814_v3 }
 0x32f   :  { %v998_v11 = vadd.f32 %v982_v7, %v932_v8  ;;  %v732_v32 = vadd.f32 %v716_v60, %v666_v42  ;;  %v946_v62 = vperm.slane %v3417_v6, 5  ;;  %v636_v4 = vperm.slane %v3422_v50, 0 }
 0x330   :  { %v931_v28 = vadd.f32 %v915_v51, %v865_v49  ;;  %v914_v0 = vmul.f32 %v3439_v13, %v880_v31  ;;  %v686_v33 = vperm.slane %v3422_v50, 1  ;;  %2916 = vrcp.f32 %v579_v34 }
 0x331   :  { %v1064_v23 = vadd.f32 %v1048_v1, %v998_v11  ;;  %v798_v7 = vadd.f32 %v782_v35, %v732_v32  ;;  %v1012_v52 = vperm.slane %v3417_v6, 6  ;;  %v670_v24 = vmul.f32 %v3275_v38, %v636_v4 }
 0x332   :  { %v997_v8 = vadd.f32 %v981_v63, %v931_v28  ;;  %v720_v3 = vmul.f32 %v3395_v15, %v686_v33  ;;  %v752_v27 = vperm.slane %v3422_v50, 2  ;;  %v980_v1 = vmul.f32 %v3393_v40, %v946_v62 }
 0x333   :  { %v1130_v2 = vadd.f32 %v1114_v26, %v1064_v23  ;;  %v864_v42 = vadd.f32 %v848_v58, %v798_v7  ;;  %v1078_v49 = vperm.slane %v3417_v6, 7  ;;  %v818_v31 = vperm.slane %v3422_v50, 3 }
 0x334   :  { %v1063_v51 = vadd.f32 %v1047_v9, %v997_v8  ;;  %v736_v60 = vadd.f32 %v720_v3, %v670_v24  ;;  %v786_v34 = vmul.f32 %v3403_v21, %v752_v27  ;;  %v884_v11 = vperm.slane %v3422_v50, 4  ;;  %v3491_v27 = vpop.permute.xlu1 %910 }
 0x335   :  { %1167 = vperm.xlu1 %2837, %v1130_v2   ;;  %v930_v26 = vadd.f32 %v914_v0, %v864_v42  ;;  %v1046_v63 = vmul.f32 %v3397_v16, %v1012_v52  ;;  %v950_v35 = vperm.slane %v3422_v50, 5  ;;  %v1016_v32 = vperm.slane %v3422_v50, 6 }
 0x336   :  { %v1129_v58 = vadd.f32 %v1113_v59, %v1063_v51  ;;  %v802_v62 = vadd.f32 %v786_v34, %v736_v60  ;;  %v852_v6 = vmul.f32 %v3405_v56, %v818_v31  ;;  %v1082_v4 = vperm.slane %v3422_v50, 7  ;;  %v3480_v23 = vpop.eup %2916 }
 0x337   :  { %v996_v9 = vadd.f32 %v980_v1, %v930_v26  ;;  %v635_v28 = vperm.slane %v3427_v46, 0  ;;  %v685_v33 = vperm.slane %v3427_v46, 1  ;;  %v751_v0 = vperm.slane %v3427_v46, 2 }
 0x338   :  { %1164 = vperm.xlu2 %2836, %v1129_v58   ;;  %v1112_v7 = vmul.f32 %v3401_v41, %v1078_v49  ;;  %v868_v52 = vadd.f32 %v852_v6, %v802_v62  ;;  %v918_v59 = vmul.f32 %v3439_v13, %v884_v11  ;;  %v817_v24 = vperm.slane %v3427_v46, 3 }
 0x339   :  { %v1062_v2 = vadd.f32 %v1046_v63, %v996_v9  ;;  %v984_v50 = vmul.f32 %v3393_v40, %v950_v35  ;;  %v669_v8 = vmul.f32 %v3275_v38, %v635_v28  ;;  %v719_v3 = vmul.f32 %v3395_v15, %v685_v33 }
 0x33a   :  { %v934_v42 = vadd.f32 %v918_v59, %v868_v52  ;;  %v1050_v1 = vmul.f32 %v3397_v16, %v1016_v32  ;;  %v1116_v31 = vmul.f32 %v3401_v41, %v1082_v4  ;;  %v883_v49 = vperm.slane %v3427_v46, 4 }
 0x33b   :  { %v1128_v51 = vadd.f32 %v1112_v7, %v1062_v2  ;;  %v735_v60 = vadd.f32 %v719_v3, %v669_v8  ;;  %v785_v34 = vmul.f32 %v3403_v21, %v751_v0  ;;  %v851_v11 = vmul.f32 %v3405_v56, %v817_v24 }
 0x33c   :  { %v1000_v26 = vadd.f32 %v984_v50, %v934_v42  ;;  %v949_v63 = vperm.slane %v3427_v46, 5  ;;  %v637_v35 = vperm.slane %v3432_v43, 0  ;;  %v687_v58 = vperm.slane %v3432_v43, 1 }
 0x33d   :  { %1161 = vperm.xlu0 %2835, %v1128_v51   ;;  %v801_v62 = vadd.f32 %v785_v34, %v735_v60  ;;  %v1015_v32 = vperm.slane %v3427_v46, 6  ;;  %v1081_v6 = vperm.slane %v3427_v46, 7  ;;  %v753_v4 = vperm.slane %v3432_v43, 2 }
 0x33e   :  { %v1066_v9 = vadd.f32 %v1050_v1, %v1000_v26  ;;  %v671_v28 = vmul.f32 %v3275_v38, %v637_v35  ;;  %v721_v33 = vmul.f32 %v3395_v15, %v687_v58  ;;  %v819_v0 = vperm.slane %v3432_v43, 3  ;;  %v3521_v58 = vpop.permute.xlu1 %976 }
 0x33f   :  { %v867_v7 = vadd.f32 %v851_v11, %v801_v62  ;;  %v917_v52 = vmul.f32 %v3439_v13, %v883_v49  ;;  %v885_v59 = vperm.slane %v3432_v43, 4  ;;  %v951_v24 = vperm.slane %v3432_v43, 5 }
 0x340   :  { %v1132_v2 = vadd.f32 %v1116_v31, %v1066_v9  ;;  %v983_v50 = vmul.f32 %v3393_v40, %v949_v63  ;;  %v737_v46 = vadd.f32 %v721_v33, %v671_v28  ;;  %v787_v8 = vmul.f32 %v3403_v21, %v753_v4 }
 0x341   :  { %v933_v3 = vadd.f32 %v917_v52, %v867_v7  ;;  %v1049_v42 = vmul.f32 %v3397_v16, %v1015_v32  ;;  %v1115_v1 = vmul.f32 %v3401_v41, %v1081_v6  ;;  %v853_v51 = vmul.f32 %v3405_v56, %v819_v0 }
 0x342   :  { %1173 = vperm.xlu1 %2837, %v1132_v2   ;;  %v803_v60 = vadd.f32 %v787_v8, %v737_v46  ;;  %v1017_v49 = vperm.slane %v3432_v43, 6  ;;  %v639_v34 = vperm.slane %v3435_v45, 0  ;;  %v689_v31 = vperm.slane %v3435_v45, 1 }
 0x343   :  { %v999_v11 = vadd.f32 %v983_v50, %v933_v3  ;;  %v919_v26 = vmul.f32 %v3439_v13, %v885_v59  ;;  %v985_v63 = vmul.f32 %v3393_v40, %v951_v24  ;;  %v755_v35 = vperm.slane %v3435_v45, 2 }
 0x344   :  { %v869_v62 = vadd.f32 %v853_v51, %v803_v60  ;;  %v673_v32 = vmul.f32 %v3275_v38, %v639_v34  ;;  %v723_v6 = vmul.f32 %v3395_v15, %v689_v31  ;;  %v821_v4 = vperm.slane %v3435_v45, 3 }
 0x345   :  { %v1065_v9 = vadd.f32 %v1049_v42, %v999_v11  ;;  %v1083_v28 = vperm.slane %v3432_v43, 7  ;;  %v887_v33 = vperm.slane %v3435_v45, 4  ;;  %v953_v0 = vperm.slane %v3435_v45, 5 }
 0x346   :  { %v935_v7 = vadd.f32 %v919_v26, %v869_v62  ;;  %v739_v52 = vadd.f32 %v723_v6, %v673_v32  ;;  %v789_v59 = vmul.f32 %v3403_v21, %v755_v35  ;;  %v1019_v24 = vperm.slane %v3435_v45, 6 }
 0x347   :  { %v1131_v2 = vadd.f32 %v1115_v1, %v1065_v9  ;;  %v1051_v50 = vmul.f32 %v3397_v16, %v1017_v49  ;;  %v1085_v46 = vperm.slane %v3435_v45, 7  ;;  %v590_v8 = vperm.slane %v3407_v44, 6 }
 0x348   :  { %v1001_v3 = vadd.f32 %v985_v63, %v935_v7  ;;  %v805_v42 = vadd.f32 %v789_v59, %v739_v52  ;;  %v855_v43 = vmul.f32 %v3405_v56, %v821_v4  ;;  %v592_v51 = vperm.slane %v3480_v23, 0  ;;  %v3548_v7 = vpop.permute.xlu1 %1042 }
 0x349   :  { %1170 = vperm.xlu2 %2836, %v1131_v2   ;;  %v1117_v60 = vmul.f32 %v3401_v41, %v1083_v28  ;;  %v921_v34 = vmul.f32 %v3439_v13, %v887_v33  ;;  %v987_v31 = vmul.f32 %v3393_v40, %v953_v0  ;;  %v622_v1 = vmul.f32 %v3300_v57, %v590_v8 }
 0x34a   :  { %v1067_v49 = vadd.f32 %v1051_v50, %v1001_v3  ;;  %v871_v11 = vadd.f32 %v855_v43, %v805_v42  ;;  %v1053_v45 = vmul.f32 %v3397_v16, %v1019_v24  ;;  %v1119_v44 = vmul.f32 %v3401_v41, %v1085_v46 }
 0x34b   :  { %v638_v26 = vperm.slane %v622_v1, 0  ;;  %v688_v63 = vperm.slane %v622_v1, 1  ;;  %v754_v35 = vperm.slane %v622_v1, 2  ;;  %v624_v62 = vmul.f32 %v3309_v17, %v592_v51 }
 0x34c   :  { %v1133_v32 = vadd.f32 %v1117_v60, %v1067_v49  ;;  %v937_v6 = vadd.f32 %v921_v34, %v871_v11  ;;  %v820_v4 = vperm.slane %v622_v1, 3  ;;  %v594_v9 = vperm.slane %v3480_v23, 2 }
 0x34d   :  { %v672_v28 = vmul.f32 %v3275_v38, %v638_v26  ;;  %v722_v57 = vmul.f32 %v3395_v15, %v688_v63  ;;  %v593_v33 = vperm.slane %v3480_v23, 1  ;;  %v595_v0 = vperm.slane %v3480_v23, 3 }
 0x34e   :  { %1176 = vperm.xlu0 %2835, %v1133_v32   ;;  %v1003_v52 = vadd.f32 %v987_v31, %v937_v6  ;;  %v788_v59 = vmul.f32 %v3403_v21, %v754_v35  ;;  %v886_v17 = vperm.slane %v622_v1, 4  ;;  %v952_v24 = vperm.slane %v622_v1, 5 }
 0x34f   :  { %v738_v2 = vadd.f32 %v722_v57, %v672_v28  ;;  %v1018_v50 = vperm.slane %v622_v1, 6  ;;  %v640_v46 = vperm.slane %v624_v62, 0  ;;  %v690_v8 = vperm.slane %v624_v62, 1 }
 0x350   :  { %v1069_v3 = vadd.f32 %v1053_v45, %v1003_v52  ;;  %v854_v38 = vmul.f32 %v3405_v56, %v820_v4  ;;  %v1084_v15 = vperm.slane %v622_v1, 7  ;;  %v756_v42 = vperm.slane %v624_v62, 2 }
 0x351   :  { %v804_v43 = vadd.f32 %v788_v59, %v738_v2  ;;  %v674_v51 = vmul.f32 %v3285_v5, %v640_v46  ;;  %v724_v60 = vmul.f32 %v3399_v19, %v690_v8  ;;  %v822_v34 = vperm.slane %v624_v62, 3 }
 0x352   :  { %v1135_v31 = vadd.f32 %v1119_v44, %v1069_v3  ;;  %v920_v21 = vmul.f32 %v3439_v13, %v886_v17  ;;  %v986_v49 = vmul.f32 %v3393_v40, %v952_v24  ;;  %v888_v11 = vperm.slane %v624_v62, 4 }
 0x353   :  { %v870_v26 = vadd.f32 %v854_v38, %v804_v43  ;;  %v1052_v63 = vmul.f32 %v3397_v16, %v1018_v50  ;;  %v740_v45 = vadd.f32 %v724_v60, %v674_v51  ;;  %v790_v56 = vmul.f32 %v3391_v39, %v756_v42 }
 0x354   :  { %1182 = vperm.xlu1 %2837, %v1135_v31   ;;  %v1118_v1 = vmul.f32 %v3401_v41, %v1084_v15  ;;  %v954_v35 = vperm.slane %v624_v62, 5  ;;  %v1020_v32 = vperm.slane %v624_v62, 6  ;;  %v626_v6 = vmul.f32 %v3327_v47, %v594_v9  ;;  %v3565_v41 = vpop.permute.xlu1 %1108 }
 0x355   :  { %v936_v4 = vadd.f32 %v920_v21, %v870_v26  ;;  %v806_v44 = vadd.f32 %v790_v56, %v740_v45  ;;  %v856_v13 = vmul.f32 %v3437_v10, %v822_v34  ;;  %v1086_v28 = vperm.slane %v624_v62, 7 }
 0x356   :  { %v922_v40 = vmul.f32 %v3491_v27, %v888_v11  ;;  %v642_v57 = vperm.slane %v626_v6, 0  ;;  %v692_v52 = vperm.slane %v626_v6, 1  ;;  %v758_v16 = vperm.slane %v626_v6, 2 }
 0x357   :  { %v1002_v59 = vadd.f32 %v986_v49, %v936_v4  ;;  %v872_v17 = vadd.f32 %v856_v13, %v806_v44  ;;  %v824_v24 = vperm.slane %v626_v6, 3  ;;  %v3563_v2 = vmul.f32 %v3311_v30, %v593_v33 }
 0x358   :  { %v988_v47 = vmul.f32 %v3521_v58, %v954_v35  ;;  %v1054_v9 = vmul.f32 %v3548_v7, %v1020_v32  ;;  %v676_v50 = vmul.f32 %v3285_v5, %v642_v57  ;;  %v726_v62 = vmul.f32 %v3399_v19, %v692_v52 }
 0x359   :  { %v1068_v46 = vadd.f32 %v1052_v63, %v1002_v59  ;;  %v938_v8 = vadd.f32 %v922_v40, %v872_v17  ;;  %v1120_v3 = vmul.f32 %v3565_v41, %v1086_v28  ;;  %v890_v38 = vperm.slane %v626_v6, 4 }
 0x35a   :  { %v742_v15 = vadd.f32 %v726_v62, %v676_v50  ;;  %v792_v42 = vmul.f32 %v3391_v39, %v758_v16  ;;  %v858_v30 = vmul.f32 %v3437_v10, %v824_v24  ;;  %v956_v33 = vperm.slane %v626_v6, 5 }
 0x35b   :  { %v1134_v43 = vadd.f32 %v1118_v1, %v1068_v46  ;;  %v1004_v51 = vadd.f32 %v988_v47, %v938_v8  ;;  %v641_v60 = vperm.slane %v3563_v2, 0  ;;  %v691_v34 = vperm.slane %v3563_v2, 1 }
 0x35c   :  { %v808_v31 = vadd.f32 %v792_v42, %v742_v15  ;;  %v1022_v21 = vperm.slane %v626_v6, 6  ;;  %v1088_v49 = vperm.slane %v626_v6, 7  ;;  %v757_v11 = vperm.slane %v3563_v2, 2 }
 0x35d   :  { %1179 = vperm.xlu2 %2836, %v1134_v43   ;;  %v1070_v26 = vadd.f32 %v1054_v9, %v1004_v51  ;;  %v675_v63 = vmul.f32 %v3285_v5, %v641_v60  ;;  %v725_v45 = vmul.f32 %v3399_v19, %v691_v34  ;;  %v823_v56 = vperm.slane %v3563_v2, 3 }
 0x35e   :  { %v874_v35 = vadd.f32 %v858_v30, %v808_v31  ;;  %v924_v1 = vmul.f32 %v3491_v27, %v890_v38  ;;  %v889_v32 = vperm.slane %v3563_v2, 4  ;;  %v955_v4 = vperm.slane %v3563_v2, 5 }
 0x35f   :  { %v1136_v44 = vadd.f32 %v1120_v3, %v1070_v26  ;;  %v741_v13 = vadd.f32 %v725_v45, %v675_v63  ;;  %v791_v6 = vmul.f32 %v3391_v39, %v757_v11  ;;  %v990_v40 = vmul.f32 %v3521_v58, %v956_v33 }
 0x360   :  { %v940_v28 = vadd.f32 %v924_v1, %v874_v35  ;;  %v1056_v57 = vmul.f32 %v3548_v7, %v1022_v21  ;;  %v1122_v52 = vmul.f32 %v3565_v41, %v1088_v49  ;;  %v857_v59 = vmul.f32 %v3437_v10, %v823_v56 }
 0x361   :  { %1185 = vperm.xlu0 %2835, %v1136_v44   ;;  %v807_v16 = vadd.f32 %v791_v6, %v741_v13  ;;  %v3591_v17 = vmul.f32 %v3321_v48, %v595_v0  ;;  %v923_v47 = vmul.f32 %v3491_v27, %v889_v32  ;;  %v989_v9 = vmul.f32 %v3521_v58, %v955_v4 }
 0x362   :  { %v1006_v24 = vadd.f32 %v990_v40, %v940_v28  ;;  %v1021_v50 = vperm.slane %v3563_v2, 6  ;;  %v1087_v15 = vperm.slane %v3563_v2, 7  ;;  %v597_v0 = vperm.slane %v3480_v23, 5 }
 0x363   :  { %v873_v62 = vadd.f32 %v857_v59, %v807_v16  ;;  %v643_v46 = vperm.slane %v3591_v17, 0  ;;  %v693_v8 = vperm.slane %v3591_v17, 1  ;;  %v759_v3 = vperm.slane %v3591_v17, 2 }
 0x364   :  { %v1072_v38 = vadd.f32 %v1056_v57, %v1006_v24  ;;  %v825_v48 = vperm.slane %v3591_v17, 3  ;;  %v891_v43 = vperm.slane %v3591_v17, 4  ;;  %v1055_v60 = vmul.f32 %v3548_v7, %v1021_v50 }
 0x365   :  { %v939_v42 = vadd.f32 %v923_v47, %v873_v62  ;;  %v677_v30 = vmul.f32 %v3285_v5, %v643_v46  ;;  %v727_v33 = vmul.f32 %v3399_v19, %v693_v8  ;;  %v596_v34 = vperm.slane %v3480_v23, 4 }
 0x366   :  { %v1138_v51 = vadd.f32 %v1122_v52, %v1072_v38  ;;  %v793_v2 = vmul.f32 %v3391_v39, %v759_v3  ;;  %v957_v49 = vperm.slane %v3591_v17, 5  ;;  %v1121_v11 = vmul.f32 %v3565_v41, %v1087_v15 }
 0x367   :  { %v1005_v31 = vadd.f32 %v989_v9, %v939_v42  ;;  %v743_v21 = vadd.f32 %v727_v33, %v677_v30  ;;  %v859_v26 = vmul.f32 %v3437_v10, %v825_v48  ;;  %v3612_v63 = vmul.f32 %v3336_v54, %v597_v0 }
 0x368   :  { %1191 = vperm.xlu1 %2837, %v1138_v51   ;;  %v598_v45 = vperm.slane %v3480_v23, 6  ;;  %v925_v1 = vmul.f32 %v3491_v27, %v891_v43  ;;  %v1023_v32 = vperm.slane %v3591_v17, 6  ;;  %v3621_v6 = vmul.f32 %v3323_v18, %v596_v34 }
 0x369   :  { %v1071_v56 = vadd.f32 %v1055_v60, %v1005_v31  ;;  %v809_v35 = vadd.f32 %v793_v2, %v743_v21  ;;  %v645_v4 = vperm.slane %v3612_v63, 0  ;;  %v695_v44 = vperm.slane %v3612_v63, 1 }
 0x36a   :  { %v761_v13 = vperm.slane %v3612_v63, 2  ;;  %v991_v40 = vmul.f32 %v3521_v58, %v957_v49  ;;  %v827_v57 = vperm.slane %v3612_v63, 3  ;;  %v1089_v52 = vperm.slane %v3591_v17, 7 }
 0x36b   :  { %v1137_v28 = vadd.f32 %v1121_v11, %v1071_v56  ;;  %v875_v54 = vadd.f32 %v859_v26, %v809_v35  ;;  %v679_v16 = vmul.f32 %v3285_v5, %v645_v4  ;;  %v729_v59 = vmul.f32 %v3399_v19, %v695_v44 }
 0x36c   :  { %v3629_v24 = vmul.f32 %v3330_v55, %v598_v45  ;;  %v1057_v18 = vmul.f32 %v3548_v7, %v1023_v32  ;;  %v893_v9 = vperm.slane %v3612_v63, 4  ;;  %v599_v50 = vperm.slane %v3480_v23, 7 }
 0x36d   :  { %1188 = vperm.xlu2 %2836, %v1137_v28   ;;  %v941_v47 = vadd.f32 %v925_v1, %v875_v54  ;;  %v745_v62 = vadd.f32 %v729_v59, %v679_v16  ;;  %v795_v46 = vmul.f32 %v3391_v39, %v761_v13  ;;  %v644_v17 = vperm.slane %v3621_v6, 0 }
 0x36e   :  { %v694_v8 = vperm.slane %v3621_v6, 1  ;;  %v861_v38 = vmul.f32 %v3437_v10, %v827_v57  ;;  %v959_v55 = vperm.slane %v3612_v63, 5  ;;  %v760_v15 = vperm.slane %v3621_v6, 2 }
 0x36f   :  { %v1007_v3 = vadd.f32 %v991_v40, %v941_v47  ;;  %v811_v48 = vadd.f32 %v795_v46, %v745_v62  ;;  %v678_v0 = vmul.f32 %v3285_v5, %v644_v17  ;;  %v826_v23 = vperm.slane %v3621_v6, 3 }
 0x370   :  { %v728_v42 = vmul.f32 %v3399_v19, %v694_v8  ;;  %v1123_v33 = vmul.f32 %v3565_v41, %v1089_v52  ;;  %v927_v43 = vmul.f32 %v3491_v27, %v893_v9  ;;  %v1025_v51 = vperm.slane %v3612_v63, 6 }
 0x371   :  { %v1073_v30 = vadd.f32 %v1057_v18, %v1007_v3  ;;  %v877_v60 = vadd.f32 %v861_v38, %v811_v48  ;;  %v794_v31 = vmul.f32 %v3391_v39, %v760_v15  ;;  %v892_v21 = vperm.slane %v3621_v6, 4 }
 0x372   :  { %v744_v34 = vadd.f32 %v728_v42, %v678_v0  ;;  %v993_v49 = vmul.f32 %v3521_v58, %v959_v55  ;;  %v1091_v11 = vperm.slane %v3612_v63, 7  ;;  %v646_v26 = vperm.slane %v3629_v24, 0 }
 0x373   :  { %v1139_v2 = vadd.f32 %v1123_v33, %v1073_v30  ;;  %v943_v45 = vadd.f32 %v927_v43, %v877_v60  ;;  %v860_v35 = vmul.f32 %v3437_v10, %v826_v23  ;;  %v958_v1 = vperm.slane %v3621_v6, 5 }
 0x374   :  { %v810_v56 = vadd.f32 %v794_v31, %v744_v34  ;;  %v1059_v32 = vmul.f32 %v3548_v7, %v1025_v51  ;;  %v680_v4 = vmul.f32 %v3285_v5, %v646_v26  ;;  %v696_v44 = vperm.slane %v3629_v24, 1 }
 0x375   :  { %1194 = vperm.xlu0 %2835, %v1139_v2   ;;  %v762_v13 = vperm.slane %v3629_v24, 2  ;;  %v1009_v28 = vadd.f32 %v993_v49, %v943_v45  ;;  %v926_v63 = vmul.f32 %v3491_v27, %v892_v21  ;;  %v1024_v40 = vperm.slane %v3621_v6, 6 }
 0x376   :  { %v876_v54 = vadd.f32 %v860_v35, %v810_v56  ;;  %v1090_v57 = vperm.slane %v3621_v6, 7  ;;  %v730_v52 = vmul.f32 %v3399_v19, %v696_v44  ;;  %v828_v16 = vperm.slane %v3629_v24, 3 }
 0x377   :  { %v1075_v59 = vadd.f32 %v1059_v32, %v1009_v28  ;;  %v1125_v47 = vmul.f32 %v3565_v41, %v1091_v11  ;;  %v992_v9 = vmul.f32 %v3521_v58, %v958_v1  ;;  %v796_v46 = vmul.f32 %v3391_v39, %v762_v13 }
 0x378   :  { %v942_v18 = vadd.f32 %v926_v63, %v876_v54  ;;  %v746_v62 = vadd.f32 %v730_v52, %v680_v4  ;;  %v894_v17 = vperm.slane %v3629_v24, 4  ;;  %v1058_v38 = vmul.f32 %v3548_v7, %v1024_v40 }
 0x379   :  { %v1141_v8 = vadd.f32 %v1125_v47, %v1075_v59  ;;  %v631_v6 = vmul.f32 %v3332_v36, %v599_v50  ;;  %v1124_v55 = vmul.f32 %v3565_v41, %v1090_v57  ;;  %v862_v48 = vmul.f32 %v3437_v10, %v828_v16 }
 0x37a   :  { %v1008_v3 = vadd.f32 %v992_v9, %v942_v18  ;;  %v812_v15 = vadd.f32 %v796_v46, %v746_v62  ;;  %v960_v0 = vperm.slane %v3629_v24, 5  ;;  %v928_v51 = vmul.f32 %v3491_v27, %v894_v17 }
 0x37b   :  { %1200 = vperm.xlu1 %2837, %v1141_v8   ;;  %v647_v23 = vperm.slane %v631_v6, 0  ;;  %v697_v30 = vperm.slane %v631_v6, 1  ;;  %v763_v33 = vperm.slane %v631_v6, 2  ;;  %v1026_v60 = vperm.slane %v3629_v24, 6 }
 0x37c   :  { %v1074_v42 = vadd.f32 %v1058_v38, %v1008_v3  ;;  %v878_v43 = vadd.f32 %v862_v48, %v812_v15  ;;  %v829_v31 = vperm.slane %v631_v6, 3  ;;  %v994_v2 = vmul.f32 %v3521_v58, %v960_v0 }
 0x37d   :  { %v681_v36 = vmul.f32 %v3285_v5, %v647_v23  ;;  %v731_v50 = vmul.f32 %v3399_v19, %v697_v30  ;;  %v1092_v49 = vperm.slane %v3629_v24, 7  ;;  %v797_v26 = vmul.f32 %v3391_v39, %v763_v33 }
 0x37e   :  { %v1140_v34 = vadd.f32 %v1124_v55, %v1074_v42  ;;  %v944_v21 = vadd.f32 %v928_v51, %v878_v43  ;;  %v895_v45 = vperm.slane %v631_v6, 4  ;;  %v1060_v35 = vmul.f32 %v3548_v7, %v1026_v60  ;;  %v3704_v51 = vld [vmem:[%s4556_s1] sm:$0xff] }
 0x37f   :  { %v747_v11 = vadd.f32 %v731_v50, %v681_v36  ;;  %v863_v32 = vmul.f32 %v3437_v10, %v829_v31  ;;  %v961_v5 = vperm.slane %v631_v6, 5  ;;  %v1126_v19 = vmul.f32 %v3565_v41, %v1092_v49 }
 0x380   :  { %1197 = vperm.xlu2 %2836, %v1140_v34   ;;  %v1010_v56 = vadd.f32 %v994_v2, %v944_v21  ;;  %v929_v13 = vmul.f32 %v3491_v27, %v895_v45  ;;  %v1027_v28 = vperm.slane %v631_v6, 6  ;;  %v4606_v24 = vmov 1  }
 0x381   :  { %v813_v1 = vadd.f32 %v797_v26, %v747_v11  ;;  %v995_v39 = vmul.f32 %v3521_v58, %v961_v5  ;;  %v1093_v40 = vperm.slane %v631_v6, 7 }
 0x382   :  { %v1076_v4 = vadd.f32 %v1060_v35, %v1010_v56  ;;  %v1061_v52 = vmul.f32 %v3548_v7, %v1027_v28 }
 0x383   :  { %v879_v44 = vadd.f32 %v863_v32, %v813_v1  ;;  %2838 = vset.pattern.permute.xlu1 %v4606_v24  ;;  %v1127_v16 = vmul.f32 %v3565_v41, %v1093_v40 }
 0x384   :  { %v1142_v54 = vadd.f32 %v1126_v19, %v1076_v4 }
 0x385   :  { %v945_v63 = vadd.f32 %v929_v13, %v879_v44 }
 0x386   :  { %1203 = vperm.xlu0 %2835, %v1142_v54  }
 0x387   :  { %v1011_v57 = vadd.f32 %v995_v39, %v945_v63 }
 0x389   :  { %v1077_v10 = vadd.f32 %v1061_v52, %v1011_v57  ;;  %v3726_v57 = vld [vmem:[%s4556_s1 + $0x8] sm:$0xff] }
 0x38b   :  { %v1143_v59 = vadd.f32 %v1127_v16, %v1077_v10  ;;  %v2999_v16 = vmov 4.0  }
 0x38c   :  { %2918 = vrcp.f32 %v2999_v16 }
 0x38d   :  { %1206 = vperm.xlu2 %2836, %v1143_v59  }
 0x392   :  { %v1165_v47 = vpop.permute.xlu2 %1164  ;;  %v2919_v59 = vpop.eup %2918 }
 0x393   :  { %v1209_v62 = vperm.slane %v1165_v47, %v3205_v22  ;;  %v1249_v47 = vmul.f32 4.0, %v2919_v59  ;;  %vm1253_vm10 = vweird.f32 %v2919_v59 }
 0x3a3   :  { %v1171_v46 = vpop.permute.xlu2 %1170 }
 0x3a4   :  { %v1211_v41 = vperm.slane %v1171_v46, %v3205_v22 }
 0x3a7   :  { %v1168_v18 = vpop.permute.xlu1 %1167 }
 0x3a8   :  { %v1210_v58 = vperm.slane %v1168_v18, %v3205_v22  ;;  %v1250_v18 = vsub.f32 1.0, %v1249_v47  ;;  %v23_v47 = vld [vmem:[%s4554_s2 + $0x1c] sm:$0xf] }
 0x3af   :  { %v1162_v27 = vpop.permute.xlu0 %1161 }
 0x3b0   :  { %v1208_v9 = vperm.slane %v1162_v27, %v3205_v22  ;;  %v1251_v27 = vmul.f32 %v2919_v59, %v1250_v18 }
 0x3b2   :  { %v1224_v17 = vsel %vm366_vm2, %v1209_v62, %v1208_v9  ;;  %v1252_v9 = vadd.f32 %v2919_v59, %v1251_v27 }
 0x3b3   :  { %v1225_v7 = vsel %vm368_vm3, %v1210_v58, %v1224_v17 }
 0x3b4   :  { %v1174_v8 = vpop.permute.xlu1 %1173  ;;  %v1226_v6 = vsel %vm370_vm4, %v1211_v41, %v1225_v7  ;;  %v3730_v62 = vsel %vm1253_vm10, %v2919_v59, %v1252_v9  ;;  %v3000_v59 = vmov 8.0  }
 0x3b5   :  { %v1212_v3 = vperm.slane %v1174_v8, %v3205_v22 }
 0x3b7   :  { %v1227_v15 = vsel %vm372_vm5, %v1212_v3, %v1226_v6  ;;  %v1180_v48 = vpop.permute.xlu2 %1179 }
 0x3b8   :  { %v1214_v23 = vperm.slane %v1180_v48, %v3205_v22 }
 0x3c0   :  { %v1177_v38 = vpop.permute.xlu0 %1176 }
 0x3c1   :  { %v1213_v55 = vperm.slane %v1177_v38, %v3205_v22 }
 0x3c3   :  { %v1228_v0 = vsel %vm374_vm6, %v1213_v55, %v1227_v15 }
 0x3c4   :  { %v1229_v33 = vsel %vm376_vm7, %v1214_v23, %v1228_v0 }
 0x3c6   :  { %v1183_v42 = vpop.permute.xlu1 %1182 }
 0x3c7   :  { %v1215_v30 = vperm.slane %v1183_v42, %v3205_v22  ;;  %v1189_v36 = vpop.permute.xlu2 %1188 }
 0x3c8   :  { %v1217_v11 = vperm.slane %v1189_v36, %v3205_v22  ;;  %v2875_v36 = vld [vmem:[%s4554_s2 + $0x3c] ss:$0 sm:$0xff] }
 0x3c9   :  { %v1230_v43 = vsel %vm378_vm8, %v1215_v30, %v1229_v33 }
 0x3ca   :  { %v1240_v60 = vadd.f32 %v3704_v51, %v1230_v43 }
 0x3cc   :  { %v1242_v34 = vsel %vm283_vm1, %v1240_v60, 0.0 }
 0x3cd   :  { %1243 = vadd.xlane.f32.xlu1 %v1242_v34 }
 0x3d3   :  { %v1186_v50 = vpop.permute.xlu0 %1185 }
 0x3d4   :  { %v1216_v21 = vperm.slane %v1186_v50, %v3205_v22 }
 0x3d6   :  { %v1231_v45 = vsel %vm366_vm2, %v1217_v11, %v1216_v21  ;;  %v2876_v21 = vld [vmem:[%s4554_s2 + $0x3d] ss:$0 sm:$0xff] }
 0x3da   :  { %v1192_v31 = vpop.permute.xlu1 %1191  ;;  %v1198_v2 = vpop.permute.xlu2 %1197 }
 0x3db   :  { %v1218_v26 = vperm.slane %v1192_v31, %v3205_v22  ;;  %v1220_v5 = vperm.slane %v1198_v2, %v3205_v22 }
 0x3dd   :  { %v1232_v35 = vsel %vm368_vm3, %v1218_v26, %v1231_v45  ;;  %v4607_v45 = vmov 2  }
 0x3e7   :  { %v1195_v49 = vpop.permute.xlu0 %1194  ;;  %v1207_v19 = vpop.permute.xlu2 %1206 }
 0x3e8   :  { %v1219_v56 = vperm.slane %v1195_v49, %v3205_v22  ;;  %v1223_v54 = vperm.slane %v1207_v19, %v3205_v22 }
 0x3ea   :  { %v1233_v32 = vsel %vm370_vm4, %v1219_v56, %v1232_v35 }
 0x3eb   :  { %v1234_v44 = vsel %vm372_vm5, %v1220_v5, %v1233_v32 }
 0x3ed   :  { %v1201_v1 = vpop.permute.xlu1 %1200 }
 0x3ee   :  { %v1221_v4 = vperm.slane %v1201_v1, %v3205_v22 }
 0x3f0   :  { %v1235_v63 = vsel %vm374_vm6, %v1221_v4, %v1234_v44 }
 0x3f8   :  { %v1204_v13 = vpop.permute.xlu0 %1203 }
 0x3f9   :  { %v1222_v28 = vperm.slane %v1204_v13, %v3205_v22 }
 0x3fb   :  { %v1236_v39 = vsel %vm376_vm7, %v1222_v28, %v1235_v63  ;;  %v4609_v63 = vmov 0  }
 0x3fc   :  { %v1237_v40 = vsel %vm378_vm8, %v1223_v54, %v1236_v39  ;;  %v4608_v54 = vmov 3   ;;  %v2871_v39 = vld [vmem:[%s4554_s2 + $0x41] ss:$0 sm:$0xff] }
 0x3fd   :  { %v1241_v52 = vadd.f32 %v3726_v57, %v1237_v40  ;;  %v1462_v40 = vmul.f32 %v2871_v39, %v3053_v12  ;;  %v1463_v18 = vmul.f32 %v2871_v39, %v3058_v14 }
 0x3ff   :  { %v1245_v10 = vsel %vm283_vm1, %v1241_v52, 0.0  ;;  %v1465_v12 = vmax.f32 %v1463_v18, 0.0 }
 0x400   :  { %1246 = vadd.xlane.f32.xlu0 %v1245_v10  ;;  %v1464_v10 = vmax.f32 %v1462_v40, 0.0 }
 0x401   :  { %v1473_v14 = vsel %vm283_vm1, %v1465_v12, 0.0 }
 0x402   :  { %v1466_v16 = vsel %vm283_vm1, %v1464_v10, 0.0 }
 0x440   :  { %v1244_v46 = vpop.xlane.xlu1 %1243 }
 0x441   :  { %v1255_v58 = vmul.f32 %v3730_v62, %v1244_v46 }
 0x443   :  { %v1257_v17 = vsub.f32 %v1240_v60, %v1255_v58  ;;  %v1467_v58 = vrot.slane %v1466_v16, 4 }
 0x445   :  { %v1259_v8 = vmul.f32 %v1257_v17, %v1257_v17 }
 0x447   :  { %v1261_v7 = vsel %vm283_vm1, %v1259_v8, 0.0 }
 0x448   :  { %1262 = vadd.xlane.f32.xlu2 %v1261_v7  ;;  %v1468_v7 = vadd.f32 %v1467_v58, %v1466_v16 }
 0x473   :  { %v1247_v3 = vpop.xlane.xlu0 %1246 }
 0x474   :  { %v1256_v41 = vmul.f32 %v3730_v62, %v1247_v3  ;;  %v3778_v3 = vld [vmem:[%s4554_s2 + $0x3b] ss:$0 sm:$0xff] }
 0x476   :  { %v1258_v38 = vsub.f32 %v1241_v52, %v1256_v41 }
 0x478   :  { %v1260_v6 = vmul.f32 %v1258_v38, %v1258_v38 }
 0x47a   :  { %v1264_v55 = vsel %vm283_vm1, %v1260_v6, 0.0  ;;  %v3781_v6 = vperm.slane %v23_v47, 1 }
 0x47b   :  { %1265 = vadd.xlane.f32.xlu1 %v1264_v55 }
 0x4bb   :  { %v1263_v15 = vpop.xlane.xlu2 %1262 }
 0x4bc   :  { %v1267_v48 = vmul.f32 %v1263_v15, %v3730_v62 }
 0x4be   :  { %v1269_v0 = vadd.f32 1e-05, %v1267_v48 }
 0x4c0   :  { %2920 = vrsqrt.f32 %v1269_v0  ;;  %vm1277_vm12 = vweird.f32 %v1269_v0 }
 0x4c6   :  { %v2921_v42 = vpop.eup %2920 }
 0x4c7   :  { %v1272_v23 = vmul.f32 %v2921_v42, %v1269_v0  ;;  %vm1278_vm11 = vweird.f32 %v2921_v42  ;;  %v1469_v0 = vrot.slane %v1468_v7, 2 }
 0x4c8   :  { %vm1279_vm13 = vmor %vm1277_vm12, %vm1278_vm11 }
 0x4c9   :  { %v1273_v30 = vmul.f32 %v2921_v42, %v1272_v23  ;;  %v3786_v23 = vperm.slane %v23_v47, 2 }
 0x4cb   :  { %v1274_v33 = vmul.f32 0.5, %v1273_v30  ;;  %v3788_v30 = vperm.slane %v23_v47, 3 }
 0x4cd   :  { %v1275_v43 = vsub.f32 1.5, %v1274_v33 }
 0x4cf   :  { %v1276_v60 = vmul.f32 %v2921_v42, %v1275_v43 }
 0x4d1   :  { %v1280_v34 = vsel %vm1279_vm13, %v2921_v42, %v1276_v60 }
 0x4d2   :  { %v1291_v50 = vmul.f32 %v1280_v34, %v1257_v17  ;;  %v3773_v17 = vperm.slane %v23_v47, 0  ;;  %v1474_v34 = vrot.slane %v1473_v14, 4 }
 0x4d4   :  { %v1294_v31 = vmul.f32 %v2875_v36, %v1291_v50 }
 0x4d6   :  { %v3743_v2 = vadd.f32 %v2876_v21, %v1294_v31 }
 0x4d8   :  { %1301 = vperm.xlu0 %2835, %v3743_v2   ;;  %1315 = vperm.xlu1 %2838, %v3743_v2  }
 0x4e0   :  { %2839 = vset.pattern.permute.xlu0 %v4606_v24  ;;  %2841 = vset.pattern.permute.xlu1 %v4607_v45 }
 0x4ee   :  { %v1266_v49 = vpop.xlane.xlu1 %1265 }
 0x4ef   :  { %v1268_v11 = vmul.f32 %v1266_v49, %v3730_v62 }
 0x4f1   :  { %v1270_v26 = vadd.f32 1e-05, %v1268_v11  ;;  %v1470_v11 = vadd.f32 %v1469_v0, %v1468_v7 }
 0x4f3   :  { %2922 = vrsqrt.f32 %v1270_v26  ;;  %vm1287_vm15 = vweird.f32 %v1270_v26 }
 0x4f4   :  { %2924 = vrcp.f32 %v3000_v59 }
 0x4f5   :  { %2926 = vtanh.f32 %v3704_v51 }
 0x4f6   :  { %2928 = vtanh.f32 %v3726_v57 }
 0x4f9   :  { %v2923_v56 = vpop.eup %2922 }
 0x4fa   :  { %v1282_v35 = vmul.f32 %v2923_v56, %v1270_v26  ;;  %vm1288_vm14 = vweird.f32 %v2923_v56  ;;  %v2925_v8 = vpop.eup %2924 }
 0x4fb   :  { %vm1289_vm0 = vmor %vm1287_vm15, %vm1288_vm14  ;;  %vm1485_vm10 = vweird.f32 %v2925_v8 }
 0x4fc   :  { %v1283_v1 = vmul.f32 %v2923_v56, %v1282_v35 }
 0x4fe   :  { %v1284_v32 = vmul.f32 0.5, %v1283_v1  ;;  %v1475_v1 = vadd.f32 %v1474_v34, %v1473_v14 }
 0x500   :  { %v1285_v5 = vsub.f32 1.5, %v1284_v32 }
 0x502   :  { %v1286_v4 = vmul.f32 %v2923_v56, %v1285_v5 }
 0x504   :  { %v1290_v19 = vsel %vm1289_vm0, %v2923_v56, %v1286_v4 }
 0x505   :  { %v1292_v44 = vmul.f32 %v1290_v19, %v1258_v38  ;;  %v1481_v38 = vmul.f32 8.0, %v2925_v8 }
 0x507   :  { %v1295_v13 = vmul.f32 %v2875_v36, %v1292_v44  ;;  %v1482_v60 = vsub.f32 1.0, %v1481_v38  ;;  %v1471_v44 = vrot.slane %v1470_v11, 1  ;;  %v3821_v38 = vld [vmem:[%s4554_s2 + $0x24] sm:$0xf] }
 0x509   :  { %v3750_v28 = vadd.f32 %v2876_v21, %v1295_v13  ;;  %v1483_v35 = vmul.f32 %v2925_v8, %v1482_v60  ;;  %v1472_v16 = vadd.f32 %v1471_v44, %v1470_v11 }
 0x50b   :  { %1332 = vperm.xlu1 %2841, %v3750_v28   ;;  %1319 = vperm.xlu0 %2839, %v3750_v28   ;;  %v1484_v40 = vadd.f32 %v2925_v8, %v1483_v35 }
 0x50c   :  { %1306 = vperm.xlu2 %2836, %v3750_v28  }
 0x50d   :  { %v1486_v47 = vsel %vm1485_vm10, %v2925_v8, %v1484_v40 }
 0x513   :  { %2842 = vset.pattern.permute.xlu0 %v4608_v54  ;;  %2844 = vset.pattern.permute.xlu1 %v4609_v63 }
 0x514   :  { %2840 = vset.pattern.permute.xlu2 %v4607_v45  ;;  %1341 = vperm.xlu0 %2842, %v3743_v2  }
 0x515   :  { %1328 = vperm.xlu2 %2840, %v3743_v2  }
 0x51c   :  { %2847 = vset.pattern.permute.xlu0 %v4606_v24 }
 0x51d   :  { %2843 = vset.pattern.permute.xlu2 %v4608_v54 }
 0x51e   :  { %1345 = vperm.xlu2 %2843, %v3750_v28  }
 0x526   :  { %2845 = vset.pattern.permute.xlu2 %v4609_v63 }
 0x54a   :  { %v1316_v27 = vpop.permute.xlu1 %1315  ;;  %v1302_v9 = vpop.permute.xlu0 %1301 }
 0x54b   :  { %v1310_v55 = vmul.f32 %v3773_v17, %v1302_v9  ;;  %v1323_v26 = vmul.f32 %v3781_v6, %v1316_v27  ;;  %v3797_v27 = vmul.f32 %v1486_v47, %v1472_v16  ;;  %v2878_v16 = vld [vmem:[%s4554_s2 + $0x42] ss:$0 sm:$0xff] }
 0x54d   :  { %v1312_v31 = vadd.f32 %v3778_v3, %v1310_v55 }
 0x54f   :  { %v1325_v5 = vadd.f32 %v1323_v26, %v1312_v31 }
 0x566   :  { %v1307_v52 = vpop.permute.xlu2 %1306 }
 0x567   :  { %v1311_v41 = vmul.f32 %v3773_v17, %v1307_v52  ;;  %v1476_v52 = vrot.slane %v1475_v1, 2 }
 0x569   :  { %v1313_v42 = vadd.f32 %v3778_v3, %v1311_v41  ;;  %v1477_v18 = vadd.f32 %v1476_v52, %v1475_v1  ;;  %v3816_v41 = vld [vmem:[%s4554_s2 + $0x20] sm:$0xf] }
 0x56a   :  { %v1517_v55 = vperm.slane %v3816_v41, 1  ;;  %v1500_v44 = vperm.slane %v3816_v41, 0 }
 0x56b   :  { %v1478_v9 = vrot.slane %v1477_v18, 1 }
 0x56f   :  { %v1329_v46 = vpop.permute.xlu2 %1328 }
 0x570   :  { %v1336_v56 = vmul.f32 %v3786_v23, %v1329_v46  ;;  %v1479_v46 = vadd.f32 %v1478_v9, %v1477_v18 }
 0x572   :  { %v1338_v13 = vadd.f32 %v1336_v56, %v1325_v5  ;;  %v1488_v58 = vmul.f32 %v1486_v47, %v1479_v46 }
 0x578   :  { %v1346_v43 = vpop.permute.xlu2 %1345 }
 0x579   :  { %v1350_v21 = vmul.f32 %v3788_v30, %v1346_v43 }
 0x57d   :  { %v1333_v15 = vpop.permute.xlu1 %1332  ;;  %v1320_v48 = vpop.permute.xlu0 %1319 }
 0x57e   :  { %v1324_v33 = vmul.f32 %v3781_v6, %v1320_v48  ;;  %v1337_v36 = vmul.f32 %v3786_v23, %v1333_v15  ;;  %v1570_v15 = vperm.slane %v3821_v38, 1 }
 0x580   :  { %v1326_v50 = vadd.f32 %v1324_v33, %v1313_v42 }
 0x582   :  { %v1339_v49 = vadd.f32 %v1337_v36, %v1326_v50 }
 0x584   :  { %v1352_v32 = vadd.f32 %v1350_v21, %v1339_v49 }
 0x586   :  { %v1354_v4 = vmax.f32 %v1352_v32, 0.0  ;;  %v1342_v19 = vpop.permute.xlu0 %1341 }
 0x587   :  { %v1349_v39 = vmul.f32 %v3788_v30, %v1342_v19 }
 0x588   :  { %1374 = vperm.xlu0 %2847, %v1354_v4   ;;  %1362 = vperm.xlu2 %2845, %v1354_v4  }
 0x589   :  { %v1351_v10 = vadd.f32 %v1349_v39, %v1338_v13  ;;  %v1561_v13 = vperm.slane %v3821_v38, 0 }
 0x58b   :  { %v1353_v59 = vmax.f32 %v1351_v10, 0.0 }
 0x58d   :  { %1357 = vperm.xlu1 %2844, %v1353_v59  }
 0x590   :  { %1510 = vperm.xlu0 %2847, %v3797_v27   ;;  %1492 = vperm.xlu2 %2845, %v3797_v27  }
 0x595   :  { %2846 = vset.pattern.permute.xlu1 %v4606_v24 }
 0x596   :  { %1370 = vperm.xlu1 %2846, %v1353_v59  }
 0x598   :  { %2850 = vset.pattern.permute.xlu0 %v4607_v45  ;;  %2849 = vset.pattern.permute.xlu2 %v4606_v24 }
 0x599   :  { %1527 = vperm.xlu0 %2850, %v3797_v27   ;;  %1514 = vperm.xlu2 %2849, %v1488_v58  }
 0x59e   :  { %2848 = vset.pattern.permute.xlu1 %v4609_v63 }
 0x59f   :  { %1497 = vperm.xlu1 %2848, %v1488_v58  }
 0x5a1   :  { %2852 = vset.pattern.permute.xlu2 %v4607_v45 }
 0x5a2   :  { %1382 = vperm.xlu2 %2852, %v1353_v59  }
 0x5a7   :  { %2851 = vset.pattern.permute.xlu1 %v4607_v45 }
 0x5a8   :  { %1531 = vperm.xlu1 %2851, %v1488_v58  }
 0x5aa   :  { %2853 = vset.pattern.permute.xlu2 %v4608_v54 }
 0x5ab   :  { %1394 = vperm.xlu2 %2853, %v1353_v59   ;;  %v2879_v59 = vld [vmem:[%s4554_s2 + $0x43] ss:$0 sm:$0xff] }
 0x5b0   :  { %1386 = vperm.xlu1 %2851, %v1354_v4  }
 0x5b8   :  { %2854 = vset.pattern.permute.xlu1 %v4608_v54 }
 0x5b9   :  { %1398 = vperm.xlu1 %2854, %v1354_v4  }
 0x5c1   :  { %1548 = vperm.xlu1 %2854, %v1488_v58  }
 0x5c9   :  { %2855 = vset.pattern.permute.xlu1 %v4609_v63 }
 0x5e2   :  { %v3811_v8 = vpop.permute.xlu2 %1362 }
 0x5ea   :  { %v1493_v12 = vpop.permute.xlu2 %1492 }
 0x5eb   :  { %v1501_v18 = vmul.f32 %v1500_v44, %v1493_v12  ;;  %v1562_v9 = vmul.f32 %v1561_v13, %v1493_v12 }
 0x5f3   :  { %v1515_v7 = vpop.permute.xlu2 %1514 }
 0x5f4   :  { %v1519_v48 = vmul.f32 %v1517_v55, %v1515_v7  ;;  %v1572_v0 = vmul.f32 %v1570_v15, %v1515_v7 }
 0x5f6   :  { %v1522_v60 = vrot.slane %v1519_v48, 7  ;;  %v1575_v34 = vrot.slane %v1572_v0, 7 }
 0x5fa   :  { %v1375_v14 = vpop.permute.xlu0 %1374 }
 0x5fc   :  { %v1383_v33 = vpop.permute.xlu2 %1382 }
 0x5fd   :  { %v1389_v1 = vmul.f32 %v1383_v33, %v3786_v23  ;;  %v1579_v33 = vperm.slane %v3821_v38, 2 }
 0x5ff   :  { %v1358_v42 = vpop.permute.xlu1 %1357 }
 0x600   :  { %v1365_v31 = vmul.f32 %v1358_v42, %v3773_v17  ;;  %v1534_v42 = vperm.slane %v3816_v41, 2 }
 0x602   :  { %v1511_v43 = vpop.permute.xlu0 %1510  ;;  %v1367_v26 = vadd.f32 %v3778_v3, %v1365_v31 }
 0x603   :  { %v1518_v36 = vmul.f32 %v1517_v55, %v1511_v43  ;;  %v1571_v50 = vmul.f32 %v1570_v15, %v1511_v43 }
 0x605   :  { %v1523_v21 = vsel %vm366_vm2, %v1522_v60, %v1518_v36  ;;  %v1576_v49 = vsel %vm366_vm2, %v1575_v34, %v1571_v50  ;;  %v1395_v35 = vpop.permute.xlu2 %1394 }
 0x606   :  { %v1401_v5 = vmul.f32 %v1395_v35, %v3788_v30 }
 0x608   :  { %v1371_v11 = vpop.permute.xlu1 %1370 }
 0x609   :  { %v1377_v56 = vmul.f32 %v1371_v11, %v3781_v6 }
 0x60b   :  { %v1379_v32 = vadd.f32 %v1377_v56, %v1367_v26 }
 0x60d   :  { %v1391_v4 = vadd.f32 %v1389_v1, %v1379_v32 }
 0x60f   :  { %v1403_v19 = vadd.f32 %v1401_v5, %v1391_v4  ;;  %v1366_v4 = vmul.f32 %v3811_v8, %v3773_v17  ;;  %v2927_v17 = vpop.eup %2926 }
 0x611   :  { %v1498_v39 = vpop.permute.xlu1 %1497  ;;  %v1405_v40 = vmax.f32 %v1403_v19, 0.0 }
 0x612   :  { %v1502_v52 = vmul.f32 %v1500_v44, %v1498_v39  ;;  %v1563_v10 = vmul.f32 %v1561_v13, %v1498_v39 }
 0x613   :  { %v1407_v47 = vadd.f32 %v1405_v40, %v3743_v2  ;;  %v1528_v2 = vpop.permute.xlu0 %1527 }
 0x614   :  { %v1505_v46 = vrot.slane %v1502_v52, 7  ;;  %v1566_v58 = vrot.slane %v1563_v10, 7  ;;  %v1535_v50 = vmul.f32 %v1534_v42, %v1528_v2  ;;  %v1580_v31 = vmul.f32 %v1579_v33, %v1528_v2 }
 0x615   :  { %v1409_v7 = vsel %vm283_vm1, %v1407_v47, 0.0 }
 0x616   :  { %v1506_v55 = vsel %vm366_vm2, %v1505_v46, %v1501_v18  ;;  %v1567_v15 = vsel %vm366_vm2, %v1566_v58, %v1562_v9  ;;  %1410 = vadd.xlane.f32.xlu0 %v1409_v7  ;;  %v1551_v18 = vperm.slane %v3816_v41, 3  ;;  %v1588_v46 = vperm.slane %v3821_v38, 3 }
 0x617   :  { %v1508_v48 = vadd.f32 %v2878_v16, %v1506_v55  ;;  %v1569_v0 = vadd.f32 %v2879_v59, %v1567_v15 }
 0x619   :  { %v1525_v43 = vadd.f32 %v1523_v21, %v1508_v48  ;;  %v1578_v60 = vadd.f32 %v1576_v49, %v1569_v0  ;;  %v1378_v21 = vmul.f32 %v1375_v14, %v3781_v6  ;;  %v1368_v49 = vadd.f32 %v3778_v3, %v1366_v4  ;;  %v26_v3 = vld [vmem:[%s4554_s2 + $0x28] sm:$0xff]  ;;  %v2929_v0 = vpop.eup %2928 }
 0x61a   :  { %v1532_v34 = vpop.permute.xlu1 %1531  ;;  %v1597_v6 = vmul.f32 %v2927_v17, %v26_v3 }
 0x61b   :  { %v1536_v12 = vmul.f32 %v1534_v42, %v1532_v34  ;;  %v1581_v36 = vmul.f32 %v1579_v33, %v1532_v34  ;;  %v1380_v44 = vadd.f32 %v1378_v21, %v1368_v49  ;;  %v1598_v34 = vmul.f32 %v2929_v0, %v26_v3 }
 0x61d   :  { %v1539_v11 = vrot.slane %v1536_v12, 7  ;;  %v1584_v26 = vrot.slane %v1581_v36, 7 }
 0x61f   :  { %v1540_v56 = vsel %vm366_vm2, %v1539_v11, %v1535_v50  ;;  %v1585_v35 = vsel %vm366_vm2, %v1584_v26, %v1580_v31  ;;  %v1602_v31 = vsel %vm283_vm1, %v1598_v34, 0.0  ;;  %v27_v11 = vld [vmem:[%s4554_s2 + $0x30] sm:$0xff] }
 0x620   :  { %v1542_v1 = vadd.f32 %v1540_v56, %v1525_v43  ;;  %v1587_v32 = vadd.f32 %v1585_v35, %v1578_v60 }
 0x622   :  { %v1387_v5 = vpop.permute.xlu1 %1386 }
 0x623   :  { %v1390_v19 = vmul.f32 %v1387_v5, %v3786_v23  ;;  %v1599_v23 = vsel %vm283_vm1, %v1597_v6, 0.0 }
 0x625   :  { %v1392_v39 = vadd.f32 %v1390_v19, %v1380_v44 }
 0x62b   :  { %v1399_v13 = vpop.permute.xlu1 %1398 }
 0x62c   :  { %v1402_v40 = vmul.f32 %v1399_v13, %v3788_v30 }
 0x62e   :  { %v1404_v52 = vadd.f32 %v1402_v40, %v1392_v39 }
 0x630   :  { %v1406_v10 = vmax.f32 %v1404_v52, 0.0  ;;  %v2880_v52 = vld [vmem:[%s4554_s2 + $0x3e] ss:$0 sm:$0xff] }
 0x632   :  { %v1408_v16 = vadd.f32 %v1406_v10, %v3750_v28 }
 0x633   :  { %v1549_v58 = vpop.permute.xlu1 %1548 }
 0x634   :  { %v1412_v59 = vsel %vm283_vm1, %v1408_v16, 0.0  ;;  %v1553_v15 = vmul.f32 %v1551_v18, %v1549_v58 }
 0x635   :  { %1413 = vadd.xlane.f32.xlu2 %v1412_v59 }
 0x636   :  { %v1556_v33 = vrot.slane %v1553_v15, 7 }
 0x64d   :  { %1544 = vperm.xlu2 %2853, %v3797_v27  }
 0x655   :  { %2857 = vset.pattern.permute.xlu2 %v4606_v24 }
 0x676   :  { %1600 = vadd.xlane.f32.xlu2 %v1599_v23 }
 0x689   :  { %v1411_v30 = vpop.xlane.xlu0 %1410 }
 0x68a   :  { %v1415_v28 = vmul.f32 %v1411_v30, %v3730_v62 }
 0x68c   :  { %v3864_v8 = vsub.f32 %v1407_v47, %v1415_v28  ;;  %v1590_v47 = vmul.f32 %v1588_v46, %v1549_v58 }
 0x68e   :  { %v1419_v27 = vmul.f32 %v3864_v8, %v3864_v8  ;;  %v1593_v60 = vrot.slane %v1590_v47, 7 }
 0x690   :  { %v1421_v14 = vsel %vm283_vm1, %v1419_v27, 0.0 }
 0x691   :  { %1422 = vadd.xlane.f32.xlu1 %v1421_v14 }
 0x6a8   :  { %v1414_v9 = vpop.xlane.xlu2 %1413 }
 0x6a9   :  { %v1416_v7 = vmul.f32 %v1414_v9, %v3730_v62 }
 0x6ab   :  { %v1418_v55 = vsub.f32 %v1408_v16, %v1416_v7  ;;  %v2881_v16 = vld [vmem:[%s4554_s2 + $0x3f] ss:$0 sm:$0xff] }
 0x6ad   :  { %v1420_v48 = vmul.f32 %v1418_v55, %v1418_v55 }
 0x6af   :  { %v1424_v42 = vsel %vm283_vm1, %v1420_v48, 0.0 }
 0x6b0   :  { %1425 = vadd.xlane.f32.xlu0 %v1424_v42  ;;  %v1545_v43 = vpop.permute.xlu2 %1544 }
 0x6b1   :  { %v1552_v41 = vmul.f32 %v1551_v18, %v1545_v43  ;;  %v1589_v2 = vmul.f32 %v1588_v46, %v1545_v43 }
 0x6b3   :  { %v1557_v12 = vsel %vm366_vm2, %v1556_v33, %v1552_v41  ;;  %v1594_v38 = vsel %vm366_vm2, %v1593_v60, %v1589_v2 }
 0x6b4   :  { %v3876_v36 = vadd.f32 %v1557_v12, %v1542_v1  ;;  %v3878_v50 = vadd.f32 %v1594_v38, %v1587_v32 }
 0x6b6   :  { %v1619_v18 = vperm.slane %v3876_v36, 0  ;;  %v1665_v9 = vperm.slane %v3878_v50, 0 }
 0x6b8   :  { %1603 = vadd.xlane.f32.xlu0 %v1602_v31 }
 0x6e9   :  { %v1601_v26 = vpop.xlane.xlu2 %1600 }
 0x6ea   :  { %v1605_v56 = vadd.f32 %v1601_v26, %v27_v11 }
 0x6ec   :  { %1611 = vperm.xlu1 %2855, %v1605_v56  }
 0x704   :  { %v1423_v3 = vpop.xlane.xlu1 %1422 }
 0x705   :  { %v1427_v6 = vmul.f32 %v1423_v3, %v3730_v62  ;;  %v1608_v3 = vrot.slane %v3876_v36, 1 }
 0x707   :  { %v1429_v23 = vadd.f32 1e-05, %v1427_v6  ;;  %v1664_v6 = vrot.slane %v3878_v50, 1 }
 0x709   :  { %vm1437_vm15 = vweird.f32 %v1429_v23 }
 0x723   :  { %v1426_v35 = vpop.xlane.xlu0 %1425 }
 0x724   :  { %v1428_v5 = vmul.f32 %v1426_v35, %v3730_v62 }
 0x726   :  { %v1430_v4 = vadd.f32 1e-05, %v1428_v5 }
 0x728   :  { %2930 = vrsqrt.f32 %v1430_v4  ;;  %vm1447_vm12 = vweird.f32 %v1430_v4 }
 0x729   :  { %2932 = vrsqrt.f32 %v1429_v23 }
 0x72b   :  { %v1604_v21 = vpop.xlane.xlu0 %1603 }
 0x72c   :  { %v1606_v1 = vadd.f32 %v1604_v21, %v27_v11 }
 0x72e   :  { %v2931_v49 = vpop.eup %2930  ;;  %1616 = vperm.xlu1 %2855, %v1606_v1  }
 0x72f   :  { %v1442_v32 = vmul.f32 %v2931_v49, %v1430_v4  ;;  %vm1448_vm11 = vweird.f32 %v2931_v49  ;;  %v2933_v30 = vpop.eup %2932 }
 0x730   :  { %vm1449_vm13 = vmor %vm1447_vm12, %vm1448_vm11  ;;  %v1432_v28 = vmul.f32 %v2933_v30, %v1429_v23  ;;  %vm1438_vm14 = vweird.f32 %v2933_v30  ;;  %v1620_v23 = vperm.slane %v1608_v3, 0 }
 0x731   :  { %v1443_v19 = vmul.f32 %v2931_v49, %v1442_v32  ;;  %vm1439_vm0 = vmor %vm1437_vm15, %vm1438_vm14 }
 0x732   :  { %v1433_v27 = vmul.f32 %v2933_v30, %v1432_v28 }
 0x733   :  { %v1444_v44 = vmul.f32 0.5, %v1443_v19 }
 0x734   :  { %v1434_v14 = vmul.f32 0.5, %v1433_v27 }
 0x735   :  { %v1445_v13 = vsub.f32 1.5, %v1444_v44 }
 0x736   :  { %v1435_v58 = vsub.f32 1.5, %v1434_v14 }
 0x737   :  { %v1446_v39 = vmul.f32 %v2931_v49, %v1445_v13 }
 0x738   :  { %v1436_v48 = vmul.f32 %v2933_v30, %v1435_v58 }
 0x739   :  { %v1450_v40 = vsel %vm1449_vm13, %v2931_v49, %v1446_v39 }
 0x73a   :  { %v1452_v10 = vmul.f32 %v1450_v40, %v1418_v55  ;;  %v1440_v62 = vsel %vm1439_vm0, %v2933_v30, %v1436_v48  ;;  %v1666_v30 = vperm.slane %v1664_v6, 0  ;;  %v4615_v6 = vld [vmem:[#allocation15_spill] sm:$0xff] }
 0x73b   :  { %v1451_v33 = vmul.f32 %v1440_v62, %v3864_v8 }
 0x73c   :  { %v1455_v59 = vmul.f32 %v2880_v52, %v1452_v10 }
 0x73d   :  { %v1454_v41 = vmul.f32 %v2880_v52, %v1451_v33 }
 0x73e   :  { %v3891_v17 = vadd.f32 %v2881_v16, %v1455_v59 }
 0x73f   :  { %v1457_v34 = vadd.f32 %v2881_v16, %v1454_v41 }
 0x75e   :  { %v1612_v46 = vpop.permute.xlu1 %1611 }
 0x75f   :  { %v1623_v7 = vadd.f32 %v1619_v18, %v1612_v46  ;;  %v1669_v55 = vadd.f32 %v1665_v9, %v1612_v46 }
 0x761   :  { %v2803_v15 = vmul.f32 -1.442695, %v1623_v7  ;;  %v2805_v47 = vmul.f32 -1.442695, %v1669_v55 }
 0x763   :  { %2934 = vpow2.f32 %v2803_v15 }
 0x764   :  { %2936 = vpow2.f32 %v2805_v47 }
 0x769   :  { %v2935_v0 = vpop.eup %2934 }
 0x76a   :  { %v2937_v42 = vpop.eup %2936  ;;  %v1631_v43 = vadd.f32 1.0, %v2935_v0 }
 0x76b   :  { %v1677_v60 = vadd.f32 1.0, %v2937_v42 }
 0x76c   :  { %2938 = vrcp.f32 %v1631_v43  ;;  %v1644_v26 = vand.u32 2147483648, %v1631_v43  ;;  %v1642_v5 = vand.u32 2147483647, %v1631_v43  ;;  %vm1638_vm12 = vweird.f32 %v1631_v43 }
 0x76d   :  { %2940 = vrcp.f32 %v1677_v60  ;;  %v1690_v4 = vand.u32 2147483648, %v1677_v60  ;;  %v1688_v8 = vand.u32 2147483647, %v1677_v60  ;;  %vm1684_vm14 = vweird.f32 %v1677_v60 }
 0x76e   :  { %2942 = vtanh.f32 %v1457_v34  ;;  %v1645_v49 = vor.u32 1.1754944e-38, %v1644_v26  ;;  %vm1643_vm0 = vcmp.eq.f32.partialorder %v1642_v5, 8.507059e+37 }
 0x76f   :  { %v1691_v19 = vor.u32 1.1754944e-38, %v1690_v4  ;;  %vm1689_vm9 = vcmp.eq.f32.partialorder %v1688_v8, 8.507059e+37 }
 0x772   :  { %v2939_v2 = vpop.eup %2938 }
 0x773   :  { %v2941_v12 = vpop.eup %2940  ;;  %v1634_v38 = vmul.f32 %v2939_v2, %v1631_v43  ;;  %vm1639_vm10 = vweird.f32 %v2939_v2 }
 0x774   :  { %v1680_v31 = vmul.f32 %v2941_v12, %v1677_v60  ;;  %vm1685_vm11 = vweird.f32 %v2941_v12  ;;  %vm1640_vm13 = vmor %vm1638_vm12, %vm1639_vm10  ;;  %v2943_v13 = vpop.eup %2942 }
 0x775   :  { %v1635_v11 = vsub.f32 1.0, %v1634_v38  ;;  %vm1686_vm15 = vmor %vm1684_vm14, %vm1685_vm11 }
 0x776   :  { %v1681_v56 = vsub.f32 1.0, %v1680_v31 }
 0x777   :  { %v1636_v35 = vmul.f32 %v2939_v2, %v1635_v11 }
 0x778   :  { %v1682_v21 = vmul.f32 %v2941_v12, %v1681_v56 }
 0x779   :  { %v1637_v1 = vadd.f32 %v2939_v2, %v1636_v35 }
 0x77a   :  { %v1683_v32 = vadd.f32 %v2941_v12, %v1682_v21  ;;  %v86_v21 = vmul.f32 %v3072_v20, %v3081_v29 }
 0x77b   :  { %v1641_v44 = vsel %vm1640_vm13, %v2939_v2, %v1637_v1 }
 0x77c   :  { %v1646_v39 = vsel %vm1643_vm0, %v1645_v49, %v1641_v44  ;;  %v1687_v40 = vsel %vm1686_vm15, %v2941_v12, %v1683_v32  ;;  %v4610_v49 = vld [vmem:[#allocation14_spill] sm:$0xff]  ;;  %v3937_v44 = vld [vmem:[%s4554_s2 + $0x3a] ss:$0 sm:$0xff] }
 0x77d   :  { %v1692_v52 = vsel %vm1689_vm9, %v1691_v19, %v1687_v40  ;;  %v1711_v10 = vmul.f32 %v2943_v13, %v1646_v39  ;;  %v4611_v13 = vld [vmem:[#allocation8_spill] sm:$0xff]  ;;  %v4612_v39 = vld [vmem:[#allocation2_spill] sm:$0xff] }
 0x77e   :  { %v1713_v16 = vmul.f32 %v3704_v51, %v1692_v52  ;;  %v112_v40 = vmul.f32 %v4612_v39, %v4611_v13  ;;  %v4613_v52 = vld [vmem:[#allocation11_spill] sm:$0xff] }
 0x780   :  { %v3898_v59 = vadd.f32 %v1713_v16, %v1711_v10  ;;  %v4614_v10 = vld [vmem:[#allocation4_spill] sm:$0xff] }
 0x781   :  { %v125_v16 = vmul.f32 %v4614_v10, %v4613_v52 }
 0x782   :  { %1719 = vperm.xlu1 %2855, %v3898_v59   ;;  %2697 = vst.msk [vmem:[%s4557_s3] sm:$0xff] %vm283_vm1, %v3898_v59 }
 0x7a0   :  { %v1617_v28 = vpop.permute.xlu1 %1616 }
 0x7a1   :  { %v1624_v27 = vadd.f32 %v1620_v23, %v1617_v28  ;;  %v1670_v14 = vadd.f32 %v1666_v30, %v1617_v28  ;;  %v4616_v30 = vld [vmem:[#allocation3_spill] sm:$0xff] }
 0x7a3   :  { %v2804_v51 = vmul.f32 -1.442695, %v1624_v27  ;;  %v2806_v18 = vmul.f32 -1.442695, %v1670_v14 }
 0x7a5   :  { %2944 = vpow2.f32 %v2804_v51  ;;  %v4617_v51 = vld [vmem:[#allocation5_spill] sm:$0xff] }
 0x7a6   :  { %2946 = vpow2.f32 %v2806_v18 }
 0x7ab   :  { %v2945_v9 = vpop.eup %2944 }
 0x7ac   :  { %v2947_v46 = vpop.eup %2946  ;;  %v1632_v58 = vadd.f32 1.0, %v2945_v9  ;;  %v2994_v9 = vld [vmem:[%s4554_s2 + $0x39] ss:$0 sm:$0xff] }
 0x7ad   :  { %v1678_v7 = vadd.f32 1.0, %v2947_v46 }
 0x7ae   :  { %2948 = vrcp.f32 %v1632_v58  ;;  %v1659_v48 = vand.u32 2147483648, %v1632_v58  ;;  %v1657_v42 = vand.u32 2147483647, %v1632_v58  ;;  %vm1653_vm11 = vweird.f32 %v1632_v58 }
 0x7af   :  { %2950 = vrcp.f32 %v1678_v7  ;;  %v1705_v33 = vand.u32 2147483648, %v1678_v7  ;;  %v1703_v60 = vand.u32 2147483647, %v1678_v7  ;;  %vm1699_vm13 = vweird.f32 %v1678_v7 }
 0x7b0   :  { %2952 = vtanh.f32 %v3891_v17  ;;  %v1660_v2 = vor.u32 1.1754944e-38, %v1659_v48  ;;  %vm1658_vm15 = vcmp.eq.f32.partialorder %v1657_v42, 8.507059e+37  ;;  %v4620_v42 = vld [vmem:[#allocation9_spill] sm:$0xff] }
 0x7b1   :  { %v1706_v12 = vor.u32 1.1754944e-38, %v1705_v33  ;;  %vm1704_vm0 = vcmp.eq.f32.partialorder %v1703_v60, 8.507059e+37 }
 0x7b4   :  { %v2949_v55 = vpop.eup %2948 }
 0x7b5   :  { %v2951_v15 = vpop.eup %2950  ;;  %v1649_v36 = vmul.f32 %v2949_v55, %v1632_v58  ;;  %vm1654_vm9 = vweird.f32 %v2949_v55  ;;  %v4618_v58 = vld [vmem:[#allocation7_spill] sm:$0xff] }
 0x7b6   :  { %v1695_v47 = vmul.f32 %v2951_v15, %v1678_v7  ;;  %vm1700_vm10 = vweird.f32 %v2951_v15  ;;  %vm1655_vm12 = vmor %vm1653_vm11, %vm1654_vm9  ;;  %v2953_v17 = vpop.eup %2952  ;;  %vm4625_vm9 = vcmask 64512  }
 0x7b7   :  { %v1650_v50 = vsub.f32 1.0, %v1649_v36  ;;  %vm1701_vm14 = vmor %vm1699_vm13, %vm1700_vm10 }
 0x7b8   :  { %v1696_v62 = vsub.f32 1.0, %v1695_v47  ;;  %vm4626_vm10 = vmmov %vm4625_vm9 }
 0x7b9   :  { %v1651_v0 = vmul.f32 %v2949_v55, %v1650_v50  ;;  %vm4627_vm11 = vmmov %vm4625_vm9 }
 0x7ba   :  { %v1697_v43 = vmul.f32 %v2951_v15, %v1696_v62 }
 0x7bb   :  { %v1652_v41 = vadd.f32 %v2949_v55, %v1651_v0 }
 0x7bc   :  { %v1698_v34 = vadd.f32 %v2951_v15, %v1697_v43 }
 0x7bd   :  { %v1656_v38 = vsel %vm1655_vm12, %v2949_v55, %v1652_v41  ;;  %v4619_v55 = vld [vmem:[#allocation6_spill] sm:$0xff]  ;;  %vm4628_vm12 = vmmov %vm4625_vm9 }
 0x7be   :  { %v1661_v31 = vsel %vm1658_vm15, %v1660_v2, %v1656_v38  ;;  %v1702_v11 = vsel %vm1701_vm14, %v2951_v15, %v1698_v34  ;;  %v87_v15 = vmul.f32 %v3072_v20, %v4619_v55 }
 0x7bf   :  { %v1707_v26 = vsel %vm1704_vm0, %v1706_v12, %v1702_v11  ;;  %v1712_v56 = vmul.f32 %v2953_v17, %v1661_v31  ;;  %v4621_v12 = vld [vmem:[#allocation10_spill] sm:$0xff] }
 0x7c0   :  { %v1714_v35 = vmul.f32 %v3726_v57, %v1707_v26  ;;  %v100_v20 = vmul.f32 %v3078_v25, %v4621_v12 }
 0x7c2   :  { %v1716_v5 = vadd.f32 %v1714_v35, %v1712_v56 }
 0x7c4   :  { %1748 = vperm.xlu0 %2850, %v1716_v5   ;;  %1736 = vperm.xlu2 %2857, %v1716_v5   ;;  %2698 = vst.msk [vmem:[%s4557_s3 + $0x10] sm:$0xff] %vm283_vm1, %v1716_v5 }
 0x7c5   :  { %1724 = vperm.xlu1 %2855, %v1716_v5  }
 0x7cc   :  { %2862 = vset.pattern.permute.xlu0 %v4609_v63  ;;  %2861 = vset.pattern.permute.xlu2 %v4609_v63 }
 0x7cd   :  { %2856 = vset.pattern.permute.xlu1 %v4606_v24 }
 0x7ce   :  { %1732 = vperm.xlu1 %2856, %v3898_v59  }
 0x7d6   :  { %2858 = vset.pattern.permute.xlu1 %v4607_v45  ;;  %v2992_v45 = vld [vmem:[%s4554_s2 + $0x38] ss:$0 sm:$0xff] }
 0x7d7   :  { %1744 = vperm.xlu1 %2858, %v3898_v59   ;;  %v88_v8 = vadd.f32 %v2992_v45, %v86_v21  ;;  %v89_v43 = vadd.f32 %v2992_v45, %v87_v15 }
 0x7df   :  { %2859 = vset.pattern.permute.xlu1 %v4608_v54  ;;  %v99_v54 = vmul.f32 %v3078_v25, %v3093_v37  ;;  %v4622_v25 = vld [vmem:[#allocation12_spill] sm:$0xff] }
 0x7e0   :  { %1756 = vperm.xlu1 %2859, %v3898_v59  }
 0x7e1   :  { %v101_v19 = vadd.f32 %v99_v54, %v88_v8 }
 0x7e3   :  { %v114_v23 = vadd.f32 %v112_v40, %v101_v19  ;;  %v4623_v19 = vld [vmem:[#allocation13_spill] sm:$0xff] }
 0x7e5   :  { %v127_v14 = vadd.f32 %v125_v16, %v114_v23 }
 0x7e7   :  { %v1786_v47 = vrot.slane %v127_v14, 2  ;;  %v1785_v50 = vrot.slane %v127_v14, 1  ;;  %v1799_v34 = vperm.slane %v127_v14, 0  ;;  %v1789_v17 = vrot.slane %v127_v14, 5 }
 0x7e8   :  { %1760 = vperm.xlu1 %2859, %v1716_v5   ;;  %v1788_v31 = vrot.slane %v127_v14, 4  ;;  %v102_v5 = vadd.f32 %v100_v20, %v89_v43 }
 0x7e9   :  { %v1801_v41 = vperm.slane %v1786_v47, 0  ;;  %v1800_v2 = vperm.slane %v1785_v50, 0  ;;  %v1804_v40 = vperm.slane %v1789_v17, 0 }
 0x7ea   :  { %v1803_v52 = vperm.slane %v1788_v31, 0 }
 0x7f0   :  { %2860 = vset.pattern.permute.xlu1 %v3154_v61 }
 0x7f4   :  { %v1720_v57 = vpop.permute.xlu1 %1719 }
 0x7f5   :  { %v1767_v1 = vmul.f32 %v1720_v57, %v3169_v53  ;;  %v1727_v28 = vmul.f32 %v1720_v57, %v4616_v30  ;;  %v1787_v57 = vrot.slane %v127_v14, 3 }
 0x7f7   :  { %v1769_v29 = vadd.f32 %v3937_v44, %v1767_v1  ;;  %v1729_v46 = vadd.f32 %v2994_v9, %v1727_v28  ;;  %v113_v1 = vmul.f32 %v4612_v39, %v4622_v25 }
 0x7f9   :  { %v115_v16 = vadd.f32 %v113_v1, %v102_v5 }
 0x81e   :  { %v3963_v38 = vpop.permute.xlu2 %1736 }
 0x81f   :  { %v1740_v21 = vmul.f32 %v3963_v38, %v4617_v51 }
 0x836   :  { %v3972_v54 = vpop.permute.xlu0 %1748 }
 0x837   :  { %v3923_v4 = vpop.permute.xlu1 %1724 }
 0x838   :  { %v1728_v62 = vmul.f32 %v3923_v4, %v4616_v30 }
 0x83a   :  { %v1730_v11 = vadd.f32 %v2994_v9, %v1728_v62  ;;  %v1790_v9 = vrot.slane %v127_v14, 6 }
 0x83c   :  { %v1742_v13 = vadd.f32 %v1740_v21, %v1730_v11 }
 0x840   :  { %v1733_v24 = vpop.permute.xlu1 %1732 }
 0x841   :  { %v1771_v32 = vmul.f32 %v1733_v24, %v4610_v49  ;;  %v1739_v18 = vmul.f32 %v1733_v24, %v4617_v51 }
 0x843   :  { %v1773_v3 = vadd.f32 %v1771_v32, %v1769_v29  ;;  %v1741_v36 = vadd.f32 %v1739_v18, %v1729_v46  ;;  %v126_v29 = vmul.f32 %v4614_v10, %v4623_v19  ;;  %v1791_v18 = vrot.slane %v127_v14, 7 }
 0x845   :  { %v128_v28 = vadd.f32 %v126_v29, %v115_v16 }
 0x847   :  { %v1807_v15 = vperm.slane %v128_v28, 0  ;;  %v1796_v11 = vrot.slane %v128_v28, 5  ;;  %v1798_v1 = vrot.slane %v128_v28, 7 }
 0x849   :  { %v1745_v59 = vpop.permute.xlu1 %1744 }
 0x84a   :  { %v1775_v37 = vmul.f32 %v1745_v59, %v4615_v6  ;;  %v1751_v7 = vmul.f32 %v1745_v59, %v4618_v58  ;;  %v1802_v59 = vperm.slane %v1787_v57, 0  ;;  %v1812_v57 = vperm.slane %v1796_v11, 0 }
 0x84c   :  { %v3946_v27 = vadd.f32 %v1775_v37, %v1773_v3  ;;  %v1753_v0 = vadd.f32 %v1751_v7, %v1741_v36  ;;  %v1752_v3 = vmul.f32 %v3972_v54, %v4618_v58  ;;  %v1806_v58 = vperm.slane %v1791_v18, 0 }
 0x84d   :  { %v1805_v36 = vperm.slane %v1790_v9, 0 }
 0x84e   :  { %v1754_v51 = vadd.f32 %v1752_v3, %v1742_v13 }
 0x852   :  { %v3955_v48 = vpop.permute.xlu1 %1756 }
 0x853   :  { %v1763_v33 = vmul.f32 %v3955_v48, %v4620_v42 }
 0x855   :  { %v1765_v60 = vadd.f32 %v1763_v33, %v1753_v0  ;;  %v1793_v0 = vrot.slane %v128_v28, 2  ;;  %v1792_v33 = vrot.slane %v128_v28, 1 }
 0x857   :  { %v1833_v26 = vmul.f32 %v1801_v41, %v1765_v60  ;;  %v1832_v56 = vmul.f32 %v1800_v2, %v1765_v60  ;;  %v1831_v35 = vmul.f32 %v1799_v34, %v1765_v60  ;;  %v1836_v37 = vmul.f32 %v1804_v40, %v1765_v60 }
 0x858   :  { %v1835_v23 = vmul.f32 %v1803_v52, %v1765_v60  ;;  %v1834_v30 = vmul.f32 %v1802_v59, %v1765_v60  ;;  %v1838_v47 = vmul.f32 %v1806_v58, %v1765_v60  ;;  %v1837_v62 = vmul.f32 %v1805_v36, %v1765_v60  ;;  %v4624_v59 = vld [vmem:[#allocation16_spill] sm:$0xff] }
 0x859   :  { %v1853_v24 = vsel %vm283_vm1, %v1833_v26, 0.0  ;;  %v1850_v45 = vsel %vm283_vm1, %v1832_v56, 0.0  ;;  %v1847_v8 = vsel %vm283_vm1, %v1831_v35, 0.0  ;;  %v1862_v46 = vsel %vm283_vm1, %v1836_v37, 0.0 }
 0x85a   :  { %1854 = vadd.xlane.f32.xlu1 %v1853_v24  ;;  %1851 = vadd.xlane.f32.xlu0 %v1850_v45  ;;  %v3974_v32 = vpop.permute.xlu1 %1760  ;;  %v1859_v7 = vsel %vm283_vm1, %v1835_v23, 0.0  ;;  %v1856_v55 = vsel %vm283_vm1, %v1834_v30, 0.0  ;;  %v1868_v14 = vsel %vm283_vm1, %v1838_v47, 0.0  ;;  %v1865_v41 = vsel %vm283_vm1, %v1837_v62, 0.0 }
 0x85b   :  { %1848 = vadd.xlane.f32.xlu2 %v1847_v8  ;;  %v1764_v39 = vmul.f32 %v3974_v32, %v4620_v42  ;;  %v1794_v42 = vrot.slane %v128_v28, 3  ;;  %v1809_v2 = vperm.slane %v1793_v0, 0  ;;  %v1808_v12 = vperm.slane %v1792_v33, 0 }
 0x85c   :  { %v1797_v60 = vrot.slane %v128_v28, 6  ;;  %v1795_v26 = vrot.slane %v128_v28, 4  ;;  %v1814_v40 = vperm.slane %v1798_v1, 0  ;;  %v1779_v3 = vmul.f32 %v3955_v48, %v4624_v59 }
 0x85d   :  { %v1766_v10 = vadd.f32 %v1764_v39, %v1754_v51  ;;  %v1810_v34 = vperm.slane %v1794_v42, 0 }
 0x85e   :  { %v1813_v21 = vperm.slane %v1797_v60, 0  ;;  %v1811_v24 = vperm.slane %v1795_v26, 0  ;;  %v3998_v39 = vadd.f32 %v1779_v3, %v3946_v27 }
 0x85f   :  { %v1839_v50 = vmul.f32 %v1807_v15, %v1766_v10  ;;  %v1841_v20 = vmul.f32 %v1809_v2, %v1766_v10  ;;  %v1842_v17 = vmul.f32 %v1810_v34, %v1766_v10  ;;  %v1840_v31 = vmul.f32 %v1808_v12, %v1766_v10 }
 0x860   :  { %v1844_v45 = vmul.f32 %v1812_v57, %v1766_v10  ;;  %v1845_v8 = vmul.f32 %v1813_v21, %v1766_v10  ;;  %v1843_v25 = vmul.f32 %v1811_v24, %v1766_v10  ;;  %v1846_v52 = vmul.f32 %v1814_v40, %v1766_v10 }
 0x861   :  { %v1871_v43 = vsel %vm283_vm1, %v1839_v50, 0.0  ;;  %v1877_v56 = vsel %vm283_vm1, %v1841_v20, 0.0  ;;  %v1880_v35 = vsel %vm283_vm1, %v1842_v17, 0.0  ;;  %v1874_v5 = vsel %vm283_vm1, %v1840_v31, 0.0 }
 0x862   :  { %1863 = vadd.xlane.f32.xlu1 %v1862_v46  ;;  %1860 = vadd.xlane.f32.xlu0 %v1859_v7  ;;  %v1886_v19 = vsel %vm283_vm1, %v1844_v45, 0.0  ;;  %v1889_v29 = vsel %vm283_vm1, %v1845_v8, 0.0  ;;  %v1883_v13 = vsel %vm283_vm1, %v1843_v25, 0.0  ;;  %v1892_v16 = vsel %vm283_vm1, %v1846_v52, 0.0 }
 0x863   :  { %1857 = vadd.xlane.f32.xlu2 %v1856_v55  ;;  %v2201_v37 = vperm.slane %v3998_v39, 0 }
 0x86a   :  { %1869 = vadd.xlane.f32.xlu0 %v1868_v14  ;;  %1872 = vadd.xlane.f32.xlu1 %v1871_v43 }
 0x86b   :  { %1866 = vadd.xlane.f32.xlu2 %v1865_v41 }
 0x872   :  { %1878 = vadd.xlane.f32.xlu0 %v1877_v56  ;;  %1881 = vadd.xlane.f32.xlu1 %v1880_v35 }
 0x873   :  { %1875 = vadd.xlane.f32.xlu2 %v1874_v5 }
 0x87a   :  { %1887 = vadd.xlane.f32.xlu0 %v1886_v19  ;;  %1890 = vadd.xlane.f32.xlu1 %v1889_v29 }
 0x87b   :  { %1884 = vadd.xlane.f32.xlu2 %v1883_v13 }
 0x883   :  { %1893 = vadd.xlane.f32.xlu2 %v1892_v16 }
 0x893   :  { %2209 = vperm.xlu1 %2860, %v2201_v37  }
 0x89b   :  { %2863 = vset.pattern.permute.xlu1 %v4609_v63 }
 0x8cd   :  { %v1852_v23 = vpop.xlane.xlu0 %1851  ;;  %v1855_v30 = vpop.xlane.xlu1 %1854 }
 0x8ce   :  { %v1849_v28 = vpop.xlane.xlu2 %1848  ;;  %v1912_v51 = vperm.slane %v1852_v23, %v3205_v22  ;;  %v1913_v9 = vperm.slane %v1855_v30, %v3205_v22 }
 0x8cf   :  { %v1911_v18 = vperm.slane %v1849_v28, %v3205_v22 }
 0x8d1   :  { %v1927_v27 = vsel %vm366_vm2, %v1912_v51, %v1911_v18 }
 0x8d2   :  { %v1928_v55 = vsel %vm368_vm3, %v1913_v9, %v1927_v27 }
 0x8d5   :  { %v1861_v10 = vpop.xlane.xlu0 %1860  ;;  %v4005_v46 = vpop.xlane.xlu1 %1863 }
 0x8d6   :  { %v1858_v48 = vpop.xlane.xlu2 %1857  ;;  %v1915_v58 = vperm.slane %v1861_v10, %v3205_v22  ;;  %v1916_v50 = vperm.slane %v4005_v46, %v3205_v22 }
 0x8d7   :  { %v1914_v7 = vperm.slane %v1858_v48, %v3205_v22 }
 0x8d9   :  { %v1929_v15 = vsel %vm370_vm4, %v1914_v7, %v1928_v55 }
 0x8da   :  { %v1930_v47 = vsel %vm372_vm5, %v1915_v58, %v1929_v15 }
 0x8db   :  { %v1931_v14 = vsel %vm374_vm6, %v1916_v50, %v1930_v47 }
 0x8dd   :  { %v4012_v36 = vpop.xlane.xlu0 %1869  ;;  %v4020_v33 = vpop.xlane.xlu1 %1872 }
 0x8de   :  { %v1918_v62 = vperm.slane %v4012_v36, %v3205_v22  ;;  %v1867_v0 = vpop.xlane.xlu2 %1866  ;;  %v1919_v17 = vperm.slane %v4020_v33, %v3205_v22 }
 0x8df   :  { %v1917_v42 = vperm.slane %v1867_v0, %v3205_v22 }
 0x8e1   :  { %v1932_v43 = vsel %vm376_vm7, %v1917_v42, %v1931_v14 }
 0x8e2   :  { %v1933_v41 = vsel %vm378_vm8, %v1918_v62, %v1932_v43 }
 0x8e3   :  { %v1943_v2 = vsel %vm4625_vm9, %v1933_v41, -inf }
 0x8e4   :  { %1944 = vmax.xlane.f32.xlu0 %v1943_v2 }
 0x8e5   :  { %v4026_v34 = vpop.xlane.xlu0 %1878  ;;  %v4034_v31 = vpop.xlane.xlu1 %1881 }
 0x8e6   :  { %v4028_v12 = vpop.xlane.xlu2 %1875  ;;  %v1921_v11 = vperm.slane %v4026_v34, %v3205_v22  ;;  %v1922_v5 = vperm.slane %v4034_v31, %v3205_v22 }
 0x8e7   :  { %v1920_v20 = vperm.slane %v4028_v12, %v3205_v22 }
 0x8e9   :  { %v1934_v60 = vsel %vm366_vm2, %v1920_v20, %v1919_v17 }
 0x8ea   :  { %v1935_v26 = vsel %vm368_vm3, %v1921_v11, %v1934_v60 }
 0x8eb   :  { %v1936_v21 = vsel %vm370_vm4, %v1922_v5, %v1935_v26 }
 0x8ed   :  { %v4040_v56 = vpop.xlane.xlu0 %1887  ;;  %v4052_v8 = vpop.xlane.xlu1 %1890 }
 0x8ee   :  { %v4042_v35 = vpop.xlane.xlu2 %1884  ;;  %v1924_v24 = vperm.slane %v4040_v56, %v3205_v22  ;;  %v1925_v1 = vperm.slane %v4052_v8, %v3205_v22 }
 0x8ef   :  { %v1923_v57 = vperm.slane %v4042_v35, %v3205_v22 }
 0x8f1   :  { %v1937_v45 = vsel %vm372_vm5, %v1923_v57, %v1936_v21 }
 0x8f2   :  { %v1938_v25 = vsel %vm374_vm6, %v1924_v24, %v1937_v45 }
 0x8f3   :  { %v1939_v13 = vsel %vm376_vm7, %v1925_v1, %v1938_v25 }
 0x8f6   :  { %v4057_v19 = vpop.xlane.xlu2 %1893 }
 0x8f7   :  { %v1926_v29 = vperm.slane %v4057_v19, %v3205_v22 }
 0x8f9   :  { %v1940_v40 = vsel %vm378_vm8, %v1926_v29, %v1939_v13 }
 0x8fa   :  { %v1946_v52 = vsel %vm4626_vm10, %v1940_v40, -inf }
 0x8fb   :  { %1947 = vmax.xlane.f32.xlu1 %v1946_v52 }
 0x905   :  { %v4067_v41 = vpop.permute.xlu1 %2209 }
 0x957   :  { %v1945_v16 = vpop.xlane.xlu0 %1944 }
 0x958   :  { %v1953_v3 = vperm.slane %v1945_v16, 2  ;;  %v1952_v37 = vperm.slane %v1945_v16, 1  ;;  %v1951_v51 = vperm.slane %v1945_v16, 0  ;;  %v1955_v18 = vperm.slane %v1945_v16, 4 }
 0x959   :  { %v1954_v47 = vperm.slane %v1945_v16, 3  ;;  %v1957_v62 = vperm.slane %v1945_v16, 6  ;;  %v1958_v5 = vperm.slane %v1945_v16, 7 }
 0x95a   :  { %v1985_v9 = vsub.f32 %v1855_v30, %v1953_v3  ;;  %v1984_v7 = vsub.f32 %v1852_v23, %v1952_v37  ;;  %v1983_v55 = vsub.f32 %v1849_v28, %v1951_v51  ;;  %v1987_v58 = vsub.f32 %v1861_v10, %v1955_v18 }
 0x95b   :  { %v1986_v43 = vsub.f32 %v1858_v48, %v1954_v47  ;;  %v1989_v30 = vsub.f32 %v1867_v0, %v1957_v62  ;;  %v1956_v23 = vperm.slane %v1945_v16, 5  ;;  %v1990_v1 = vsub.f32 %v4012_v36, %v1958_v5 }
 0x95c   :  { %v2003_v27 = vmul.f32 1.442695, %v1985_v9  ;;  %v2001_v15 = vmul.f32 1.442695, %v1984_v7  ;;  %v1999_v50 = vmul.f32 1.442695, %v1983_v55  ;;  %v1768_v62 = vmul.f32 %v3923_v4, %v3169_v53 }
 0x95d   :  { %v2007_v42 = vmul.f32 1.442695, %v1987_v58  ;;  %v2005_v28 = vmul.f32 1.442695, %v1986_v43  ;;  %v2011_v2 = vmul.f32 1.442695, %v1989_v30  ;;  %v1988_v48 = vsub.f32 %v4005_v46, %v1956_v23 }
 0x95e   :  { %2954 = vpow2.f32 %v2003_v27  ;;  %v2013_v40 = vmul.f32 1.442695, %v1990_v1  ;;  %v1772_v30 = vmul.f32 %v3963_v38, %v4610_v49  ;;  %v2383_v38 = vperm.slane %v3998_v39, 3 }
 0x95f   :  { %2956 = vpow2.f32 %v2001_v15  ;;  %v2009_v60 = vmul.f32 1.442695, %v1988_v48 }
 0x960   :  { %2958 = vpow2.f32 %v1999_v50 }
 0x961   :  { %2960 = vpow2.f32 %v2007_v42 }
 0x962   :  { %2962 = vpow2.f32 %v2005_v28  ;;  %v1776_v28 = vmul.f32 %v3972_v54, %v4615_v6  ;;  %v2251_v54 = vperm.slane %v3998_v39, 1 }
 0x963   :  { %2964 = vpow2.f32 %v2011_v2  ;;  %v1780_v2 = vmul.f32 %v3974_v32, %v4624_v59  ;;  %v2515_v32 = vperm.slane %v3998_v39, 5 }
 0x964   :  { %v4064_v14 = vpop.eup %2954  ;;  %2966 = vpow2.f32 %v2009_v60 }
 0x965   :  { %2054 = vperm.xlu1 %2863, %v4064_v14   ;;  %v4069_v10 = vpop.eup %2956 }
 0x966   :  { %v4071_v20 = vpop.eup %2958  ;;  %2051 = vperm.xlu0 %2862, %v4069_v10  }
 0x967   :  { %v4074_v17 = vpop.eup %2960  ;;  %2048 = vperm.xlu2 %2861, %v4071_v20  }
 0x968   :  { %v4081_v45 = vpop.eup %2962 }
 0x969   :  { %v4083_v46 = vpop.eup %2964 }
 0x96d   :  { %2060 = vperm.xlu1 %2863, %v4074_v17  }
 0x96e   :  { %v1948_v0 = vpop.xlane.xlu1 %1947 }
 0x96f   :  { %v1960_v11 = vperm.slane %v1948_v0, 1  ;;  %v1959_v26 = vperm.slane %v1948_v0, 0  ;;  %v1963_v21 = vperm.slane %v1948_v0, 4  ;;  %2057 = vperm.xlu2 %2861, %v4081_v45   ;;  %v1961_v52 = vperm.slane %v1948_v0, 2 }
 0x970   :  { %v1966_v16 = vperm.slane %v1948_v0, 7  ;;  %v1965_v9 = vperm.slane %v1948_v0, 6  ;;  %v1964_v7 = vperm.slane %v1948_v0, 5 }
 0x971   :  { %v1992_v57 = vsub.f32 %v4028_v12, %v1960_v11  ;;  %v1991_v24 = vsub.f32 %v4020_v33, %v1959_v26  ;;  %v1995_v29 = vsub.f32 %v4042_v35, %v1963_v21  ;;  %v1962_v12 = vperm.slane %v1948_v0, 3  ;;  %v4089_v33 = vpop.eup %2966 }
 0x972   :  { %v1993_v36 = vsub.f32 %v4026_v34, %v1961_v52  ;;  %v1998_v35 = vsub.f32 %v4057_v19, %v1966_v16  ;;  %v1997_v58 = vsub.f32 %v4052_v8, %v1965_v9  ;;  %v1996_v19 = vsub.f32 %v4040_v56, %v1964_v7 }
 0x973   :  { %v2017_v25 = vmul.f32 1.442695, %v1992_v57  ;;  %v2015_v13 = vmul.f32 1.442695, %v1991_v24  ;;  %v2023_v3 = vmul.f32 1.442695, %v1995_v29  ;;  %v1994_v37 = vsub.f32 %v4034_v31, %v1962_v12 }
 0x974   :  { %v2019_v55 = vmul.f32 1.442695, %v1993_v36  ;;  %v2029_v31 = vmul.f32 1.442695, %v1998_v35  ;;  %v2027_v47 = vmul.f32 1.442695, %v1997_v58  ;;  %v1770_v56 = vadd.f32 %v3937_v44, %v1768_v62 }
 0x975   :  { %2968 = vpow2.f32 %v2017_v25  ;;  %2066 = vperm.xlu1 %2863, %v4083_v46   ;;  %v2021_v18 = vmul.f32 1.442695, %v1994_v37  ;;  %v2025_v42 = vmul.f32 1.442695, %v1996_v19  ;;  %v2581_v0 = vperm.slane %v3998_v39, 6 }
 0x976   :  { %2970 = vpow2.f32 %v2015_v13  ;;  %v1774_v53 = vadd.f32 %v1772_v30, %v1770_v56  ;;  %v2647_v11 = vperm.slane %v3998_v39, 7  ;;  %v2449_v26 = vperm.slane %v3998_v39, 4 }
 0x977   :  { %2063 = vperm.xlu2 %2861, %v4089_v33   ;;  %2972 = vpow2.f32 %v2013_v40 }
 0x978   :  { %2974 = vpow2.f32 %v2023_v3  ;;  %v1778_v44 = vadd.f32 %v1776_v28, %v1774_v53 }
 0x979   :  { %2976 = vpow2.f32 %v2021_v18 }
 0x97a   :  { %2978 = vpow2.f32 %v2019_v55  ;;  %v4134_v48 = vadd.f32 %v1780_v2, %v1778_v44 }
 0x97b   :  { %v4092_v51 = vpop.eup %2968  ;;  %2980 = vpow2.f32 %v2029_v31 }
 0x97c   :  { %v4098_v27 = vpop.eup %2970  ;;  %2982 = vpow2.f32 %v2027_v47  ;;  %v2202_v49 = vperm.slane %v4134_v48, 0  ;;  %v2318_v6 = vperm.slane %v4134_v48, 2  ;;  %v2252_v59 = vperm.slane %v4134_v48, 1 }
 0x97d   :  { %2075 = vperm.xlu1 %2863, %v4092_v51   ;;  %2072 = vperm.xlu0 %2862, %v4098_v27   ;;  %v4102_v15 = vpop.eup %2972  ;;  %2984 = vpow2.f32 %v2025_v42  ;;  %v2384_v60 = vperm.slane %v4134_v48, 3  ;;  %v2450_v57 = vperm.slane %v4134_v48, 4  ;;  %v2516_v24 = vperm.slane %v4134_v48, 5 }
 0x97e   :  { %v4104_v34 = vpop.eup %2974  ;;  %v2582_v1 = vperm.slane %v4134_v48, 6 }
 0x97f   :  { %2069 = vperm.xlu2 %2861, %v4102_v15   ;;  %v4109_v50 = vpop.eup %2976 }
 0x980   :  { %v4114_v8 = vpop.eup %2978 }
 0x981   :  { %v4116_v43 = vpop.eup %2980 }
 0x982   :  { %v4123_v23 = vpop.eup %2982 }
 0x983   :  { %v4126_v4 = vpop.eup %2984 }
 0x985   :  { %2084 = vperm.xlu1 %2863, %v4104_v34   ;;  %2081 = vperm.xlu0 %2862, %v4109_v50  }
 0x987   :  { %2078 = vperm.xlu2 %2861, %v4114_v8  }
 0x98d   :  { %2093 = vperm.xlu1 %2863, %v4116_v43   ;;  %2090 = vperm.xlu0 %2862, %v4123_v23  }
 0x98f   :  { %2087 = vperm.xlu2 %2861, %v4126_v4  }
 0x995   :  { %2864 = vset.pattern.permute.xlu1 %v3154_v61  ;;  %2866 = vset.pattern.permute.xlu0 %v3154_v61 }
 0x997   :  { %2865 = vset.pattern.permute.xlu2 %v3154_v61  ;;  %v2317_v61 = vperm.slane %v3998_v39, 2 }
 0x99d   :  { %2215 = vperm.xlu1 %2864, %v2202_v49   ;;  %2391 = vperm.xlu0 %2866, %v2383_v38  }
 0x99f   :  { %2331 = vperm.xlu2 %2865, %v2318_v6  }
 0x9a5   :  { %2259 = vperm.xlu1 %2864, %v2251_v54  }
 0x9a7   :  { %2523 = vperm.xlu2 %2865, %v2515_v32  }
 0x9ad   :  { %2265 = vperm.xlu1 %2864, %v2252_v59  }
 0x9af   :  { %2589 = vperm.xlu2 %2865, %v2581_v0  }
 0x9b5   :  { %2325 = vperm.xlu1 %2864, %v2317_v61  }
 0x9b7   :  { %2655 = vperm.xlu2 %2865, %v2647_v11  }
 0x9bd   :  { %2397 = vperm.xlu1 %2864, %v2384_v60  }
 0x9bf   :  { %2868 = vset.pattern.permute.xlu2 %v4609_v63 }
 0x9c1   :  { %v2049_v5 = vpop.permute.xlu2 %2048 }
 0x9c2   :  { %v2095_v12 = vperm.slane %v2049_v5, %v3205_v22 }
 0x9c5   :  { %2457 = vperm.xlu1 %2864, %v2449_v26  }
 0x9c9   :  { %v2058_v21 = vpop.permute.xlu2 %2057 }
 0x9ca   :  { %v2098_v36 = vperm.slane %v2058_v21, %v3205_v22 }
 0x9cd   :  { %2463 = vperm.xlu1 %2864, %v2450_v57  }
 0x9d1   :  { %v2064_v29 = vpop.permute.xlu2 %2063 }
 0x9d2   :  { %v2100_v7 = vperm.slane %v2064_v29, %v3205_v22 }
 0x9d5   :  { %2529 = vperm.xlu1 %2864, %v2516_v24  }
 0x9d7   :  { %v2055_v25 = vpop.permute.xlu1 %2054 }
 0x9d8   :  { %v2052_v13 = vpop.permute.xlu0 %2051  ;;  %v2097_v40 = vperm.slane %v2055_v25, %v3205_v22 }
 0x9d9   :  { %v2096_v39 = vperm.slane %v2052_v13, %v3205_v22  ;;  %v2070_v18 = vpop.permute.xlu2 %2069  ;;  %v2648_v13 = vperm.slane %v4134_v48, 7 }
 0x9da   :  { %v2102_v58 = vperm.slane %v2070_v18, %v3205_v22 }
 0x9db   :  { %v2111_v16 = vsel %vm366_vm2, %v2096_v39, %v2095_v12 }
 0x9dc   :  { %v2112_v3 = vsel %vm368_vm3, %v2097_v40, %v2111_v16 }
 0x9dd   :  { %2595 = vperm.xlu1 %2864, %v2582_v1   ;;  %v2113_v35 = vsel %vm370_vm4, %v2098_v36, %v2112_v3 }
 0x9df   :  { %v2061_v52 = vpop.permute.xlu1 %2060 }
 0x9e0   :  { %v2099_v37 = vperm.slane %v2061_v52, %v3205_v22 }
 0x9e1   :  { %v2079_v53 = vpop.permute.xlu2 %2078 }
 0x9e2   :  { %v2114_v9 = vsel %vm372_vm5, %v2099_v37, %v2113_v35  ;;  %v2105_v6 = vperm.slane %v2079_v53, %v3205_v22 }
 0x9e3   :  { %v2115_v19 = vsel %vm374_vm6, %v2100_v7, %v2114_v9 }
 0x9e5   :  { %2867 = vset.pattern.permute.xlu1 %v4609_v63 }
 0x9e7   :  { %v2067_v55 = vpop.permute.xlu1 %2066 }
 0x9e8   :  { %v2101_v31 = vperm.slane %v2067_v55, %v3205_v22 }
 0x9e9   :  { %v2088_v61 = vpop.permute.xlu2 %2087 }
 0x9ea   :  { %v2116_v47 = vsel %vm376_vm7, %v2101_v31, %v2115_v19  ;;  %v2108_v26 = vperm.slane %v2088_v61, %v3205_v22 }
 0x9eb   :  { %v2117_v62 = vsel %vm378_vm8, %v2102_v58, %v2116_v47 }
 0x9ec   :  { %v2127_v42 = vsel %vm4627_vm11, %v2117_v62, 0.0 }
 0x9ed   :  { %2128 = vadd.xlane.f32.xlu2 %v2127_v42 }
 0x9ef   :  { %v2076_v56 = vpop.permute.xlu1 %2075  ;;  %v2073_v30 = vpop.permute.xlu0 %2072 }
 0x9f0   :  { %v2103_v28 = vperm.slane %v2073_v30, %v3205_v22  ;;  %v2104_v2 = vperm.slane %v2076_v56, %v3205_v22 }
 0x9f2   :  { %v2118_v49 = vsel %vm366_vm2, %v2104_v2, %v2103_v28 }
 0x9f3   :  { %v2119_v32 = vsel %vm368_vm3, %v2105_v6, %v2118_v49 }
 0x9f7   :  { %v2085_v44 = vpop.permute.xlu1 %2084  ;;  %v2082_v38 = vpop.permute.xlu0 %2081 }
 0x9f8   :  { %v2106_v54 = vperm.slane %v2082_v38, %v3205_v22  ;;  %v2107_v59 = vperm.slane %v2085_v44, %v3205_v22 }
 0x9f9   :  { %v4188_v12 = vpop.permute.xlu2 %2331 }
 0x9fa   :  { %v2120_v0 = vsel %vm370_vm4, %v2106_v54, %v2119_v32 }
 0x9fb   :  { %v2121_v60 = vsel %vm372_vm5, %v2107_v59, %v2120_v0 }
 0x9fc   :  { %v2122_v24 = vsel %vm374_vm6, %v2108_v26, %v2121_v60 }
 0x9ff   :  { %v2094_v11 = vpop.permute.xlu1 %2093  ;;  %v2091_v5 = vpop.permute.xlu0 %2090 }
 0xa00   :  { %v2110_v57 = vperm.slane %v2094_v11, %v3205_v22  ;;  %v2109_v21 = vperm.slane %v2091_v5, %v3205_v22 }
 0xa01   :  { %v4192_v40 = vpop.permute.xlu2 %2523 }
 0xa02   :  { %v2123_v25 = vsel %vm376_vm7, %v2109_v21, %v2122_v24 }
 0xa03   :  { %v2124_v1 = vsel %vm378_vm8, %v2110_v57, %v2123_v25 }
 0xa04   :  { %v2130_v29 = vsel %vm4628_vm12, %v2124_v1, 0.0 }
 0xa05   :  { %2131 = vadd.xlane.f32.xlu0 %v2130_v29 }
 0xa09   :  { %v4196_v16 = vpop.permute.xlu2 %2589 }
 0xa0f   :  { %v4190_v39 = vpop.permute.xlu1 %2215  ;;  %v4232_v0 = vpop.permute.xlu0 %2391 }
 0xa11   :  { %v4200_v37 = vpop.permute.xlu2 %2655 }
 0xa17   :  { %v4194_v52 = vpop.permute.xlu1 %2259 }
 0xa19   :  { %2661 = vperm.xlu0 %2866, %v2648_v13  }
 0xa1f   :  { %v4198_v3 = vpop.permute.xlu1 %2265 }
 0xa21   :  { %2869 = vset.pattern.permute.xlu0 %v4609_v63 }
 0xa27   :  { %v4202_v36 = vpop.permute.xlu1 %2325 }
 0xa2f   :  { %v4204_v35 = vpop.permute.xlu1 %2397 }
 0xa60   :  { %v2129_v48 = vpop.xlane.xlu2 %2128 }
 0xa61   :  { %2986 = vrcp.f32 %v2129_v48 }
 0xa67   :  { %v4206_v63 = vpop.eup %2986 }
 0xa68   :  { %v2139_v18 = vperm.slane %v4206_v63, 2  ;;  %v2138_v9 = vperm.slane %v4206_v63, 1  ;;  %v2137_v7 = vperm.slane %v4206_v63, 0  ;;  %v2144_v31 = vperm.slane %v4206_v63, 7 }
 0xa69   :  { %v2141_v58 = vperm.slane %v4206_v63, 4  ;;  %v2140_v19 = vperm.slane %v4206_v63, 3  ;;  %v2143_v47 = vperm.slane %v4206_v63, 6 }
 0xa6a   :  { %v2171_v55 = vmul.f32 %v4064_v14, %v2139_v18  ;;  %v2170_v30 = vmul.f32 %v4069_v10, %v2138_v9  ;;  %v4218_v44 = vmul.f32 %v4071_v20, %v2137_v7  ;;  %v4223_v6 = vmul.f32 %v4102_v15, %v2144_v31  ;;  %v4234_v20 = vpop.permute.xlu1 %2457 }
 0xa6b   :  { %v4227_v59 = vmul.f32 %v4074_v17, %v2141_v58  ;;  %v4230_v10 = vmul.f32 %v4081_v45, %v2140_v19 }
 0xa6c   :  { %v2187_v62 = vperm.slane %v2171_v55, 0  ;;  %v2237_v42 = vperm.slane %v2171_v55, 1  ;;  %v2303_v56 = vperm.slane %v2171_v55, 2  ;;  %v2369_v53 = vperm.slane %v2171_v55, 3 }
 0xa6d   :  { %v2435_v28 = vperm.slane %v2171_v55, 4  ;;  %v2501_v2 = vperm.slane %v2171_v55, 5  ;;  %v2567_v38 = vperm.slane %v2171_v55, 6  ;;  %v2633_v32 = vperm.slane %v2171_v55, 7 }
 0xa6e   :  { %v2221_v14 = vmul.f32 %v4067_v41, %v2187_v62  ;;  %v2271_v49 = vmul.f32 %v4194_v52, %v2237_v42  ;;  %v2337_v54 = vmul.f32 %v4202_v36, %v2303_v56  ;;  %v2186_v11 = vperm.slane %v2170_v30, 0 }
 0xa6f   :  { %v2236_v60 = vperm.slane %v2170_v30, 1  ;;  %v2302_v26 = vperm.slane %v2170_v30, 2  ;;  %v2403_v15 = vmul.f32 %v4232_v0, %v2369_v53  ;;  %v2469_v5 = vmul.f32 %v4234_v20, %v2435_v28 }
 0xa70   :  { %v2287_v61 = vadd.f32 %v2271_v49, %v2221_v14  ;;  %v2535_v57 = vmul.f32 %v4192_v40, %v2501_v2  ;;  %v2368_v21 = vperm.slane %v2170_v30, 3  ;;  %v2601_v24 = vmul.f32 %v4196_v16, %v2567_v38 }
 0xa71   :  { %v2220_v45 = vmul.f32 %v4067_v41, %v2186_v11  ;;  %v2270_v25 = vmul.f32 %v4194_v52, %v2236_v60  ;;  %v2336_v1 = vmul.f32 %v4202_v36, %v2302_v26  ;;  %v2434_v29 = vperm.slane %v2170_v30, 4 }
 0xa72   :  { %v2353_v17 = vadd.f32 %v2337_v54, %v2287_v61  ;;  %v2500_v13 = vperm.slane %v2170_v30, 5  ;;  %v2566_v48 = vperm.slane %v2170_v30, 6  ;;  %v2632_v7 = vperm.slane %v2170_v30, 7 }
 0xa73   :  { %v2286_v9 = vadd.f32 %v2270_v25, %v2220_v45  ;;  %v2185_v55 = vperm.slane %v4218_v44, 0  ;;  %v2667_v31 = vmul.f32 %v4200_v37, %v2633_v32  ;;  %v2402_v58 = vmul.f32 %v4232_v0, %v2368_v21 }
 0xa74   :  { %v2419_v18 = vadd.f32 %v2403_v15, %v2353_v17  ;;  %v2235_v19 = vperm.slane %v4218_v44, 1  ;;  %v2301_v62 = vperm.slane %v4218_v44, 2  ;;  %v2367_v28 = vperm.slane %v4218_v44, 3 }
 0xa75   :  { %v2352_v56 = vadd.f32 %v2336_v1, %v2286_v9  ;;  %v2219_v53 = vmul.f32 %v4067_v41, %v2185_v55  ;;  %v2468_v2 = vmul.f32 %v4234_v20, %v2434_v29  ;;  %v2534_v30 = vmul.f32 %v4192_v40, %v2500_v13 }
 0xa76   :  { %v2485_v42 = vadd.f32 %v2469_v5, %v2419_v18  ;;  %v2269_v14 = vmul.f32 %v4194_v52, %v2235_v19  ;;  %v2433_v49 = vperm.slane %v4218_v44, 4  ;;  %v2600_v32 = vmul.f32 %v4196_v16, %v2566_v48 }
 0xa77   :  { %v2418_v54 = vadd.f32 %v2402_v58, %v2352_v56  ;;  %v2666_v61 = vmul.f32 %v4200_v37, %v2632_v7  ;;  %v2335_v60 = vmul.f32 %v4202_v36, %v2301_v62  ;;  %v2192_v26 = vperm.slane %v4223_v6, 0 }
 0xa78   :  { %v2551_v38 = vadd.f32 %v2535_v57, %v2485_v42  ;;  %v2285_v11 = vadd.f32 %v2269_v14, %v2219_v53  ;;  %v2242_v15 = vperm.slane %v4223_v6, 1  ;;  %v2401_v17 = vmul.f32 %v4232_v0, %v2367_v28 }
 0xa79   :  { %v2484_v21 = vadd.f32 %v2468_v2, %v2418_v54  ;;  %v2499_v45 = vperm.slane %v4218_v44, 5  ;;  %v2467_v57 = vmul.f32 %v4234_v20, %v2433_v49  ;;  %v2226_v1 = vmul.f32 %v4067_v41, %v2192_v26 }
 0xa7a   :  { %v2617_v5 = vadd.f32 %v2601_v24, %v2551_v38  ;;  %v2351_v25 = vadd.f32 %v2335_v60, %v2285_v11  ;;  %v2276_v29 = vmul.f32 %v4194_v52, %v2242_v15  ;;  %v2308_v18 = vperm.slane %v4223_v6, 2 }
 0xa7b   :  { %v2550_v48 = vadd.f32 %v2534_v30, %v2484_v21  ;;  %v2374_v9 = vperm.slane %v4223_v6, 3  ;;  %v2565_v24 = vperm.slane %v4218_v44, 6  ;;  %v2631_v55 = vperm.slane %v4218_v44, 7 }
 0xa7c   :  { %v2683_v13 = vadd.f32 %v2667_v31, %v2617_v5  ;;  %v2417_v7 = vadd.f32 %v2401_v17, %v2351_v25  ;;  %v2292_v58 = vadd.f32 %v2276_v29, %v2226_v1  ;;  %v2533_v62 = vmul.f32 %v4192_v40, %v2499_v45 }
 0xa7d   :  { %v2616_v19 = vadd.f32 %v2600_v32, %v2550_v48  ;;  %v2342_v42 = vmul.f32 %v4202_v36, %v2308_v18  ;;  %v2440_v56 = vperm.slane %v4223_v6, 4  ;;  %v2408_v53 = vmul.f32 %v4232_v0, %v2374_v9  ;;  %v2132_v48 = vpop.xlane.xlu0 %2131 }
 0xa7e   :  { %2722 = vperm.xlu0 %2869, %v2683_v13   ;;  %v2483_v31 = vadd.f32 %v2467_v57, %v2417_v7  ;;  %v2506_v28 = vperm.slane %v4223_v6, 5  ;;  %v2572_v2 = vperm.slane %v4223_v6, 6  ;;  %v2638_v44 = vperm.slane %v4223_v6, 7 }
 0xa7f   :  { %v2682_v30 = vadd.f32 %v2666_v61, %v2616_v19  ;;  %v2358_v14 = vadd.f32 %v2342_v42, %v2292_v58  ;;  %v2189_v49 = vperm.slane %v4227_v59, 0  ;;  %v2599_v54 = vmul.f32 %v4196_v16, %v2565_v24 }
 0xa80   :  { %v2549_v38 = vadd.f32 %v2533_v62, %v2483_v31  ;;  %v2239_v32 = vperm.slane %v4227_v59, 1  ;;  %v4281_v11 = vmul.f32 %v4083_v46, %v2143_v47  ;;  %v2474_v26 = vmul.f32 %v4234_v20, %v2440_v56 }
 0xa81   :  { %2719 = vperm.xlu2 %2868, %v2682_v30   ;;  %v2424_v60 = vadd.f32 %v2408_v53, %v2358_v14  ;;  %v2223_v61 = vmul.f32 %v4067_v41, %v2189_v49  ;;  %v2305_v6 = vperm.slane %v4227_v59, 2  ;;  %v2665_v5 = vmul.f32 %v4200_v37, %v2631_v55 }
 0xa82   :  { %v2615_v15 = vadd.f32 %v2599_v54, %v2549_v38  ;;  %v2273_v21 = vmul.f32 %v4194_v52, %v2239_v32  ;;  %v2371_v17 = vperm.slane %v4227_v59, 3  ;;  %v2540_v25 = vmul.f32 %v4192_v40, %v2506_v28 }
 0xa83   :  { %v2490_v45 = vadd.f32 %v2474_v26, %v2424_v60  ;;  %v2606_v46 = vmul.f32 %v4196_v16, %v2572_v2  ;;  %v2672_v47 = vmul.f32 %v4200_v37, %v2638_v44  ;;  %v2339_v29 = vmul.f32 %v4202_v36, %v2305_v6 }
 0xa84   :  { %v2681_v57 = vadd.f32 %v2665_v5, %v2615_v15  ;;  %v2289_v1 = vadd.f32 %v2273_v21, %v2223_v61  ;;  %v2437_v13 = vperm.slane %v4227_v59, 4  ;;  %v2503_v9 = vperm.slane %v4227_v59, 5 }
 0xa85   :  { %v2556_v18 = vadd.f32 %v2540_v25, %v2490_v45  ;;  %v2569_v7 = vperm.slane %v4227_v59, 6  ;;  %v2188_v24 = vperm.slane %v4230_v10, 0  ;;  %v2405_v58 = vmul.f32 %v4232_v0, %v2371_v17 }
 0xa86   :  { %2716 = vperm.xlu1 %2867, %v2681_v57   ;;  %v2355_v55 = vadd.f32 %v2339_v29, %v2289_v1  ;;  %v2238_v19 = vperm.slane %v4230_v10, 1  ;;  %v2304_v62 = vperm.slane %v4230_v10, 2  ;;  %v2635_v56 = vperm.slane %v4227_v59, 7 }
 0xa87   :  { %v2622_v42 = vadd.f32 %v2606_v46, %v2556_v18  ;;  %v2222_v31 = vmul.f32 %v4067_v41, %v2188_v24  ;;  %v2370_v53 = vperm.slane %v4230_v10, 3  ;;  %2988 = vrcp.f32 %v2132_v48 }
 0xa88   :  { %v2421_v28 = vadd.f32 %v2405_v58, %v2355_v55  ;;  %v2471_v2 = vmul.f32 %v4234_v20, %v2437_v13  ;;  %v2272_v30 = vmul.f32 %v4194_v52, %v2238_v19  ;;  %v2537_v44 = vmul.f32 %v4192_v40, %v2503_v9 }
 0xa89   :  { %v2688_v14 = vadd.f32 %v2672_v47, %v2622_v42  ;;  %v2603_v49 = vmul.f32 %v4196_v16, %v2569_v7  ;;  %v2436_v38 = vperm.slane %v4230_v10, 4  ;;  %v2338_v59 = vmul.f32 %v4202_v36, %v2304_v62 }
 0xa8a   :  { %v2487_v54 = vadd.f32 %v2471_v2, %v2421_v28  ;;  %v2288_v32 = vadd.f32 %v2272_v30, %v2222_v31  ;;  %v2191_v60 = vperm.slane %v4281_v11, 0  ;;  %v2669_v26 = vmul.f32 %v4200_v37, %v2635_v56  ;;  %v4329_v56 = vpop.permute.xlu1 %2463 }
 0xa8b   :  { %2737 = vperm.xlu0 %2869, %v2688_v14   ;;  %v2404_v61 = vmul.f32 %v4232_v0, %v2370_v53  ;;  %v2241_v6 = vperm.slane %v4281_v11, 1  ;;  %v2307_v15 = vperm.slane %v4281_v11, 2  ;;  %v2502_v17 = vperm.slane %v4230_v10, 5 }
 0xa8c   :  { %v2553_v5 = vadd.f32 %v2537_v44, %v2487_v54  ;;  %v2354_v21 = vadd.f32 %v2338_v59, %v2288_v32  ;;  %v2225_v45 = vmul.f32 %v4067_v41, %v2191_v60  ;;  %v2470_v25 = vmul.f32 %v4234_v20, %v2436_v38 }
 0xa8d   :  { %v2568_v46 = vperm.slane %v4230_v10, 6  ;;  %v2275_v47 = vmul.f32 %v4194_v52, %v2241_v6  ;;  %v2373_v57 = vperm.slane %v4281_v11, 3  ;;  %v4320_v1 = vpop.eup %2988  ;;  %v2634_v48 = vperm.slane %v4230_v10, 7 }
 0xa8e   :  { %v2619_v29 = vadd.f32 %v2603_v49, %v2553_v5  ;;  %v2420_v13 = vadd.f32 %v2404_v61, %v2354_v21  ;;  %v2439_v18 = vperm.slane %v4281_v11, 4  ;;  %v2341_v7 = vmul.f32 %v4202_v36, %v2307_v15 }
 0xa8f   :  { %v2291_v9 = vadd.f32 %v2275_v47, %v2225_v45  ;;  %v2505_v24 = vperm.slane %v4281_v11, 5  ;;  %v2571_v55 = vperm.slane %v4281_v11, 6  ;;  %v2536_v62 = vmul.f32 %v4192_v40, %v2502_v17 }
 0xa90   :  { %v2685_v58 = vadd.f32 %v2669_v26, %v2619_v29  ;;  %v2486_v19 = vadd.f32 %v2470_v25, %v2420_v13  ;;  %v2637_v42 = vperm.slane %v4281_v11, 7  ;;  %v2407_v10 = vmul.f32 %v4232_v0, %v2373_v57 }
 0xa91   :  { %v2357_v31 = vadd.f32 %v2341_v7, %v2291_v9  ;;  %v2142_v53 = vperm.slane %v4206_v63, 5  ;;  %v2147_v28 = vperm.slane %v4320_v1, 2  ;;  %v2602_v30 = vmul.f32 %v4196_v16, %v2568_v46 }
 0xa92   :  { %2728 = vperm.xlu2 %2868, %v2685_v58   ;;  %v2552_v2 = vadd.f32 %v2536_v62, %v2486_v19  ;;  %v2668_v14 = vmul.f32 %v4200_v37, %v2634_v48  ;;  %v2473_v44 = vmul.f32 %v4234_v20, %v2439_v18  ;;  %v2539_v11 = vmul.f32 %v4192_v40, %v2505_v24  ;;  %v4358_v58 = vpop.permute.xlu1 %2529 }
 0xa93   :  { %v2423_v49 = vadd.f32 %v2407_v10, %v2357_v31  ;;  %v2605_v38 = vmul.f32 %v4196_v16, %v2571_v55  ;;  %v2174_v54 = vmul.f32 %v4089_v33, %v2142_v53  ;;  %v2671_v63 = vmul.f32 %v4200_v37, %v2637_v42 }
 0xa94   :  { %v2618_v32 = vadd.f32 %v2602_v30, %v2552_v2  ;;  %v4342_v59 = vmul.f32 %v4114_v8, %v2147_v28  ;;  %v2146_v60 = vperm.slane %v4320_v1, 1  ;;  %v2145_v17 = vperm.slane %v4320_v1, 0 }
 0xa95   :  { %v2489_v26 = vadd.f32 %v2473_v44, %v2423_v49  ;;  %v2190_v61 = vperm.slane %v2174_v54, 0  ;;  %v2240_v6 = vperm.slane %v2174_v54, 1  ;;  %v2306_v15 = vperm.slane %v2174_v54, 2 }
 0xa96   :  { %v2684_v5 = vadd.f32 %v2668_v14, %v2618_v32  ;;  %v2372_v21 = vperm.slane %v2174_v54, 3  ;;  %v2150_v45 = vperm.slane %v4320_v1, 5  ;;  %v2149_v8 = vperm.slane %v4320_v1, 4 }
 0xa97   :  { %v2555_v25 = vadd.f32 %v2539_v11, %v2489_v26  ;;  %v2224_v33 = vmul.f32 %v4067_v41, %v2190_v61  ;;  %v2274_v46 = vmul.f32 %v4194_v52, %v2240_v6  ;;  %v2340_v47 = vmul.f32 %v4202_v36, %v2306_v15 }
 0xa98   :  { %2725 = vperm.xlu1 %2867, %v2684_v5   ;;  %v2438_v57 = vperm.slane %v2174_v54, 4  ;;  %v2504_v29 = vperm.slane %v2174_v54, 5  ;;  %v4352_v13 = vmul.f32 %v4092_v51, %v2146_v60  ;;  %v2570_v9 = vperm.slane %v2174_v54, 6 }
 0xa99   :  { %v2621_v48 = vadd.f32 %v2605_v38, %v2555_v25  ;;  %v2290_v18 = vadd.f32 %v2274_v46, %v2224_v33  ;;  %v2195_v7 = vperm.slane %v4342_v59, 0  ;;  %v2406_v24 = vmul.f32 %v4232_v0, %v2372_v21  ;;  %v4390_v33 = vpop.permute.xlu0 %2661 }
 0xa9a   :  { %v2636_v41 = vperm.slane %v2174_v54, 7  ;;  %v2245_v52 = vperm.slane %v4342_v59, 1  ;;  %v2311_v55 = vperm.slane %v4342_v59, 2  ;;  %v2377_v51 = vperm.slane %v4342_v59, 3 }
 0xa9b   :  { %v2687_v36 = vadd.f32 %v2671_v63, %v2621_v48  ;;  %v2356_v19 = vadd.f32 %v2340_v47, %v2290_v18  ;;  %v2229_v62 = vmul.f32 %v4190_v39, %v2195_v7  ;;  %v2472_v42 = vmul.f32 %v4234_v20, %v2438_v57  ;;  %v4394_v48 = vpop.permute.xlu1 %2595 }
 0xa9c   :  { %v2279_v31 = vmul.f32 %v4198_v3, %v2245_v52  ;;  %v4365_v10 = vmul.f32 %v4098_v27, %v2145_v17  ;;  %v4368_v0 = vmul.f32 %v4126_v4, %v2150_v45  ;;  %v2538_v28 = vmul.f32 %v4192_v40, %v2504_v29 }
 0xa9d   :  { %2734 = vperm.xlu2 %2868, %v2687_v36   ;;  %v2422_v53 = vadd.f32 %v2406_v24, %v2356_v19  ;;  %v2604_v2 = vmul.f32 %v4196_v16, %v2570_v9  ;;  %v2443_v30 = vperm.slane %v4342_v59, 4  ;;  %v2345_v44 = vmul.f32 %v4188_v12, %v2311_v55 }
 0xa9e   :  { %v2295_v14 = vadd.f32 %v2279_v31, %v2229_v62  ;;  %v2194_v20 = vperm.slane %v4352_v13, 0  ;;  %v2244_v49 = vperm.slane %v4352_v13, 1  ;;  %v2670_v11 = vmul.f32 %v4200_v37, %v2636_v41 }
 0xa9f   :  { %v2488_v27 = vadd.f32 %v2472_v42, %v2422_v53  ;;  %v2411_v4 = vmul.f32 %v4204_v35, %v2377_v51  ;;  %v2509_v38 = vperm.slane %v4342_v59, 5  ;;  %v2310_v32 = vperm.slane %v4352_v13, 2 }
 0xaa0   :  { %v2361_v54 = vadd.f32 %v2345_v44, %v2295_v14  ;;  %v2228_v40 = vmul.f32 %v4190_v39, %v2194_v20  ;;  %v2278_v16 = vmul.f32 %v4198_v3, %v2244_v49  ;;  %v2477_v60 = vmul.f32 %v4329_v56, %v2443_v30 }
 0xaa1   :  { %v2554_v63 = vadd.f32 %v2538_v28, %v2488_v27  ;;  %v2575_v26 = vperm.slane %v4342_v59, 6  ;;  %v2376_v61 = vperm.slane %v4352_v13, 3  ;;  %v2344_v15 = vmul.f32 %v4188_v12, %v2310_v32 }
 0xaa2   :  { %v2427_v6 = vadd.f32 %v2411_v4, %v2361_v54  ;;  %v2294_v37 = vadd.f32 %v2278_v16, %v2228_v40  ;;  %v2442_v5 = vperm.slane %v4352_v13, 4  ;;  %v2543_v17 = vmul.f32 %v4358_v58, %v2509_v38 }
 0xaa3   :  { %v2620_v21 = vadd.f32 %v2604_v2, %v2554_v63  ;;  %v2641_v45 = vperm.slane %v4342_v59, 7  ;;  %v2508_v25 = vperm.slane %v4352_v13, 5  ;;  %v2410_v57 = vmul.f32 %v4204_v35, %v2376_v61 }
 0xaa4   :  { %v2493_v46 = vadd.f32 %v2477_v60, %v2427_v6  ;;  %v2360_v47 = vadd.f32 %v2344_v15, %v2294_v37  ;;  %v2574_v29 = vperm.slane %v4352_v13, 6  ;;  %v2193_v9 = vperm.slane %v4365_v10, 0 }
 0xaa5   :  { %v2686_v18 = vadd.f32 %v2670_v11, %v2620_v21  ;;  %v2243_v7 = vperm.slane %v4365_v10, 1  ;;  %v2309_v24 = vperm.slane %v4365_v10, 2  ;;  %v2609_v41 = vmul.f32 %v4394_v48, %v2575_v26 }
 0xaa6   :  { %v2559_v59 = vadd.f32 %v2543_v17, %v2493_v46  ;;  %v2426_v52 = vadd.f32 %v2410_v57, %v2360_v47  ;;  %v2476_v55 = vmul.f32 %v4329_v56, %v2442_v5  ;;  %v2675_v36 = vmul.f32 %v4390_v33, %v2641_v45 }
 0xaa7   :  { %2731 = vperm.xlu1 %2867, %v2686_v18   ;;  %v2227_v19 = vmul.f32 %v4190_v39, %v2193_v9  ;;  %v2277_v62 = vmul.f32 %v4198_v3, %v2243_v7  ;;  %v2375_v51 = vperm.slane %v4365_v10, 3  ;;  %v2542_v53 = vmul.f32 %v4358_v58, %v2508_v25 }
 0xaa8   :  { %v2625_v42 = vadd.f32 %v2609_v41, %v2559_v59  ;;  %v2492_v31 = vadd.f32 %v2476_v55, %v2426_v52  ;;  %v2608_v28 = vmul.f32 %v4394_v48, %v2574_v29  ;;  %v2640_v2 = vperm.slane %v4352_v13, 7 }
 0xaa9   :  { %v2293_v30 = vadd.f32 %v2277_v62, %v2227_v19  ;;  %v2343_v14 = vmul.f32 %v4188_v12, %v2309_v24  ;;  %v2441_v44 = vperm.slane %v4365_v10, 4  ;;  %v2507_v27 = vperm.slane %v4365_v10, 5 }
 0xaaa   :  { %v2691_v20 = vadd.f32 %v2675_v36, %v2625_v42  ;;  %v2558_v49 = vadd.f32 %v2542_v53, %v2492_v31  ;;  %v2198_v11 = vperm.slane %v4368_v0, 0  ;;  %v2674_v4 = vmul.f32 %v4390_v33, %v2640_v2 }
 0xaab   :  { %v2359_v38 = vadd.f32 %v2343_v14, %v2293_v30  ;;  %v2409_v54 = vmul.f32 %v4204_v35, %v2375_v51  ;;  %v2248_v40 = vperm.slane %v4368_v0, 1  ;;  %v2573_v16 = vperm.slane %v4365_v10, 6 }
 0xaac   :  { %2746 = vperm.xlu0 %2869, %v2691_v20   ;;  %v2624_v13 = vadd.f32 %v2608_v28, %v2558_v49  ;;  %v2232_v32 = vmul.f32 %v4190_v39, %v2198_v11  ;;  %v2314_v63 = vperm.slane %v4368_v0, 2  ;;  %v2475_v26 = vmul.f32 %v4329_v56, %v2441_v44 }
 0xaad   :  { %v2425_v60 = vadd.f32 %v2409_v54, %v2359_v38  ;;  %v2282_v61 = vmul.f32 %v4198_v3, %v2248_v40  ;;  %v2380_v6 = vperm.slane %v4368_v0, 3  ;;  %v2541_v15 = vmul.f32 %v4358_v58, %v2507_v27 }
 0xaae   :  { %v2690_v37 = vadd.f32 %v2674_v4, %v2624_v13  ;;  %v2639_v5 = vperm.slane %v4365_v10, 7  ;;  %v2348_v45 = vmul.f32 %v4188_v12, %v2314_v63  ;;  %v2446_v25 = vperm.slane %v4368_v0, 4 }
 0xaaf   :  { %v2491_v21 = vadd.f32 %v2475_v26, %v2425_v60  ;;  %v2298_v17 = vadd.f32 %v2282_v61, %v2232_v32  ;;  %v2607_v46 = vmul.f32 %v4394_v48, %v2573_v16  ;;  %v4430_v57 = vmul.f32 %v4104_v34, %v2149_v8 }
 0xab0   :  { %2743 = vperm.xlu2 %2868, %v2690_v37   ;;  %v2673_v47 = vmul.f32 %v4390_v33, %v2639_v5  ;;  %v2414_v10 = vmul.f32 %v4204_v35, %v2380_v6  ;;  %v2512_v9 = vperm.slane %v4368_v0, 5  ;;  %v2578_v7 = vperm.slane %v4368_v0, 6 }
 0xab1   :  { %v2557_v29 = vadd.f32 %v2541_v15, %v2491_v21  ;;  %v2364_v18 = vadd.f32 %v2348_v45, %v2298_v17  ;;  %v2197_v24 = vperm.slane %v4430_v57, 0  ;;  %v2247_v59 = vperm.slane %v4430_v57, 1 }
 0xab2   :  { %v2313_v41 = vperm.slane %v4430_v57, 2  ;;  %v2480_v36 = vmul.f32 %v4329_v56, %v2446_v25  ;;  %v2148_v34 = vperm.slane %v4320_v1, 3  ;;  %v2379_v62 = vperm.slane %v4430_v57, 3 }
 0xab3   :  { %v2623_v52 = vadd.f32 %v2607_v46, %v2557_v29  ;;  %v2430_v55 = vadd.f32 %v2414_v10, %v2364_v18  ;;  %v2231_v8 = vmul.f32 %v4190_v39, %v2197_v24  ;;  %v2281_v19 = vmul.f32 %v4198_v3, %v2247_v59 }
 0xab4   :  { %v2152_v51 = vperm.slane %v4320_v1, 7  ;;  %v2546_v53 = vmul.f32 %v4358_v58, %v2512_v9  ;;  %v2644_v28 = vperm.slane %v4368_v0, 7  ;;  %v2612_v2 = vmul.f32 %v4394_v48, %v2578_v7 }
 0xab5   :  { %v2689_v42 = vadd.f32 %v2673_v47, %v2623_v52  ;;  %v2496_v31 = vadd.f32 %v2480_v36, %v2430_v55  ;;  %v2297_v30 = vadd.f32 %v2281_v19, %v2231_v8  ;;  %v2347_v14 = vmul.f32 %v4188_v12, %v2313_v41 }
 0xab6   :  { %v2445_v44 = vperm.slane %v4430_v57, 4  ;;  %v2678_v49 = vmul.f32 %v4390_v33, %v2644_v28  ;;  %v4451_v27 = vmul.f32 %v4109_v50, %v2148_v34  ;;  %v2151_v11 = vperm.slane %v4320_v1, 6 }
 0xab7   :  { %2740 = vperm.xlu1 %2867, %v2689_v42   ;;  %v2562_v20 = vadd.f32 %v2546_v53, %v2496_v31  ;;  %v2363_v4 = vadd.f32 %v2347_v14, %v2297_v30  ;;  %v2413_v38 = vmul.f32 %v4204_v35, %v2379_v62  ;;  %v2511_v0 = vperm.slane %v4430_v57, 5 }
 0xab8   :  { %v4457_v54 = vmul.f32 %v4116_v43, %v2152_v51  ;;  %v2196_v13 = vperm.slane %v4451_v27, 0  ;;  %v2246_v16 = vperm.slane %v4451_v27, 1  ;;  %v2312_v32 = vperm.slane %v4451_v27, 2 }
 0xab9   :  { %v2628_v40 = vadd.f32 %v2612_v2, %v2562_v20  ;;  %v2429_v63 = vadd.f32 %v2413_v38, %v2363_v4  ;;  %v2479_v50 = vmul.f32 %v4329_v56, %v2445_v44  ;;  %v2577_v1 = vperm.slane %v4430_v57, 6 }
 0xaba   :  { %v2230_v26 = vmul.f32 %v4190_v39, %v2196_v13  ;;  %v2280_v61 = vmul.f32 %v4198_v3, %v2246_v16  ;;  %v2378_v43 = vperm.slane %v4451_v27, 3  ;;  %v2545_v37 = vmul.f32 %v4358_v58, %v2511_v0 }
 0xabb   :  { %v2694_v60 = vadd.f32 %v2678_v49, %v2628_v40  ;;  %v2495_v6 = vadd.f32 %v2479_v50, %v2429_v63  ;;  %v2643_v15 = vperm.slane %v4430_v57, 7  ;;  %v4470_v5 = vmul.f32 %v4123_v23, %v2151_v11 }
 0xabc   :  { %v2296_v21 = vadd.f32 %v2280_v61, %v2230_v26  ;;  %v2346_v17 = vmul.f32 %v4188_v12, %v2312_v32  ;;  %v2444_v45 = vperm.slane %v4451_v27, 4  ;;  %v2200_v25 = vperm.slane %v4457_v54, 0 }
 0xabd   :  { %2755 = vperm.xlu0 %2869, %v2694_v60   ;;  %v2561_v46 = vadd.f32 %v2545_v37, %v2495_v6  ;;  %v2611_v47 = vmul.f32 %v4394_v48, %v2577_v1  ;;  %v2250_v29 = vperm.slane %v4457_v54, 1  ;;  %v2316_v18 = vperm.slane %v4457_v54, 2 }
 0xabe   :  { %v2362_v10 = vadd.f32 %v2346_v17, %v2296_v21  ;;  %v2412_v57 = vmul.f32 %v4204_v35, %v2378_v43  ;;  %v2510_v23 = vperm.slane %v4451_v27, 5  ;;  %v2234_v9 = vmul.f32 %v4190_v39, %v2200_v25 }
 0xabf   :  { %v2627_v7 = vadd.f32 %v2611_v47, %v2561_v46  ;;  %v2677_v24 = vmul.f32 %v4390_v33, %v2643_v15  ;;  %v2284_v59 = vmul.f32 %v4198_v3, %v2250_v29  ;;  %v2382_v41 = vperm.slane %v4457_v54, 3 }
 0xac0   :  { %v2428_v52 = vadd.f32 %v2412_v57, %v2362_v10  ;;  %v2478_v55 = vmul.f32 %v4329_v56, %v2444_v45  ;;  %v2576_v36 = vperm.slane %v4451_v27, 6  ;;  %v2350_v34 = vmul.f32 %v4188_v12, %v2316_v18 }
 0xac1   :  { %v2693_v8 = vadd.f32 %v2677_v24, %v2627_v7  ;;  %v2300_v19 = vadd.f32 %v2284_v59, %v2234_v9  ;;  %v2448_v62 = vperm.slane %v4457_v54, 4  ;;  %v2199_v51 = vperm.slane %v4470_v5, 0 }
 0xac2   :  { %v2494_v42 = vadd.f32 %v2478_v55, %v2428_v52  ;;  %v2544_v31 = vmul.f32 %v4358_v58, %v2510_v23  ;;  %v2642_v53 = vperm.slane %v4451_v27, 7  ;;  %v2514_v28 = vperm.slane %v4457_v54, 5 }
 0xac3   :  { %2752 = vperm.xlu2 %2868, %v2693_v8   ;;  %v2366_v2 = vadd.f32 %v2350_v34, %v2300_v19  ;;  %v2416_v30 = vmul.f32 %v4204_v35, %v2382_v41  ;;  %v2233_v14 = vmul.f32 %v4190_v39, %v2199_v51  ;;  %v2249_v44 = vperm.slane %v4470_v5, 1 }
 0xac4   :  { %v2560_v20 = vadd.f32 %v2544_v31, %v2494_v42  ;;  %v2610_v49 = vmul.f32 %v4394_v48, %v2576_v36  ;;  %v2580_v11 = vperm.slane %v4457_v54, 6  ;;  %v2315_v4 = vperm.slane %v4470_v5, 2 }
 0xac5   :  { %v2432_v38 = vadd.f32 %v2416_v30, %v2366_v2  ;;  %v2482_v27 = vmul.f32 %v4329_v56, %v2448_v62  ;;  %v2283_v0 = vmul.f32 %v4198_v3, %v2249_v44  ;;  %v2381_v40 = vperm.slane %v4470_v5, 3 }
 0xac6   :  { %v2626_v13 = vadd.f32 %v2610_v49, %v2560_v20  ;;  %v2676_v16 = vmul.f32 %v4390_v33, %v2642_v53  ;;  %v2548_v39 = vmul.f32 %v4358_v58, %v2514_v28  ;;  %v2349_v50 = vmul.f32 %v4188_v12, %v2315_v4 }
 0xac7   :  { %v2498_v32 = vadd.f32 %v2482_v27, %v2432_v38  ;;  %v2299_v63 = vadd.f32 %v2283_v0, %v2233_v14  ;;  %v2447_v1 = vperm.slane %v4470_v5, 4  ;;  %v2614_v26 = vmul.f32 %v4394_v48, %v2580_v11 }
 0xac8   :  { %v2692_v60 = vadd.f32 %v2676_v16, %v2626_v13  ;;  %v2646_v61 = vperm.slane %v4457_v54, 7  ;;  %v2415_v6 = vmul.f32 %v4204_v35, %v2381_v40  ;;  %v2513_v37 = vperm.slane %v4470_v5, 5 }
 0xac9   :  { %v2564_v43 = vadd.f32 %v2548_v39, %v2498_v32  ;;  %v2365_v3 = vadd.f32 %v2349_v50, %v2299_v63  ;;  %v2481_v12 = vmul.f32 %v4329_v56, %v2447_v1  ;;  %v2579_v45 = vperm.slane %v4470_v5, 6 }
 0xaca   :  { %2749 = vperm.xlu1 %2867, %v2692_v60   ;;  %v2680_v15 = vmul.f32 %v4390_v33, %v2646_v61  ;;  %v2547_v47 = vmul.f32 %v4358_v58, %v2513_v37  ;;  %v2645_v35 = vperm.slane %v4470_v5, 7 }
 0xacb   :  { %v2630_v21 = vadd.f32 %v2614_v26, %v2564_v43  ;;  %v2431_v17 = vadd.f32 %v2415_v6, %v2365_v3  ;;  %v2613_v29 = vmul.f32 %v4394_v48, %v2579_v45 }
 0xacc   :  { %v2679_v10 = vmul.f32 %v4390_v33, %v2645_v35 }
 0xacd   :  { %v2696_v25 = vadd.f32 %v2680_v15, %v2630_v21  ;;  %v2497_v46 = vadd.f32 %v2481_v12, %v2431_v17 }
 0xacf   :  { %2761 = vperm.xlu2 %2868, %v2696_v25   ;;  %v2563_v54 = vadd.f32 %v2547_v47, %v2497_v46 }
 0xad1   :  { %v2629_v18 = vadd.f32 %v2613_v29, %v2563_v54 }
 0xad3   :  { %v2695_v57 = vadd.f32 %v2679_v10, %v2629_v18 }
 0xad5   :  { %2758 = vperm.xlu1 %2867, %v2695_v57  }
 0xadb   :  { %v2720_v23 = vpop.permute.xlu2 %2719 }
 0xadc   :  { %v2764_v58 = vperm.slane %v2720_v23, %v3205_v22 }
 0xaec   :  { %v2729_v56 = vpop.permute.xlu2 %2728 }
 0xaed   :  { %v2767_v36 = vperm.slane %v2729_v56, %v3205_v22 }
 0xaf0   :  { %v2723_v7 = vpop.permute.xlu0 %2722 }
 0xaf1   :  { %v2765_v41 = vperm.slane %v2723_v7, %v3205_v22 }
 0xaf7   :  { %v2735_v33 = vpop.permute.xlu2 %2734 }
 0xaf8   :  { %v2717_v9 = vpop.permute.xlu1 %2716  ;;  %v2769_v62 = vperm.slane %v2735_v33, %v3205_v22 }
 0xaf9   :  { %v2763_v59 = vperm.slane %v2717_v9, %v3205_v22 }
 0xafb   :  { %v2779_v48 = vsel %vm366_vm2, %v2764_v58, %v2763_v59 }
 0xafc   :  { %v2780_v52 = vsel %vm368_vm3, %v2765_v41, %v2779_v48 }
 0xafd   :  { %v2738_v34 = vpop.permute.xlu0 %2737 }
 0xafe   :  { %v2770_v42 = vperm.slane %v2738_v34, %v3205_v22 }
 0xb0a   :  { %v2726_v24 = vpop.permute.xlu1 %2725  ;;  %v2744_v2 = vpop.permute.xlu2 %2743 }
 0xb0b   :  { %v2766_v5 = vperm.slane %v2726_v24, %v3205_v22  ;;  %v2772_v11 = vperm.slane %v2744_v2, %v3205_v22 }
 0xb0d   :  { %v2781_v55 = vsel %vm370_vm4, %v2766_v5, %v2780_v52 }
 0xb0e   :  { %v2782_v51 = vsel %vm372_vm5, %v2767_v36, %v2781_v55 }
 0xb19   :  { %v2732_v8 = vpop.permute.xlu1 %2731 }
 0xb1a   :  { %v2768_v19 = vperm.slane %v2732_v8, %v3205_v22 }
 0xb1c   :  { %v2783_v31 = vsel %vm374_vm6, %v2768_v19, %v2782_v51 }
 0xb1d   :  { %v2784_v53 = vsel %vm376_vm7, %v2769_v62, %v2783_v31  ;;  %v2753_v20 = vpop.permute.xlu2 %2752 }
 0xb1e   :  { %v2785_v28 = vsel %vm378_vm8, %v2770_v42, %v2784_v53  ;;  %v2747_v14 = vpop.permute.xlu0 %2746  ;;  %v2775_v13 = vperm.slane %v2753_v20, %v3205_v22 }
 0xb1f   :  { %2795 = vst.msk [vmem:[%s4557_s3 + $0x8] sm:$0xff] %vm283_vm1, %v2785_v28  ;;  %v2773_v27 = vperm.slane %v2747_v14, %v3205_v22 }
 0xb29   :  { %v2741_v30 = vpop.permute.xlu1 %2740  ;;  %v2762_v39 = vpop.permute.xlu2 %2761 }
 0xb2a   :  { %v2771_v44 = vperm.slane %v2741_v30, %v3205_v22  ;;  %v2778_v60 = vperm.slane %v2762_v39, %v3205_v22 }
 0xb2c   :  { %v2786_v4 = vsel %vm366_vm2, %v2772_v11, %v2771_v44 }
 0xb2d   :  { %v2787_v0 = vsel %vm368_vm3, %v2773_v27, %v2786_v4 }
 0xb2f   :  { %v2756_v16 = vpop.permute.xlu0 %2755 }
 0xb30   :  { %v2776_v63 = vperm.slane %v2756_v16, %v3205_v22 }
 0xb3c   :  { %v2750_v49 = vpop.permute.xlu1 %2749 }
 0xb3d   :  { %v2774_v38 = vperm.slane %v2750_v49, %v3205_v22 }
 0xb3f   :  { %v2788_v40 = vsel %vm370_vm4, %v2774_v38, %v2787_v0 }
 0xb40   :  { %v2789_v32 = vsel %vm372_vm5, %v2775_v13, %v2788_v40 }
 0xb41   :  { %v2790_v26 = vsel %vm374_vm6, %v2776_v63, %v2789_v32 }
 0xb47   :  { %v2759_v50 = vpop.permute.xlu1 %2758 }
 0xb48   :  { %v2777_v1 = vperm.slane %v2759_v50, %v3205_v22 }
 0xb4a   :  { %v2791_v61 = vsel %vm376_vm7, %v2777_v1, %v2790_v26 }
 0xb4b   :  { %v2792_v43 = vsel %vm378_vm8, %v2778_v60, %v2791_v61 }
 0xb4c   :  { %2796 = vst.msk [vmem:[%s4557_s3 + $0x18] sm:$0xff] %vm283_vm1, %v2792_v43 }

</bundles_post_ra>
